<compile_context>
chip_gen: v6e
topology: v6e:2x2x1
jax: 0.10.0
libtpu: 0.0.40
codegen_flags: <defaults>
</compile_context>

<pallas_src>
import functools

import jax
import jax.numpy as jnp
from jax import lax
from jax.experimental import pallas as pl
from jax.experimental.pallas import tpu as pltpu

EPS = 1e-5  # PyTorch InstanceNorm2d default (affine=False, no running stats)


# ---------------------------------------------------------------------------
# Fused kernel: one batch sample per grid step.
#
# Layout: padded images are flattened (C, Ppad), channels on sublanes,
# flattened padded spatial on lanes.  The 3x3 tap (dy, dx) of every output
# pixel is the contiguous lane-slice [dy*Wp+dx, dy*Wp+dx+Lpad) of that flat
# image ("band" trick).  Band positions on the padded border (seams) or beyond
# L are excluded from the InstanceNorm statistics and never emitted.
# ---------------------------------------------------------------------------
def _resnet_block_kernel(x_ref, w1_ref, w2_ref, out_ref, *scratch,
                         H, W, chunk, n_chunks, use_stack, mm_dtype):
    xp_ref, hp_ref, ys_ref = scratch[:3]
    stk_ref = scratch[3] if use_stack else None

    Hp, Wp = H + 2, W + 2
    P = Hp * Wp
    L = (H - 1) * Wp + W             # band length covering all H*W outputs
    Lpad = n_chunks * chunk          # lane-aligned band length (mult. of 128)
    inv_hw = 1.0 / float(H * W)
    C = xp_ref.shape[0]

    xv = x_ref.at[0]                 # (C, H*W) f32 ref view (no load)

    def reflect_row(r):              # padded row -> source row (reflect pad 1)
        return 1 if r == 0 else (H - 2 if r == Hp - 1 else r - 1)

    def build_padded(dst_ref, get_row):
        # Row-wise construction of a reflection-padded (C, Hp*Wp) image:
        # one Wp-wide store per padded row; left/right pad columns are folded
        # into the row value with a lane concat (no single-lane column stores).
        for r in range(Hp):
            row = get_row(reflect_row(r))                          # (C, W)
            rowp = jnp.concatenate(
                [row[:, 1:2], row, row[:, W - 2:W - 1]], axis=1)   # (C, Wp)
            dst_ref[:, r * Wp:(r + 1) * Wp] = rowp
        if Lpad > L:
            # Zero the over-allocated tail that the last conv chunk(s) read,
            # so every value entering the MXU / stats is finite & determinate.
            dst_ref[:, P:P + (Lpad - L)] = jnp.zeros((C, Lpad - L),
                                                     dst_ref.dtype)

    def conv_chunk(src_ref, w_ref, c0):
        # 3x3 VALID conv on the flat padded image, band chunk [c0, c0+chunk).
        if use_stack:
            # Tap-stacked: one MXU matmul per chunk with contraction K = 9*C.
            for t in range(9):
                dy, dx = divmod(t, 3)
                s = dy * Wp + dx + c0
                stk_ref[t * C:(t + 1) * C, :] = src_ref[:, s:s + chunk]
            return jnp.dot(w_ref[...], stk_ref[...],
                           preferred_element_type=jnp.float32)
        # Fallback for tiny / non-sublane-aligned C: 9 accumulated dots with a
        # chunk-sized f32 accumulator (fits in vregs; MRB-accumulated on v7x).
        acc = jnp.zeros((C, chunk), jnp.float32)
        for t in range(9):
            dy, dx = divmod(t, 3)
            s = dy * Wp + dx + c0
            acc = acc + jnp.dot(w_ref[t], src_ref[:, s:s + chunk],
                                preferred_element_type=jnp.float32)
        return acc

    def conv_and_stats(src_ref, w_ref):
        # Chunked conv -> f32 staging (ys_ref) + masked per-channel sums.
        ssum = jnp.zeros((C, 1), jnp.float32)
        ssq = jnp.zeros((C, 1), jnp.float32)
        for ci in range(n_chunks):
            c0 = ci * chunk
            y = conv_chunk(src_ref, w_ref, c0)                  # (C, chunk) f32
            ys_ref[:, c0:c0 + chunk] = y
            # Validity mask for this chunk, built from an iota and per-row
            # interval tests (no vector integer div/mod needed).
            b = lax.broadcasted_iota(jnp.int32, (1, chunk), 1) + c0
            i_lo = c0 // Wp
            i_hi = min(H - 1, (c0 + chunk - 1) // Wp)
            conds = [jnp.logical_and(b >= i * Wp, b < i * Wp + W)
                     for i in range(i_lo, i_hi + 1)]
            valid = functools.reduce(jnp.logical_or, conds)
            ym = jnp.where(valid, y, 0.0)       # select (NaN-proof), reused
            ssum = ssum + jnp.sum(ym, axis=1, keepdims=True)
            ssq = ssq + jnp.sum(ym * ym, axis=1, keepdims=True)
        mean = ssum * inv_hw
        # One-pass variance in f32; clamped for cancellation robustness.
        var = jnp.maximum(ssq * inv_hw - mean * mean, 0.0)
        return mean, lax.rsqrt(var + EPS)

    # ---- stage 0: reflection-pad the input into VMEM (matmul dtype) --------
    build_padded(xp_ref, lambda i: xv[:, i * W:(i + 1) * W].astype(mm_dtype))

    # ---- stage 1: conv1 -> InstanceNorm -> ReLU, re-padded into hp ---------
    mean1, rstd1 = conv_and_stats(xp_ref, w1_ref)

    def h_row(i):
        y = ys_ref[:, i * Wp:i * Wp + W]                         # (C, W) f32
        return jnp.maximum((y - mean1) * rstd1, 0.0).astype(mm_dtype)

    build_padded(hp_ref, h_row)

    # ---- stage 2: conv2 -> InstanceNorm -> residual add (dense output) -----
    mean2, rstd2 = conv_and_stats(hp_ref, w2_ref)
    for i in range(H):
        y = ys_ref[:, i * Wp:i * Wp + W]
        out_ref[0, :, i * W:(i + 1) * W] = (
            xv[:, i * W:(i + 1) * W] + (y - mean2) * rstd2)


# ---------------------------------------------------------------------------
# Wrapper
# ---------------------------------------------------------------------------
def resnet_forward(x, params, *, matmul_dtype=jnp.bfloat16, chunk=1024):
    w1, _b1, w2, _b2 = params  # biases are no-ops under affine-less InstanceNorm
    N, C, H, W = x.shape
    assert H >= 2 and W >= 2, "ReflectionPad2d(1) requires H, W >= 2"
    Hp, Wp = H + 2, W + 2
    P, HW = Hp * Wp, H * W
    L = (H - 1) * Wp + W

    def rup(v, m):
        return (v + m - 1) // m * m

    chunk = max(128, min(rup(chunk, 128), rup(L, 128)))   # lane-aligned chunks
    n_chunks = pl.cdiv(L, chunk)
    Lpad = n_chunks * chunk
    Ppad = P + (Lpad - L)      # padded-image scratch covers every tap read

    # Tap-stacked single-matmul path only when C is sublane-tile aligned for
    # the operand dtype; tiny / ragged C uses 9 accumulated dots instead.
    isz = jnp.dtype(matmul_dtype).itemsize
    sublane_tile = 8 if isz == 4 else 16
    use_stack = (C % sublane_tile == 0)

    x_flat = x.astype(jnp.float32).reshape(N, C, HW)

    if use_stack:
        # (O, I, 3, 3) -> (O, 9*I): contraction dim 9*C fills the MXU depth.
        w1k = jnp.transpose(w1, (0, 2, 3, 1)).reshape(C, 9 * C).astype(matmul_dtype)
        w2k = jnp.transpose(w2, (0, 2, 3, 1)).reshape(C, 9 * C).astype(matmul_dtype)
        w_spec = pl.BlockSpec((C, 9 * C), lambda n: (0, 0))
    else:
        # (O, I, 3, 3) -> (9, O, I): one (C, C) weight per tap.
        w1k = jnp.transpose(w1, (2, 3, 0, 1)).reshape(9, C, C).astype(matmul_dtype)
        w2k = jnp.transpose(w2, (2, 3, 0, 1)).reshape(9, C, C).astype(matmul_dtype)
        w_spec = pl.BlockSpec((9, C, C), lambda n: (0, 0, 0))

    scratch_shapes = [
        pltpu.VMEM((C, Ppad), matmul_dtype),   # reflection-padded input
        pltpu.VMEM((C, Ppad), matmul_dtype),   # reflection-padded hidden h
        pltpu.VMEM((C, Lpad), jnp.float32),    # pre-norm conv staging
    ]
    if use_stack:
        scratch_shapes.append(pltpu.VMEM((9 * C, chunk), matmul_dtype))

    # Explicit scoped-VMEM budget: double-buffered in/out blocks + weights +
    # scratches + headroom for in-kernel temporaries.
    est = (2 * 2 * C * HW * 4
           + 2 * 2 * 9 * C * C * isz
           + 2 * C * Ppad * isz + C * Lpad * 4
           + (9 * C * chunk * isz if use_stack else 0)
           + (8 << 20))
    vmem_limit = int(min(max(est, 32 << 20), 128 << 20))

    kernel = functools.partial(
        _resnet_block_kernel, H=H, W=W, chunk=chunk, n_chunks=n_chunks,
        use_stack=use_stack, mm_dtype=matmul_dtype)

    out = pl.pallas_call(
        kernel,
        out_shape=jax.ShapeDtypeStruct((N, C, HW), jnp.float32),
        grid=(N,),
        in_specs=[
            pl.BlockSpec((1, C, HW), lambda n: (n, 0, 0)),   # one sample
            w_spec,                                          # conv1 weights
            w_spec,                                          # conv2 weights
        ],
        out_specs=pl.BlockSpec((1, C, HW), lambda n: (n, 0, 0)),
        scratch_shapes=scratch_shapes,
        compiler_params=pltpu.CompilerParams(
            dimension_semantics=("parallel",),
            vmem_limit_bytes=vmem_limit),
    )(x_flat, w1k, w2k)

    return out.reshape(N, C, H, W)


# ---------------------------------------------------------------------------
# Pure-JAX f32 reference (exact PyTorch semantics, for correctness check only)
# ---------------------------------------------------------------------------
def resnet_reference(x, params):
    w1, b1, w2, b2 = params

    def block(inp, w, b, relu):
        xp = jnp.pad(inp, ((0, 0), (0, 0), (1, 1), (1, 1)), mode="reflect")
        y = lax.conv_general_dilated(
            xp, w, window_strides=(1, 1), padding="VALID",
            dimension_numbers=("NCHW", "OIHW", "NCHW"))
        y = y + b[None, :, None, None]
        mean = jnp.mean(y, axis=(2, 3), keepdims=True)
        var = jnp.mean((y - mean) ** 2, axis=(2, 3), keepdims=True)
        y = (y - mean) * lax.rsqrt(var + EPS)
        return jnp.maximum(y, 0.0) if relu else y

    h = block(x, w1, b1, True)
    return x + block(h, w2, b2, False)


if __name__ == "__main__":
    key = jax.random.PRNGKey(0)

    def make_case(k, N, C, H, W):
        kx, kw1, kb1, kw2, kb2 = jax.random.split(k, 5)
        x = jax.random.normal(kx, (N, C, H, W), dtype=jnp.float32)
        fan_in = C * 3 * 3
        bound = 1.0 / (fan_in ** 0.5)
        w1 = jax.random.uniform(kw1, (C, C, 3, 3), jnp.float32, -bound, bound)
        b1 = jax.random.uniform(kb1, (C,), jnp.float32, -bound, bound)
        w2 = jax.random.uniform(kw2, (C, C, 3, 3), jnp.float32, -bound, bound)
        b2 = jax.random.uniform(kb2, (C,), jnp.float32, -bound, bound)
        return x, (w1, b1, w2, b2)

    # (N, C, H, W, chunk):
    #   case 0: C=4  -> 9-dot fallback path, 3 band chunks (multi-chunk path).
    #   case 1: C=32 -> tap-stacked single-matmul path, 3 band chunks.
    cases = [(2, 4, 16, 16, 128),
             (1, 32, 16, 16, 128)]

    for idx, (N, C, H, W, chunk) in enumerate(cases):
        x, params = make_case(jax.random.fold_in(key, idx), N, C, H, W)
        ref = jax.block_until_ready(resnet_reference(x, params))

        # Structural check: f32 matmul operands must match the reference
        # tightly (verifies taps, in-kernel reflection padding, InstanceNorm
        # statistics and the residual exactly).
        out_f32 = jax.block_until_ready(
            jax.jit(functools.partial(resnet_forward,
                                      matmul_dtype=jnp.float32,
                                      chunk=chunk))(x, params))
        assert out_f32.shape == x.shape and out_f32.dtype == jnp.float32
        err_f32 = float(jnp.max(jnp.abs(out_f32 - ref)))
        assert err_f32 < 1e-4, f"case {idx}: f32 kernel mismatch: {err_f32}"

        # Default performance path: bf16 MXU operands, f32 stats / staging /
        # residual.  bf16 rounding through two conv+IN stages gives ~1e-2
        # drift vs. the pure-f32 reference, hence the looser tolerance.
        out_bf = jax.block_until_ready(
            jax.jit(functools.partial(resnet_forward,
                                      chunk=chunk))(x, params))
        assert out_bf.shape == x.shape and out_bf.dtype == jnp.float32
        err_bf = float(jnp.max(jnp.abs(out_bf - ref)))
        assert err_bf < 5e-2, f"case {idx}: bf16 kernel mismatch: {err_bf}"

    print("KERNEL_OK")
</pallas_src>

<mosaic_0001>
module attributes {stable_mosaic.version = 11 : i64} {
  func.func @_resnet_block_kernel(%arg0: i32, %arg1: memref<1x4x256xf32, #tpu.memory_space<vmem>>, %arg2: memref<9x4x4xf32, #tpu.memory_space<vmem>>, %arg3: memref<9x4x4xf32, #tpu.memory_space<vmem>>, %arg4: memref<1x4x256xf32, #tpu.memory_space<vmem>>, %arg5: memref<4x422xf32, #tpu.memory_space<vmem>>, %arg6: memref<4x422xf32, #tpu.memory_space<vmem>>, %arg7: memref<4x384xf32, #tpu.memory_space<vmem>>) attributes {dimension_semantics = [#tpu.dimension_semantics<parallel>], iteration_bounds = array<i64: 2>, scalar_prefetch = 0 : i64, scratch_operands = 3 : i64, tpu.core_type = #tpu.core_type<tc>, window_params = [{transform_indices = @transform_0, window_bounds = array<i64: 1, 4, 256>}, {pipeline_mode = #tpu.pipeline_mode<synchronous>, transform_indices = @transform_1, window_bounds = array<i64: 9, 4, 4>}, {pipeline_mode = #tpu.pipeline_mode<synchronous>, transform_indices = @transform_2, window_bounds = array<i64: 9, 4, 4>}, {transform_indices = @transform_3, window_bounds = array<i64: 1, 4, 256>}]} {
    %c0_i32 = arith.constant 0 : i32
    %c0_i32_0 = arith.constant 0 : i32
    %c0_i32_1 = arith.constant 0 : i32
    %0 = tpu.memref_slice %arg1[%c0_i32, %c0_i32_0, %c0_i32_1] : memref<1x4x256xf32, #tpu.memory_space<vmem>> -> memref<1x4x256xf32, #tpu.memory_space<vmem>>
    %1 = tpu.memref_squeeze %0 : memref<1x4x256xf32, #tpu.memory_space<vmem>> -> memref<4x256xf32, #tpu.memory_space<vmem>>
    %c0 = arith.constant 0 : index
    %c16 = arith.constant 16 : index
    %2 = vector.load %1[%c0, %c16] : memref<4x256xf32, #tpu.memory_space<vmem>>, vector<4x16xf32>
    %3 = vector.extract_strided_slice %2 {offsets = [0, 1], sizes = [4, 1], strides = [1, 1]} : vector<4x16xf32> to vector<4x1xf32>
    %4 = vector.extract_strided_slice %2 {offsets = [0, 14], sizes = [4, 1], strides = [1, 1]} : vector<4x16xf32> to vector<4x1xf32>
    %5 = tpu.concatenate %3, %2, %4 in 1 : vector<4x1xf32>, vector<4x16xf32>, vector<4x1xf32> -> vector<4x18xf32>
    %c0_2 = arith.constant 0 : index
    %c0_3 = arith.constant 0 : index
    %6 = vector.load %arg5[%c0_2, %c0_3] : memref<4x422xf32, #tpu.memory_space<vmem>>, vector<4x18xf32>
    tpu.vector_store %arg5[%c0_2, %c0_3], %5 {strides = array<i32>} : memref<4x422xf32, #tpu.memory_space<vmem>>, vector<4x18xf32>,
    %c0_i32_4 = arith.constant 0 : i32
    %c0_i32_5 = arith.constant 0 : i32
    %c0_i32_6 = arith.constant 0 : i32
    %7 = tpu.memref_slice %arg1[%c0_i32_4, %c0_i32_5, %c0_i32_6] : memref<1x4x256xf32, #tpu.memory_space<vmem>> -> memref<1x4x256xf32, #tpu.memory_space<vmem>>
    %8 = tpu.memref_squeeze %7 : memref<1x4x256xf32, #tpu.memory_space<vmem>> -> memref<4x256xf32, #tpu.memory_space<vmem>>
    %c0_7 = arith.constant 0 : index
    %c0_8 = arith.constant 0 : index
    %9 = vector.load %8[%c0_7, %c0_8] : memref<4x256xf32, #tpu.memory_space<vmem>>, vector<4x16xf32>
    %10 = vector.extract_strided_slice %9 {offsets = [0, 1], sizes = [4, 1], strides = [1, 1]} : vector<4x16xf32> to vector<4x1xf32>
    %11 = vector.extract_strided_slice %9 {offsets = [0, 14], sizes = [4, 1], strides = [1, 1]} : vector<4x16xf32> to vector<4x1xf32>
    %12 = tpu.concatenate %10, %9, %11 in 1 : vector<4x1xf32>, vector<4x16xf32>, vector<4x1xf32> -> vector<4x18xf32>
    %c0_9 = arith.constant 0 : index
    %c18 = arith.constant 18 : index
    %13 = vector.load %arg5[%c0_9, %c18] : memref<4x422xf32, #tpu.memory_space<vmem>>, vector<4x18xf32>
    tpu.vector_store %arg5[%c0_9, %c18], %12 {strides = array<i32>} : memref<4x422xf32, #tpu.memory_space<vmem>>, vector<4x18xf32>,
    %c0_i32_10 = arith.constant 0 : i32
    %c0_i32_11 = arith.constant 0 : i32
    %c0_i32_12 = arith.constant 0 : i32
    %14 = tpu.memref_slice %arg1[%c0_i32_10, %c0_i32_11, %c0_i32_12] : memref<1x4x256xf32, #tpu.memory_space<vmem>> -> memref<1x4x256xf32, #tpu.memory_space<vmem>>
    %15 = tpu.memref_squeeze %14 : memref<1x4x256xf32, #tpu.memory_space<vmem>> -> memref<4x256xf32, #tpu.memory_space<vmem>>
    %c0_13 = arith.constant 0 : index
    %c16_14 = arith.constant 16 : index
    %16 = vector.load %15[%c0_13, %c16_14] : memref<4x256xf32, #tpu.memory_space<vmem>>, vector<4x16xf32>
    %17 = vector.extract_strided_slice %16 {offsets = [0, 1], sizes = [4, 1], strides = [1, 1]} : vector<4x16xf32> to vector<4x1xf32>
    %18 = vector.extract_strided_slice %16 {offsets = [0, 14], sizes = [4, 1], strides = [1, 1]} : vector<4x16xf32> to vector<4x1xf32>
    %19 = tpu.concatenate %17, %16, %18 in 1 : vector<4x1xf32>, vector<4x16xf32>, vector<4x1xf32> -> vector<4x18xf32>
    %c0_15 = arith.constant 0 : index
    %c36 = arith.constant 36 : index
    %20 = vector.load %arg5[%c0_15, %c36] : memref<4x422xf32, #tpu.memory_space<vmem>>, vector<4x18xf32>
    tpu.vector_store %arg5[%c0_15, %c36], %19 {strides = array<i32>} : memref<4x422xf32, #tpu.memory_space<vmem>>, vector<4x18xf32>,
    %c0_i32_16 = arith.constant 0 : i32
    %c0_i32_17 = arith.constant 0 : i32
    %c0_i32_18 = arith.constant 0 : i32
    %21 = tpu.memref_slice %arg1[%c0_i32_16, %c0_i32_17, %c0_i32_18] : memref<1x4x256xf32, #tpu.memory_space<vmem>> -> memref<1x4x256xf32, #tpu.memory_space<vmem>>
    %22 = tpu.memref_squeeze %21 : memref<1x4x256xf32, #tpu.memory_space<vmem>> -> memref<4x256xf32, #tpu.memory_space<vmem>>
    %c0_19 = arith.constant 0 : index
    %c32 = arith.constant 32 : index
    %23 = vector.load %22[%c0_19, %c32] : memref<4x256xf32, #tpu.memory_space<vmem>>, vector<4x16xf32>
    %24 = vector.extract_strided_slice %23 {offsets = [0, 1], sizes = [4, 1], strides = [1, 1]} : vector<4x16xf32> to vector<4x1xf32>
    %25 = vector.extract_strided_slice %23 {offsets = [0, 14], sizes = [4, 1], strides = [1, 1]} : vector<4x16xf32> to vector<4x1xf32>
    %26 = tpu.concatenate %24, %23, %25 in 1 : vector<4x1xf32>, vector<4x16xf32>, vector<4x1xf32> -> vector<4x18xf32>
    %c0_20 = arith.constant 0 : index
    %c54 = arith.constant 54 : index
    %27 = vector.load %arg5[%c0_20, %c54] : memref<4x422xf32, #tpu.memory_space<vmem>>, vector<4x18xf32>
    tpu.vector_store %arg5[%c0_20, %c54], %26 {strides = array<i32>} : memref<4x422xf32, #tpu.memory_space<vmem>>, vector<4x18xf32>,
    %c0_i32_21 = arith.constant 0 : i32
    %c0_i32_22 = arith.constant 0 : i32
    %c0_i32_23 = arith.constant 0 : i32
    %28 = tpu.memref_slice %arg1[%c0_i32_21, %c0_i32_22, %c0_i32_23] : memref<1x4x256xf32, #tpu.memory_space<vmem>> -> memref<1x4x256xf32, #tpu.memory_space<vmem>>
    %29 = tpu.memref_squeeze %28 : memref<1x4x256xf32, #tpu.memory_space<vmem>> -> memref<4x256xf32, #tpu.memory_space<vmem>>
    %c0_24 = arith.constant 0 : index
    %c48 = arith.constant 48 : index
    %30 = vector.load %29[%c0_24, %c48] : memref<4x256xf32, #tpu.memory_space<vmem>>, vector<4x16xf32>
    %31 = vector.extract_strided_slice %30 {offsets = [0, 1], sizes = [4, 1], strides = [1, 1]} : vector<4x16xf32> to vector<4x1xf32>
    %32 = vector.extract_strided_slice %30 {offsets = [0, 14], sizes = [4, 1], strides = [1, 1]} : vector<4x16xf32> to vector<4x1xf32>
    %33 = tpu.concatenate %31, %30, %32 in 1 : vector<4x1xf32>, vector<4x16xf32>, vector<4x1xf32> -> vector<4x18xf32>
    %c0_25 = arith.constant 0 : index
    %c72 = arith.constant 72 : index
    %34 = vector.load %arg5[%c0_25, %c72] : memref<4x422xf32, #tpu.memory_space<vmem>>, vector<4x18xf32>
    tpu.vector_store %arg5[%c0_25, %c72], %33 {strides = array<i32>} : memref<4x422xf32, #tpu.memory_space<vmem>>, vector<4x18xf32>,
    %c0_i32_26 = arith.constant 0 : i32
    %c0_i32_27 = arith.constant 0 : i32
    %c0_i32_28 = arith.constant 0 : i32
    %35 = tpu.memref_slice %arg1[%c0_i32_26, %c0_i32_27, %c0_i32_28] : memref<1x4x256xf32, #tpu.memory_space<vmem>> -> memref<1x4x256xf32, #tpu.memory_space<vmem>>
    %36 = tpu.memref_squeeze %35 : memref<1x4x256xf32, #tpu.memory_space<vmem>> -> memref<4x256xf32, #tpu.memory_space<vmem>>
    %c0_29 = arith.constant 0 : index
    %c64 = arith.constant 64 : index
    %37 = vector.load %36[%c0_29, %c64] : memref<4x256xf32, #tpu.memory_space<vmem>>, vector<4x16xf32>
    %38 = vector.extract_strided_slice %37 {offsets = [0, 1], sizes = [4, 1], strides = [1, 1]} : vector<4x16xf32> to vector<4x1xf32>
    %39 = vector.extract_strided_slice %37 {offsets = [0, 14], sizes = [4, 1], strides = [1, 1]} : vector<4x16xf32> to vector<4x1xf32>
    %40 = tpu.concatenate %38, %37, %39 in 1 : vector<4x1xf32>, vector<4x16xf32>, vector<4x1xf32> -> vector<4x18xf32>
    %c0_30 = arith.constant 0 : index
    %c90 = arith.constant 90 : index
    %41 = vector.load %arg5[%c0_30, %c90] : memref<4x422xf32, #tpu.memory_space<vmem>>, vector<4x18xf32>
    tpu.vector_store %arg5[%c0_30, %c90], %40 {strides = array<i32>} : memref<4x422xf32, #tpu.memory_space<vmem>>, vector<4x18xf32>,
    %c0_i32_31 = arith.constant 0 : i32
    %c0_i32_32 = arith.constant 0 : i32
    %c0_i32_33 = arith.constant 0 : i32
    %42 = tpu.memref_slice %arg1[%c0_i32_31, %c0_i32_32, %c0_i32_33] : memref<1x4x256xf32, #tpu.memory_space<vmem>> -> memref<1x4x256xf32, #tpu.memory_space<vmem>>
    %43 = tpu.memref_squeeze %42 : memref<1x4x256xf32, #tpu.memory_space<vmem>> -> memref<4x256xf32, #tpu.memory_space<vmem>>
    %c0_34 = arith.constant 0 : index
    %c80 = arith.constant 80 : index
    %44 = vector.load %43[%c0_34, %c80] : memref<4x256xf32, #tpu.memory_space<vmem>>, vector<4x16xf32>
    %45 = vector.extract_strided_slice %44 {offsets = [0, 1], sizes = [4, 1], strides = [1, 1]} : vector<4x16xf32> to vector<4x1xf32>
    %46 = vector.extract_strided_slice %44 {offsets = [0, 14], sizes = [4, 1], strides = [1, 1]} : vector<4x16xf32> to vector<4x1xf32>
    %47 = tpu.concatenate %45, %44, %46 in 1 : vector<4x1xf32>, vector<4x16xf32>, vector<4x1xf32> -> vector<4x18xf32>
    %c0_35 = arith.constant 0 : index
    %c108 = arith.constant 108 : index
    %48 = vector.load %arg5[%c0_35, %c108] : memref<4x422xf32, #tpu.memory_space<vmem>>, vector<4x18xf32>
    tpu.vector_store %arg5[%c0_35, %c108], %47 {strides = array<i32>} : memref<4x422xf32, #tpu.memory_space<vmem>>, vector<4x18xf32>,
    %c0_i32_36 = arith.constant 0 : i32
    %c0_i32_37 = arith.constant 0 : i32
    %c0_i32_38 = arith.constant 0 : i32
    %49 = tpu.memref_slice %arg1[%c0_i32_36, %c0_i32_37, %c0_i32_38] : memref<1x4x256xf32, #tpu.memory_space<vmem>> -> memref<1x4x256xf32, #tpu.memory_space<vmem>>
    %50 = tpu.memref_squeeze %49 : memref<1x4x256xf32, #tpu.memory_space<vmem>> -> memref<4x256xf32, #tpu.memory_space<vmem>>
    %c0_39 = arith.constant 0 : index
    %c96 = arith.constant 96 : index
    %51 = vector.load %50[%c0_39, %c96] : memref<4x256xf32, #tpu.memory_space<vmem>>, vector<4x16xf32>
    %52 = vector.extract_strided_slice %51 {offsets = [0, 1], sizes = [4, 1], strides = [1, 1]} : vector<4x16xf32> to vector<4x1xf32>
    %53 = vector.extract_strided_slice %51 {offsets = [0, 14], sizes = [4, 1], strides = [1, 1]} : vector<4x16xf32> to vector<4x1xf32>
    %54 = tpu.concatenate %52, %51, %53 in 1 : vector<4x1xf32>, vector<4x16xf32>, vector<4x1xf32> -> vector<4x18xf32>
    %c0_40 = arith.constant 0 : index
    %c126 = arith.constant 126 : index
    %55 = vector.load %arg5[%c0_40, %c126] : memref<4x422xf32, #tpu.memory_space<vmem>>, vector<4x18xf32>
    tpu.vector_store %arg5[%c0_40, %c126], %54 {strides = array<i32>} : memref<4x422xf32, #tpu.memory_space<vmem>>, vector<4x18xf32>,
    %c0_i32_41 = arith.constant 0 : i32
    %c0_i32_42 = arith.constant 0 : i32
    %c0_i32_43 = arith.constant 0 : i32
    %56 = tpu.memref_slice %arg1[%c0_i32_41, %c0_i32_42, %c0_i32_43] : memref<1x4x256xf32, #tpu.memory_space<vmem>> -> memref<1x4x256xf32, #tpu.memory_space<vmem>>
    %57 = tpu.memref_squeeze %56 : memref<1x4x256xf32, #tpu.memory_space<vmem>> -> memref<4x256xf32, #tpu.memory_space<vmem>>
    %c0_44 = arith.constant 0 : index
    %c112 = arith.constant 112 : index
    %58 = vector.load %57[%c0_44, %c112] : memref<4x256xf32, #tpu.memory_space<vmem>>, vector<4x16xf32>
    %59 = vector.extract_strided_slice %58 {offsets = [0, 1], sizes = [4, 1], strides = [1, 1]} : vector<4x16xf32> to vector<4x1xf32>
    %60 = vector.extract_strided_slice %58 {offsets = [0, 14], sizes = [4, 1], strides = [1, 1]} : vector<4x16xf32> to vector<4x1xf32>
    %61 = tpu.concatenate %59, %58, %60 in 1 : vector<4x1xf32>, vector<4x16xf32>, vector<4x1xf32> -> vector<4x18xf32>
    %c0_45 = arith.constant 0 : index
    %c144 = arith.constant 144 : index
    %62 = vector.load %arg5[%c0_45, %c144] : memref<4x422xf32, #tpu.memory_space<vmem>>, vector<4x18xf32>
    tpu.vector_store %arg5[%c0_45, %c144], %61 {strides = array<i32>} : memref<4x422xf32, #tpu.memory_space<vmem>>, vector<4x18xf32>,
    %c0_i32_46 = arith.constant 0 : i32
    %c0_i32_47 = arith.constant 0 : i32
    %c0_i32_48 = arith.constant 0 : i32
    %63 = tpu.memref_slice %arg1[%c0_i32_46, %c0_i32_47, %c0_i32_48] : memref<1x4x256xf32, #tpu.memory_space<vmem>> -> memref<1x4x256xf32, #tpu.memory_space<vmem>>
    %64 = tpu.memref_squeeze %63 : memref<1x4x256xf32, #tpu.memory_space<vmem>> -> memref<4x256xf32, #tpu.memory_space<vmem>>
    %c0_49 = arith.constant 0 : index
    %c128 = arith.constant 128 : index
    %65 = vector.load %64[%c0_49, %c128] : memref<4x256xf32, #tpu.memory_space<vmem>>, vector<4x16xf32>
    %66 = vector.extract_strided_slice %65 {offsets = [0, 1], sizes = [4, 1], strides = [1, 1]} : vector<4x16xf32> to vector<4x1xf32>
    %67 = vector.extract_strided_slice %65 {offsets = [0, 14], sizes = [4, 1], strides = [1, 1]} : vector<4x16xf32> to vector<4x1xf32>
    %68 = tpu.concatenate %66, %65, %67 in 1 : vector<4x1xf32>, vector<4x16xf32>, vector<4x1xf32> -> vector<4x18xf32>
    %c0_50 = arith.constant 0 : index
    %c162 = arith.constant 162 : index
    %69 = vector.load %arg5[%c0_50, %c162] : memref<4x422xf32, #tpu.memory_space<vmem>>, vector<4x18xf32>
    tpu.vector_store %arg5[%c0_50, %c162], %68 {strides = array<i32>} : memref<4x422xf32, #tpu.memory_space<vmem>>, vector<4x18xf32>,
    %c0_i32_51 = arith.constant 0 : i32
    %c0_i32_52 = arith.constant 0 : i32
    %c0_i32_53 = arith.constant 0 : i32
    %70 = tpu.memref_slice %arg1[%c0_i32_51, %c0_i32_52, %c0_i32_53] : memref<1x4x256xf32, #tpu.memory_space<vmem>> -> memref<1x4x256xf32, #tpu.memory_space<vmem>>
    %71 = tpu.memref_squeeze %70 : memref<1x4x256xf32, #tpu.memory_space<vmem>> -> memref<4x256xf32, #tpu.memory_space<vmem>>
    %c0_54 = arith.constant 0 : index
    %c144_55 = arith.constant 144 : index
    %72 = vector.load %71[%c0_54, %c144_55] : memref<4x256xf32, #tpu.memory_space<vmem>>, vector<4x16xf32>
    %73 = vector.extract_strided_slice %72 {offsets = [0, 1], sizes = [4, 1], strides = [1, 1]} : vector<4x16xf32> to vector<4x1xf32>
    %74 = vector.extract_strided_slice %72 {offsets = [0, 14], sizes = [4, 1], strides = [1, 1]} : vector<4x16xf32> to vector<4x1xf32>
    %75 = tpu.concatenate %73, %72, %74 in 1 : vector<4x1xf32>, vector<4x16xf32>, vector<4x1xf32> -> vector<4x18xf32>
    %c0_56 = arith.constant 0 : index
    %c180 = arith.constant 180 : index
    %76 = vector.load %arg5[%c0_56, %c180] : memref<4x422xf32, #tpu.memory_space<vmem>>, vector<4x18xf32>
    tpu.vector_store %arg5[%c0_56, %c180], %75 {strides = array<i32>} : memref<4x422xf32, #tpu.memory_space<vmem>>, vector<4x18xf32>,
    %c0_i32_57 = arith.constant 0 : i32
    %c0_i32_58 = arith.constant 0 : i32
    %c0_i32_59 = arith.constant 0 : i32
    %77 = tpu.memref_slice %arg1[%c0_i32_57, %c0_i32_58, %c0_i32_59] : memref<1x4x256xf32, #tpu.memory_space<vmem>> -> memref<1x4x256xf32, #tpu.memory_space<vmem>>
    %78 = tpu.memref_squeeze %77 : memref<1x4x256xf32, #tpu.memory_space<vmem>> -> memref<4x256xf32, #tpu.memory_space<vmem>>
    %c0_60 = arith.constant 0 : index
    %c160 = arith.constant 160 : index
    %79 = vector.load %78[%c0_60, %c160] : memref<4x256xf32, #tpu.memory_space<vmem>>, vector<4x16xf32>
    %80 = vector.extract_strided_slice %79 {offsets = [0, 1], sizes = [4, 1], strides = [1, 1]} : vector<4x16xf32> to vector<4x1xf32>
    %81 = vector.extract_strided_slice %79 {offsets = [0, 14], sizes = [4, 1], strides = [1, 1]} : vector<4x16xf32> to vector<4x1xf32>
    %82 = tpu.concatenate %80, %79, %81 in 1 : vector<4x1xf32>, vector<4x16xf32>, vector<4x1xf32> -> vector<4x18xf32>
    %c0_61 = arith.constant 0 : index
    %c198 = arith.constant 198 : index
    %83 = vector.load %arg5[%c0_61, %c198] : memref<4x422xf32, #tpu.memory_space<vmem>>, vector<4x18xf32>
    tpu.vector_store %arg5[%c0_61, %c198], %82 {strides = array<i32>} : memref<4x422xf32, #tpu.memory_space<vmem>>, vector<4x18xf32>,
    %c0_i32_62 = arith.constant 0 : i32
    %c0_i32_63 = arith.constant 0 : i32
    %c0_i32_64 = arith.constant 0 : i32
    %84 = tpu.memref_slice %arg1[%c0_i32_62, %c0_i32_63, %c0_i32_64] : memref<1x4x256xf32, #tpu.memory_space<vmem>> -> memref<1x4x256xf32, #tpu.memory_space<vmem>>
    %85 = tpu.memref_squeeze %84 : memref<1x4x256xf32, #tpu.memory_space<vmem>> -> memref<4x256xf32, #tpu.memory_space<vmem>>
    %c0_65 = arith.constant 0 : index
    %c176 = arith.constant 176 : index
    %86 = vector.load %85[%c0_65, %c176] : memref<4x256xf32, #tpu.memory_space<vmem>>, vector<4x16xf32>
    %87 = vector.extract_strided_slice %86 {offsets = [0, 1], sizes = [4, 1], strides = [1, 1]} : vector<4x16xf32> to vector<4x1xf32>
    %88 = vector.extract_strided_slice %86 {offsets = [0, 14], sizes = [4, 1], strides = [1, 1]} : vector<4x16xf32> to vector<4x1xf32>
    %89 = tpu.concatenate %87, %86, %88 in 1 : vector<4x1xf32>, vector<4x16xf32>, vector<4x1xf32> -> vector<4x18xf32>
    %c0_66 = arith.constant 0 : index
    %c216 = arith.constant 216 : index
    %90 = vector.load %arg5[%c0_66, %c216] : memref<4x422xf32, #tpu.memory_space<vmem>>, vector<4x18xf32>
    tpu.vector_store %arg5[%c0_66, %c216], %89 {strides = array<i32>} : memref<4x422xf32, #tpu.memory_space<vmem>>, vector<4x18xf32>,
    %c0_i32_67 = arith.constant 0 : i32
    %c0_i32_68 = arith.constant 0 : i32
    %c0_i32_69 = arith.constant 0 : i32
    %91 = tpu.memref_slice %arg1[%c0_i32_67, %c0_i32_68, %c0_i32_69] : memref<1x4x256xf32, #tpu.memory_space<vmem>> -> memref<1x4x256xf32, #tpu.memory_space<vmem>>
    %92 = tpu.memref_squeeze %91 : memref<1x4x256xf32, #tpu.memory_space<vmem>> -> memref<4x256xf32, #tpu.memory_space<vmem>>
    %c0_70 = arith.constant 0 : index
    %c192 = arith.constant 192 : index
    %93 = vector.load %92[%c0_70, %c192] : memref<4x256xf32, #tpu.memory_space<vmem>>, vector<4x16xf32>
    %94 = vector.extract_strided_slice %93 {offsets = [0, 1], sizes = [4, 1], strides = [1, 1]} : vector<4x16xf32> to vector<4x1xf32>
    %95 = vector.extract_strided_slice %93 {offsets = [0, 14], sizes = [4, 1], strides = [1, 1]} : vector<4x16xf32> to vector<4x1xf32>
    %96 = tpu.concatenate %94, %93, %95 in 1 : vector<4x1xf32>, vector<4x16xf32>, vector<4x1xf32> -> vector<4x18xf32>
    %c0_71 = arith.constant 0 : index
    %c234 = arith.constant 234 : index
    %97 = vector.load %arg5[%c0_71, %c234] : memref<4x422xf32, #tpu.memory_space<vmem>>, vector<4x18xf32>
    tpu.vector_store %arg5[%c0_71, %c234], %96 {strides = array<i32>} : memref<4x422xf32, #tpu.memory_space<vmem>>, vector<4x18xf32>,
    %c0_i32_72 = arith.constant 0 : i32
    %c0_i32_73 = arith.constant 0 : i32
    %c0_i32_74 = arith.constant 0 : i32
    %98 = tpu.memref_slice %arg1[%c0_i32_72, %c0_i32_73, %c0_i32_74] : memref<1x4x256xf32, #tpu.memory_space<vmem>> -> memref<1x4x256xf32, #tpu.memory_space<vmem>>
    %99 = tpu.memref_squeeze %98 : memref<1x4x256xf32, #tpu.memory_space<vmem>> -> memref<4x256xf32, #tpu.memory_space<vmem>>
    %c0_75 = arith.constant 0 : index
    %c208 = arith.constant 208 : index
    %100 = vector.load %99[%c0_75, %c208] : memref<4x256xf32, #tpu.memory_space<vmem>>, vector<4x16xf32>
    %101 = vector.extract_strided_slice %100 {offsets = [0, 1], sizes = [4, 1], strides = [1, 1]} : vector<4x16xf32> to vector<4x1xf32>
    %102 = vector.extract_strided_slice %100 {offsets = [0, 14], sizes = [4, 1], strides = [1, 1]} : vector<4x16xf32> to vector<4x1xf32>
    %103 = tpu.concatenate %101, %100, %102 in 1 : vector<4x1xf32>, vector<4x16xf32>, vector<4x1xf32> -> vector<4x18xf32>
    %c0_76 = arith.constant 0 : index
    %c252 = arith.constant 252 : index
    %104 = vector.load %arg5[%c0_76, %c252] : memref<4x422xf32, #tpu.memory_space<vmem>>, vector<4x18xf32>
    tpu.vector_store %arg5[%c0_76, %c252], %103 {strides = array<i32>} : memref<4x422xf32, #tpu.memory_space<vmem>>, vector<4x18xf32>,
    %c0_i32_77 = arith.constant 0 : i32
    %c0_i32_78 = arith.constant 0 : i32
    %c0_i32_79 = arith.constant 0 : i32
    %105 = tpu.memref_slice %arg1[%c0_i32_77, %c0_i32_78, %c0_i32_79] : memref<1x4x256xf32, #tpu.memory_space<vmem>> -> memref<1x4x256xf32, #tpu.memory_space<vmem>>
    %106 = tpu.memref_squeeze %105 : memref<1x4x256xf32, #tpu.memory_space<vmem>> -> memref<4x256xf32, #tpu.memory_space<vmem>>
    %c0_80 = arith.constant 0 : index
    %c224 = arith.constant 224 : index
    %107 = vector.load %106[%c0_80, %c224] : memref<4x256xf32, #tpu.memory_space<vmem>>, vector<4x16xf32>
    %108 = vector.extract_strided_slice %107 {offsets = [0, 1], sizes = [4, 1], strides = [1, 1]} : vector<4x16xf32> to vector<4x1xf32>
    %109 = vector.extract_strided_slice %107 {offsets = [0, 14], sizes = [4, 1], strides = [1, 1]} : vector<4x16xf32> to vector<4x1xf32>
    %110 = tpu.concatenate %108, %107, %109 in 1 : vector<4x1xf32>, vector<4x16xf32>, vector<4x1xf32> -> vector<4x18xf32>
    %c0_81 = arith.constant 0 : index
    %c270 = arith.constant 270 : index
    %111 = vector.load %arg5[%c0_81, %c270] : memref<4x422xf32, #tpu.memory_space<vmem>>, vector<4x18xf32>
    tpu.vector_store %arg5[%c0_81, %c270], %110 {strides = array<i32>} : memref<4x422xf32, #tpu.memory_space<vmem>>, vector<4x18xf32>,
    %c0_i32_82 = arith.constant 0 : i32
    %c0_i32_83 = arith.constant 0 : i32
    %c0_i32_84 = arith.constant 0 : i32
    %112 = tpu.memref_slice %arg1[%c0_i32_82, %c0_i32_83, %c0_i32_84] : memref<1x4x256xf32, #tpu.memory_space<vmem>> -> memref<1x4x256xf32, #tpu.memory_space<vmem>>
    %113 = tpu.memref_squeeze %112 : memref<1x4x256xf32, #tpu.memory_space<vmem>> -> memref<4x256xf32, #tpu.memory_space<vmem>>
    %c0_85 = arith.constant 0 : index
    %c240 = arith.constant 240 : index
    %114 = vector.load %113[%c0_85, %c240] : memref<4x256xf32, #tpu.memory_space<vmem>>, vector<4x16xf32>
    %115 = vector.extract_strided_slice %114 {offsets = [0, 1], sizes = [4, 1], strides = [1, 1]} : vector<4x16xf32> to vector<4x1xf32>
    %116 = vector.extract_strided_slice %114 {offsets = [0, 14], sizes = [4, 1], strides = [1, 1]} : vector<4x16xf32> to vector<4x1xf32>
    %117 = tpu.concatenate %115, %114, %116 in 1 : vector<4x1xf32>, vector<4x16xf32>, vector<4x1xf32> -> vector<4x18xf32>
    %c0_86 = arith.constant 0 : index
    %c288 = arith.constant 288 : index
    %118 = vector.load %arg5[%c0_86, %c288] : memref<4x422xf32, #tpu.memory_space<vmem>>, vector<4x18xf32>
    tpu.vector_store %arg5[%c0_86, %c288], %117 {strides = array<i32>} : memref<4x422xf32, #tpu.memory_space<vmem>>, vector<4x18xf32>,
    %c0_i32_87 = arith.constant 0 : i32
    %c0_i32_88 = arith.constant 0 : i32
    %c0_i32_89 = arith.constant 0 : i32
    %119 = tpu.memref_slice %arg1[%c0_i32_87, %c0_i32_88, %c0_i32_89] : memref<1x4x256xf32, #tpu.memory_space<vmem>> -> memref<1x4x256xf32, #tpu.memory_space<vmem>>
    %120 = tpu.memref_squeeze %119 : memref<1x4x256xf32, #tpu.memory_space<vmem>> -> memref<4x256xf32, #tpu.memory_space<vmem>>
    %c0_90 = arith.constant 0 : index
    %c224_91 = arith.constant 224 : index
    %121 = vector.load %120[%c0_90, %c224_91] : memref<4x256xf32, #tpu.memory_space<vmem>>, vector<4x16xf32>
    %122 = vector.extract_strided_slice %121 {offsets = [0, 1], sizes = [4, 1], strides = [1, 1]} : vector<4x16xf32> to vector<4x1xf32>
    %123 = vector.extract_strided_slice %121 {offsets = [0, 14], sizes = [4, 1], strides = [1, 1]} : vector<4x16xf32> to vector<4x1xf32>
    %124 = tpu.concatenate %122, %121, %123 in 1 : vector<4x1xf32>, vector<4x16xf32>, vector<4x1xf32> -> vector<4x18xf32>
    %c0_92 = arith.constant 0 : index
    %c306 = arith.constant 306 : index
    %125 = vector.load %arg5[%c0_92, %c306] : memref<4x422xf32, #tpu.memory_space<vmem>>, vector<4x18xf32>
    tpu.vector_store %arg5[%c0_92, %c306], %124 {strides = array<i32>} : memref<4x422xf32, #tpu.memory_space<vmem>>, vector<4x18xf32>,
    %cst = arith.constant 0.000000e+00 : f32
    %126 = vector.broadcast %cst : f32 to vector<4x98xf32>
    %c0_93 = arith.constant 0 : index
    %c324 = arith.constant 324 : index
    %127 = vector.load %arg5[%c0_93, %c324] : memref<4x422xf32, #tpu.memory_space<vmem>>, vector<4x98xf32>
    tpu.vector_store %arg5[%c0_93, %c324], %126 {strides = array<i32>} : memref<4x422xf32, #tpu.memory_space<vmem>>, vector<4x98xf32>,
    %cst_94 = arith.constant 0.000000e+00 : f32
    %128 = vector.broadcast %cst_94 : f32 to vector<4x1xf32>
    %cst_95 = arith.constant 0.000000e+00 : f32
    %129 = vector.broadcast %cst_95 : f32 to vector<4x1xf32>
    %cst_96 = arith.constant 0.000000e+00 : f32
    %130 = vector.broadcast %cst_96 : f32 to vector<4x128xf32>
    %c0_97 = arith.constant 0 : index
    %c0_98 = arith.constant 0 : index
    %c0_99 = arith.constant 0 : index
    %131 = vector.load %arg2[%c0_97, %c0_98, %c0_99] : memref<9x4x4xf32, #tpu.memory_space<vmem>>, vector<1x4x4xf32>
    %132 = vector.shape_cast %131 : vector<1x4x4xf32> to vector<4x4xf32>
    %c0_100 = arith.constant 0 : index
    %c0_101 = arith.constant 0 : index
    %133 = vector.load %arg5[%c0_100, %c0_101] : memref<4x422xf32, #tpu.memory_space<vmem>>, vector<4x128xf32>
    %cst_102 = arith.constant dense<0.000000e+00> : vector<4x128xf32>
    %134 = tpu.matmul %132, %133, %cst_102 {dimension_numbers = #tpu.dot_dimension_numbers<[1], [0], [0], [1], [0, 0, 1, 1], [], []>} : vector<4x4xf32>, vector<4x128xf32>, vector<4x128xf32> -> vector<4x128xf32>
    %135 = arith.addf %130, %134 : vector<4x128xf32>
    %c1 = arith.constant 1 : index
    %c0_103 = arith.constant 0 : index
    %c0_104 = arith.constant 0 : index
    %136 = vector.load %arg2[%c1, %c0_103, %c0_104] : memref<9x4x4xf32, #tpu.memory_space<vmem>>, vector<1x4x4xf32>
    %137 = vector.shape_cast %136 : vector<1x4x4xf32> to vector<4x4xf32>
    %c0_105 = arith.constant 0 : index
    %c1_106 = arith.constant 1 : index
    %138 = vector.load %arg5[%c0_105, %c1_106] : memref<4x422xf32, #tpu.memory_space<vmem>>, vector<4x128xf32>
    %cst_107 = arith.constant dense<0.000000e+00> : vector<4x128xf32>
    %139 = tpu.matmul %137, %138, %cst_107 {dimension_numbers = #tpu.dot_dimension_numbers<[1], [0], [0], [1], [0, 0, 1, 1], [], []>} : vector<4x4xf32>, vector<4x128xf32>, vector<4x128xf32> -> vector<4x128xf32>
    %140 = arith.addf %135, %139 : vector<4x128xf32>
    %c2 = arith.constant 2 : index
    %c0_108 = arith.constant 0 : index
    %c0_109 = arith.constant 0 : index
    %141 = vector.load %arg2[%c2, %c0_108, %c0_109] : memref<9x4x4xf32, #tpu.memory_space<vmem>>, vector<1x4x4xf32>
    %142 = vector.shape_cast %141 : vector<1x4x4xf32> to vector<4x4xf32>
    %c0_110 = arith.constant 0 : index
    %c2_111 = arith.constant 2 : index
    %143 = vector.load %arg5[%c0_110, %c2_111] : memref<4x422xf32, #tpu.memory_space<vmem>>, vector<4x128xf32>
    %cst_112 = arith.constant dense<0.000000e+00> : vector<4x128xf32>
    %144 = tpu.matmul %142, %143, %cst_112 {dimension_numbers = #tpu.dot_dimension_numbers<[1], [0], [0], [1], [0, 0, 1, 1], [], []>} : vector<4x4xf32>, vector<4x128xf32>, vector<4x128xf32> -> vector<4x128xf32>
    %145 = arith.addf %140, %144 : vector<4x128xf32>
    %c3 = arith.constant 3 : index
    %c0_113 = arith.constant 0 : index
    %c0_114 = arith.constant 0 : index
    %146 = vector.load %arg2[%c3, %c0_113, %c0_114] : memref<9x4x4xf32, #tpu.memory_space<vmem>>, vector<1x4x4xf32>
    %147 = vector.shape_cast %146 : vector<1x4x4xf32> to vector<4x4xf32>
    %c0_115 = arith.constant 0 : index
    %c18_116 = arith.constant 18 : index
    %148 = vector.load %arg5[%c0_115, %c18_116] : memref<4x422xf32, #tpu.memory_space<vmem>>, vector<4x128xf32>
    %cst_117 = arith.constant dense<0.000000e+00> : vector<4x128xf32>
    %149 = tpu.matmul %147, %148, %cst_117 {dimension_numbers = #tpu.dot_dimension_numbers<[1], [0], [0], [1], [0, 0, 1, 1], [], []>} : vector<4x4xf32>, vector<4x128xf32>, vector<4x128xf32> -> vector<4x128xf32>
    %150 = arith.addf %145, %149 : vector<4x128xf32>
    %c4 = arith.constant 4 : index
    %c0_118 = arith.constant 0 : index
    %c0_119 = arith.constant 0 : index
    %151 = vector.load %arg2[%c4, %c0_118, %c0_119] : memref<9x4x4xf32, #tpu.memory_space<vmem>>, vector<1x4x4xf32>
    %152 = vector.shape_cast %151 : vector<1x4x4xf32> to vector<4x4xf32>
    %c0_120 = arith.constant 0 : index
    %c19 = arith.constant 19 : index
    %153 = vector.load %arg5[%c0_120, %c19] : memref<4x422xf32, #tpu.memory_space<vmem>>, vector<4x128xf32>
    %cst_121 = arith.constant dense<0.000000e+00> : vector<4x128xf32>
    %154 = tpu.matmul %152, %153, %cst_121 {dimension_numbers = #tpu.dot_dimension_numbers<[1], [0], [0], [1], [0, 0, 1, 1], [], []>} : vector<4x4xf32>, vector<4x128xf32>, vector<4x128xf32> -> vector<4x128xf32>
    %155 = arith.addf %150, %154 : vector<4x128xf32>
    %c5 = arith.constant 5 : index
    %c0_122 = arith.constant 0 : index
    %c0_123 = arith.constant 0 : index
    %156 = vector.load %arg2[%c5, %c0_122, %c0_123] : memref<9x4x4xf32, #tpu.memory_space<vmem>>, vector<1x4x4xf32>
    %157 = vector.shape_cast %156 : vector<1x4x4xf32> to vector<4x4xf32>
    %c0_124 = arith.constant 0 : index
    %c20 = arith.constant 20 : index
    %158 = vector.load %arg5[%c0_124, %c20] : memref<4x422xf32, #tpu.memory_space<vmem>>, vector<4x128xf32>
    %cst_125 = arith.constant dense<0.000000e+00> : vector<4x128xf32>
    %159 = tpu.matmul %157, %158, %cst_125 {dimension_numbers = #tpu.dot_dimension_numbers<[1], [0], [0], [1], [0, 0, 1, 1], [], []>} : vector<4x4xf32>, vector<4x128xf32>, vector<4x128xf32> -> vector<4x128xf32>
    %160 = arith.addf %155, %159 : vector<4x128xf32>
    %c6 = arith.constant 6 : index
    %c0_126 = arith.constant 0 : index
    %c0_127 = arith.constant 0 : index
    %161 = vector.load %arg2[%c6, %c0_126, %c0_127] : memref<9x4x4xf32, #tpu.memory_space<vmem>>, vector<1x4x4xf32>
    %162 = vector.shape_cast %161 : vector<1x4x4xf32> to vector<4x4xf32>
    %c0_128 = arith.constant 0 : index
    %c36_129 = arith.constant 36 : index
    %163 = vector.load %arg5[%c0_128, %c36_129] : memref<4x422xf32, #tpu.memory_space<vmem>>, vector<4x128xf32>
    %cst_130 = arith.constant dense<0.000000e+00> : vector<4x128xf32>
    %164 = tpu.matmul %162, %163, %cst_130 {dimension_numbers = #tpu.dot_dimension_numbers<[1], [0], [0], [1], [0, 0, 1, 1], [], []>} : vector<4x4xf32>, vector<4x128xf32>, vector<4x128xf32> -> vector<4x128xf32>
    %165 = arith.addf %160, %164 : vector<4x128xf32>
    %c7 = arith.constant 7 : index
    %c0_131 = arith.constant 0 : index
    %c0_132 = arith.constant 0 : index
    %166 = vector.load %arg2[%c7, %c0_131, %c0_132] : memref<9x4x4xf32, #tpu.memory_space<vmem>>, vector<1x4x4xf32>
    %167 = vector.shape_cast %166 : vector<1x4x4xf32> to vector<4x4xf32>
    %c0_133 = arith.constant 0 : index
    %c37 = arith.constant 37 : index
    %168 = vector.load %arg5[%c0_133, %c37] : memref<4x422xf32, #tpu.memory_space<vmem>>, vector<4x128xf32>
    %cst_134 = arith.constant dense<0.000000e+00> : vector<4x128xf32>
    %169 = tpu.matmul %167, %168, %cst_134 {dimension_numbers = #tpu.dot_dimension_numbers<[1], [0], [0], [1], [0, 0, 1, 1], [], []>} : vector<4x4xf32>, vector<4x128xf32>, vector<4x128xf32> -> vector<4x128xf32>
    %170 = arith.addf %165, %169 : vector<4x128xf32>
    %c8 = arith.constant 8 : index
    %c0_135 = arith.constant 0 : index
    %c0_136 = arith.constant 0 : index
    %171 = vector.load %arg2[%c8, %c0_135, %c0_136] : memref<9x4x4xf32, #tpu.memory_space<vmem>>, vector<1x4x4xf32>
    %172 = vector.shape_cast %171 : vector<1x4x4xf32> to vector<4x4xf32>
    %c0_137 = arith.constant 0 : index
    %c38 = arith.constant 38 : index
    %173 = vector.load %arg5[%c0_137, %c38] : memref<4x422xf32, #tpu.memory_space<vmem>>, vector<4x128xf32>
    %cst_138 = arith.constant dense<0.000000e+00> : vector<4x128xf32>
    %174 = tpu.matmul %172, %173, %cst_138 {dimension_numbers = #tpu.dot_dimension_numbers<[1], [0], [0], [1], [0, 0, 1, 1], [], []>} : vector<4x4xf32>, vector<4x128xf32>, vector<4x128xf32> -> vector<4x128xf32>
    %175 = arith.addf %170, %174 : vector<4x128xf32>
    %c0_139 = arith.constant 0 : index
    %c0_140 = arith.constant 0 : index
    %176 = vector.load %arg7[%c0_139, %c0_140] : memref<4x384xf32, #tpu.memory_space<vmem>>, vector<4x128xf32>
    tpu.vector_store %arg7[%c0_139, %c0_140], %175 {strides = array<i32>} : memref<4x384xf32, #tpu.memory_space<vmem>>, vector<4x128xf32>,
    %177 = tpu.iota {dimensions = array<i32: 1>} : vector<1x128xi32>
    %c0_i32_141 = arith.constant 0 : i32
    %178 = vector.broadcast %c0_i32_141 : i32 to vector<1x128xi32>
    %179 = arith.addi %177, %178 : vector<1x128xi32>
    %c0_i32_142 = arith.constant 0 : i32
    %180 = vector.broadcast %c0_i32_142 : i32 to vector<1x128xi32>
    %181 = arith.cmpi sge, %179, %180 : vector<1x128xi32>
    %c16_i32 = arith.constant 16 : i32
    %182 = vector.broadcast %c16_i32 : i32 to vector<1x128xi32>
    %183 = arith.cmpi slt, %179, %182 : vector<1x128xi32>
    %184 = arith.andi %181, %183 : vector<1x128xi1>
    %c18_i32 = arith.constant 18 : i32
    %185 = vector.broadcast %c18_i32 : i32 to vector<1x128xi32>
    %186 = arith.cmpi sge, %179, %185 : vector<1x128xi32>
    %c34_i32 = arith.constant 34 : i32
    %187 = vector.broadcast %c34_i32 : i32 to vector<1x128xi32>
    %188 = arith.cmpi slt, %179, %187 : vector<1x128xi32>
    %189 = arith.andi %186, %188 : vector<1x128xi1>
    %c36_i32 = arith.constant 36 : i32
    %190 = vector.broadcast %c36_i32 : i32 to vector<1x128xi32>
    %191 = arith.cmpi sge, %179, %190 : vector<1x128xi32>
    %c52_i32 = arith.constant 52 : i32
    %192 = vector.broadcast %c52_i32 : i32 to vector<1x128xi32>
    %193 = arith.cmpi slt, %179, %192 : vector<1x128xi32>
    %194 = arith.andi %191, %193 : vector<1x128xi1>
    %c54_i32 = arith.constant 54 : i32
    %195 = vector.broadcast %c54_i32 : i32 to vector<1x128xi32>
    %196 = arith.cmpi sge, %179, %195 : vector<1x128xi32>
    %c70_i32 = arith.constant 70 : i32
    %197 = vector.broadcast %c70_i32 : i32 to vector<1x128xi32>
    %198 = arith.cmpi slt, %179, %197 : vector<1x128xi32>
    %199 = arith.andi %196, %198 : vector<1x128xi1>
    %c72_i32 = arith.constant 72 : i32
    %200 = vector.broadcast %c72_i32 : i32 to vector<1x128xi32>
    %201 = arith.cmpi sge, %179, %200 : vector<1x128xi32>
    %c88_i32 = arith.constant 88 : i32
    %202 = vector.broadcast %c88_i32 : i32 to vector<1x128xi32>
    %203 = arith.cmpi slt, %179, %202 : vector<1x128xi32>
    %204 = arith.andi %201, %203 : vector<1x128xi1>
    %c90_i32 = arith.constant 90 : i32
    %205 = vector.broadcast %c90_i32 : i32 to vector<1x128xi32>
    %206 = arith.cmpi sge, %179, %205 : vector<1x128xi32>
    %c106_i32 = arith.constant 106 : i32
    %207 = vector.broadcast %c106_i32 : i32 to vector<1x128xi32>
    %208 = arith.cmpi slt, %179, %207 : vector<1x128xi32>
    %209 = arith.andi %206, %208 : vector<1x128xi1>
    %c108_i32 = arith.constant 108 : i32
    %210 = vector.broadcast %c108_i32 : i32 to vector<1x128xi32>
    %211 = arith.cmpi sge, %179, %210 : vector<1x128xi32>
    %c124_i32 = arith.constant 124 : i32
    %212 = vector.broadcast %c124_i32 : i32 to vector<1x128xi32>
    %213 = arith.cmpi slt, %179, %212 : vector<1x128xi32>
    %214 = arith.andi %211, %213 : vector<1x128xi1>
    %c126_i32 = arith.constant 126 : i32
    %215 = vector.broadcast %c126_i32 : i32 to vector<1x128xi32>
    %216 = arith.cmpi sge, %179, %215 : vector<1x128xi32>
    %c142_i32 = arith.constant 142 : i32
    %217 = vector.broadcast %c142_i32 : i32 to vector<1x128xi32>
    %218 = arith.cmpi slt, %179, %217 : vector<1x128xi32>
    %219 = arith.andi %216, %218 : vector<1x128xi1>
    %220 = arith.ori %184, %189 : vector<1x128xi1>
    %221 = arith.ori %220, %194 : vector<1x128xi1>
    %222 = arith.ori %221, %199 : vector<1x128xi1>
    %223 = arith.ori %222, %204 : vector<1x128xi1>
    %224 = arith.ori %223, %209 : vector<1x128xi1>
    %225 = arith.ori %224, %214 : vector<1x128xi1>
    %226 = arith.ori %225, %219 : vector<1x128xi1>
    %cst_143 = arith.constant 0.000000e+00 : f32
    %227 = vector.shape_cast %226 : vector<1x128xi1> to vector<1x128xi1>
    %228 = vector.broadcast %227 : vector<1x128xi1> to vector<4x128xi1>
    %229 = vector.broadcast %cst_143 : f32 to vector<4x128xf32>
    %230 = arith.select %228, %175, %229 : vector<4x128xi1>, vector<4x128xf32>
    %cst_144 = arith.constant dense<0.000000e+00> : vector<4xf32>
    %231 = vector.multi_reduction <add>, %230, %cst_144 [1] : vector<4x128xf32> to vector<4xf32>
    %232 = vector.shape_cast %231 : vector<4xf32> to vector<4x1xf32>
    %233 = arith.addf %128, %232 : vector<4x1xf32>
    %234 = arith.mulf %230, %230 : vector<4x128xf32>
    %cst_145 = arith.constant dense<0.000000e+00> : vector<4xf32>
    %235 = vector.multi_reduction <add>, %234, %cst_145 [1] : vector<4x128xf32> to vector<4xf32>
    %236 = vector.shape_cast %235 : vector<4xf32> to vector<4x1xf32>
    %237 = arith.addf %129, %236 : vector<4x1xf32>
    %cst_146 = arith.constant 0.000000e+00 : f32
    %238 = vector.broadcast %cst_146 : f32 to vector<4x128xf32>
    %c0_147 = arith.constant 0 : index
    %c0_148 = arith.constant 0 : index
    %c0_149 = arith.constant 0 : index
    %239 = vector.load %arg2[%c0_147, %c0_148, %c0_149] : memref<9x4x4xf32, #tpu.memory_space<vmem>>, vector<1x4x4xf32>
    %240 = vector.shape_cast %239 : vector<1x4x4xf32> to vector<4x4xf32>
    %c0_150 = arith.constant 0 : index
    %c128_151 = arith.constant 128 : index
    %241 = vector.load %arg5[%c0_150, %c128_151] : memref<4x422xf32, #tpu.memory_space<vmem>>, vector<4x128xf32>
    %cst_152 = arith.constant dense<0.000000e+00> : vector<4x128xf32>
    %242 = tpu.matmul %240, %241, %cst_152 {dimension_numbers = #tpu.dot_dimension_numbers<[1], [0], [0], [1], [0, 0, 1, 1], [], []>} : vector<4x4xf32>, vector<4x128xf32>, vector<4x128xf32> -> vector<4x128xf32>
    %243 = arith.addf %238, %242 : vector<4x128xf32>
    %c1_153 = arith.constant 1 : index
    %c0_154 = arith.constant 0 : index
    %c0_155 = arith.constant 0 : index
    %244 = vector.load %arg2[%c1_153, %c0_154, %c0_155] : memref<9x4x4xf32, #tpu.memory_space<vmem>>, vector<1x4x4xf32>
    %245 = vector.shape_cast %244 : vector<1x4x4xf32> to vector<4x4xf32>
    %c0_156 = arith.constant 0 : index
    %c129 = arith.constant 129 : index
    %246 = vector.load %arg5[%c0_156, %c129] : memref<4x422xf32, #tpu.memory_space<vmem>>, vector<4x128xf32>
    %cst_157 = arith.constant dense<0.000000e+00> : vector<4x128xf32>
    %247 = tpu.matmul %245, %246, %cst_157 {dimension_numbers = #tpu.dot_dimension_numbers<[1], [0], [0], [1], [0, 0, 1, 1], [], []>} : vector<4x4xf32>, vector<4x128xf32>, vector<4x128xf32> -> vector<4x128xf32>
    %248 = arith.addf %243, %247 : vector<4x128xf32>
    %c2_158 = arith.constant 2 : index
    %c0_159 = arith.constant 0 : index
    %c0_160 = arith.constant 0 : index
    %249 = vector.load %arg2[%c2_158, %c0_159, %c0_160] : memref<9x4x4xf32, #tpu.memory_space<vmem>>, vector<1x4x4xf32>
    %250 = vector.shape_cast %249 : vector<1x4x4xf32> to vector<4x4xf32>
    %c0_161 = arith.constant 0 : index
    %c130 = arith.constant 130 : index
    %251 = vector.load %arg5[%c0_161, %c130] : memref<4x422xf32, #tpu.memory_space<vmem>>, vector<4x128xf32>
    %cst_162 = arith.constant dense<0.000000e+00> : vector<4x128xf32>
    %252 = tpu.matmul %250, %251, %cst_162 {dimension_numbers = #tpu.dot_dimension_numbers<[1], [0], [0], [1], [0, 0, 1, 1], [], []>} : vector<4x4xf32>, vector<4x128xf32>, vector<4x128xf32> -> vector<4x128xf32>
    %253 = arith.addf %248, %252 : vector<4x128xf32>
    %c3_163 = arith.constant 3 : index
    %c0_164 = arith.constant 0 : index
    %c0_165 = arith.constant 0 : index
    %254 = vector.load %arg2[%c3_163, %c0_164, %c0_165] : memref<9x4x4xf32, #tpu.memory_space<vmem>>, vector<1x4x4xf32>
    %255 = vector.shape_cast %254 : vector<1x4x4xf32> to vector<4x4xf32>
    %c0_166 = arith.constant 0 : index
    %c146 = arith.constant 146 : index
    %256 = vector.load %arg5[%c0_166, %c146] : memref<4x422xf32, #tpu.memory_space<vmem>>, vector<4x128xf32>
    %cst_167 = arith.constant dense<0.000000e+00> : vector<4x128xf32>
    %257 = tpu.matmul %255, %256, %cst_167 {dimension_numbers = #tpu.dot_dimension_numbers<[1], [0], [0], [1], [0, 0, 1, 1], [], []>} : vector<4x4xf32>, vector<4x128xf32>, vector<4x128xf32> -> vector<4x128xf32>
    %258 = arith.addf %253, %257 : vector<4x128xf32>
    %c4_168 = arith.constant 4 : index
    %c0_169 = arith.constant 0 : index
    %c0_170 = arith.constant 0 : index
    %259 = vector.load %arg2[%c4_168, %c0_169, %c0_170] : memref<9x4x4xf32, #tpu.memory_space<vmem>>, vector<1x4x4xf32>
    %260 = vector.shape_cast %259 : vector<1x4x4xf32> to vector<4x4xf32>
    %c0_171 = arith.constant 0 : index
    %c147 = arith.constant 147 : index
    %261 = vector.load %arg5[%c0_171, %c147] : memref<4x422xf32, #tpu.memory_space<vmem>>, vector<4x128xf32>
    %cst_172 = arith.constant dense<0.000000e+00> : vector<4x128xf32>
    %262 = tpu.matmul %260, %261, %cst_172 {dimension_numbers = #tpu.dot_dimension_numbers<[1], [0], [0], [1], [0, 0, 1, 1], [], []>} : vector<4x4xf32>, vector<4x128xf32>, vector<4x128xf32> -> vector<4x128xf32>
    %263 = arith.addf %258, %262 : vector<4x128xf32>
    %c5_173 = arith.constant 5 : index
    %c0_174 = arith.constant 0 : index
    %c0_175 = arith.constant 0 : index
    %264 = vector.load %arg2[%c5_173, %c0_174, %c0_175] : memref<9x4x4xf32, #tpu.memory_space<vmem>>, vector<1x4x4xf32>
    %265 = vector.shape_cast %264 : vector<1x4x4xf32> to vector<4x4xf32>
    %c0_176 = arith.constant 0 : index
    %c148 = arith.constant 148 : index
    %266 = vector.load %arg5[%c0_176, %c148] : memref<4x422xf32, #tpu.memory_space<vmem>>, vector<4x128xf32>
    %cst_177 = arith.constant dense<0.000000e+00> : vector<4x128xf32>
    %267 = tpu.matmul %265, %266, %cst_177 {dimension_numbers = #tpu.dot_dimension_numbers<[1], [0], [0], [1], [0, 0, 1, 1], [], []>} : vector<4x4xf32>, vector<4x128xf32>, vector<4x128xf32> -> vector<4x128xf32>
    %268 = arith.addf %263, %267 : vector<4x128xf32>
    %c6_178 = arith.constant 6 : index
    %c0_179 = arith.constant 0 : index
    %c0_180 = arith.constant 0 : index
    %269 = vector.load %arg2[%c6_178, %c0_179, %c0_180] : memref<9x4x4xf32, #tpu.memory_space<vmem>>, vector<1x4x4xf32>
    %270 = vector.shape_cast %269 : vector<1x4x4xf32> to vector<4x4xf32>
    %c0_181 = arith.constant 0 : index
    %c164 = arith.constant 164 : index
    %271 = vector.load %arg5[%c0_181, %c164] : memref<4x422xf32, #tpu.memory_space<vmem>>, vector<4x128xf32>
    %cst_182 = arith.constant dense<0.000000e+00> : vector<4x128xf32>
    %272 = tpu.matmul %270, %271, %cst_182 {dimension_numbers = #tpu.dot_dimension_numbers<[1], [0], [0], [1], [0, 0, 1, 1], [], []>} : vector<4x4xf32>, vector<4x128xf32>, vector<4x128xf32> -> vector<4x128xf32>
    %273 = arith.addf %268, %272 : vector<4x128xf32>
    %c7_183 = arith.constant 7 : index
    %c0_184 = arith.constant 0 : index
    %c0_185 = arith.constant 0 : index
    %274 = vector.load %arg2[%c7_183, %c0_184, %c0_185] : memref<9x4x4xf32, #tpu.memory_space<vmem>>, vector<1x4x4xf32>
    %275 = vector.shape_cast %274 : vector<1x4x4xf32> to vector<4x4xf32>
    %c0_186 = arith.constant 0 : index
    %c165 = arith.constant 165 : index
    %276 = vector.load %arg5[%c0_186, %c165] : memref<4x422xf32, #tpu.memory_space<vmem>>, vector<4x128xf32>
    %cst_187 = arith.constant dense<0.000000e+00> : vector<4x128xf32>
    %277 = tpu.matmul %275, %276, %cst_187 {dimension_numbers = #tpu.dot_dimension_numbers<[1], [0], [0], [1], [0, 0, 1, 1], [], []>} : vector<4x4xf32>, vector<4x128xf32>, vector<4x128xf32> -> vector<4x128xf32>
    %278 = arith.addf %273, %277 : vector<4x128xf32>
    %c8_188 = arith.constant 8 : index
    %c0_189 = arith.constant 0 : index
    %c0_190 = arith.constant 0 : index
    %279 = vector.load %arg2[%c8_188, %c0_189, %c0_190] : memref<9x4x4xf32, #tpu.memory_space<vmem>>, vector<1x4x4xf32>
    %280 = vector.shape_cast %279 : vector<1x4x4xf32> to vector<4x4xf32>
    %c0_191 = arith.constant 0 : index
    %c166 = arith.constant 166 : index
    %281 = vector.load %arg5[%c0_191, %c166] : memref<4x422xf32, #tpu.memory_space<vmem>>, vector<4x128xf32>
    %cst_192 = arith.constant dense<0.000000e+00> : vector<4x128xf32>
    %282 = tpu.matmul %280, %281, %cst_192 {dimension_numbers = #tpu.dot_dimension_numbers<[1], [0], [0], [1], [0, 0, 1, 1], [], []>} : vector<4x4xf32>, vector<4x128xf32>, vector<4x128xf32> -> vector<4x128xf32>
    %283 = arith.addf %278, %282 : vector<4x128xf32>
    %c0_193 = arith.constant 0 : index
    %c128_194 = arith.constant 128 : index
    %284 = vector.load %arg7[%c0_193, %c128_194] : memref<4x384xf32, #tpu.memory_space<vmem>>, vector<4x128xf32>
    tpu.vector_store %arg7[%c0_193, %c128_194], %283 {strides = array<i32>} : memref<4x384xf32, #tpu.memory_space<vmem>>, vector<4x128xf32>,
    %285 = tpu.iota {dimensions = array<i32: 1>} : vector<1x128xi32>
    %c128_i32 = arith.constant 128 : i32
    %286 = vector.broadcast %c128_i32 : i32 to vector<1x128xi32>
    %287 = arith.addi %285, %286 : vector<1x128xi32>
    %c126_i32_195 = arith.constant 126 : i32
    %288 = vector.broadcast %c126_i32_195 : i32 to vector<1x128xi32>
    %289 = arith.cmpi sge, %287, %288 : vector<1x128xi32>
    %c142_i32_196 = arith.constant 142 : i32
    %290 = vector.broadcast %c142_i32_196 : i32 to vector<1x128xi32>
    %291 = arith.cmpi slt, %287, %290 : vector<1x128xi32>
    %292 = arith.andi %289, %291 : vector<1x128xi1>
    %c144_i32 = arith.constant 144 : i32
    %293 = vector.broadcast %c144_i32 : i32 to vector<1x128xi32>
    %294 = arith.cmpi sge, %287, %293 : vector<1x128xi32>
    %c160_i32 = arith.constant 160 : i32
    %295 = vector.broadcast %c160_i32 : i32 to vector<1x128xi32>
    %296 = arith.cmpi slt, %287, %295 : vector<1x128xi32>
    %297 = arith.andi %294, %296 : vector<1x128xi1>
    %c162_i32 = arith.constant 162 : i32
    %298 = vector.broadcast %c162_i32 : i32 to vector<1x128xi32>
    %299 = arith.cmpi sge, %287, %298 : vector<1x128xi32>
    %c178_i32 = arith.constant 178 : i32
    %300 = vector.broadcast %c178_i32 : i32 to vector<1x128xi32>
    %301 = arith.cmpi slt, %287, %300 : vector<1x128xi32>
    %302 = arith.andi %299, %301 : vector<1x128xi1>
    %c180_i32 = arith.constant 180 : i32
    %303 = vector.broadcast %c180_i32 : i32 to vector<1x128xi32>
    %304 = arith.cmpi sge, %287, %303 : vector<1x128xi32>
    %c196_i32 = arith.constant 196 : i32
    %305 = vector.broadcast %c196_i32 : i32 to vector<1x128xi32>
    %306 = arith.cmpi slt, %287, %305 : vector<1x128xi32>
    %307 = arith.andi %304, %306 : vector<1x128xi1>
    %c198_i32 = arith.constant 198 : i32
    %308 = vector.broadcast %c198_i32 : i32 to vector<1x128xi32>
    %309 = arith.cmpi sge, %287, %308 : vector<1x128xi32>
    %c214_i32 = arith.constant 214 : i32
    %310 = vector.broadcast %c214_i32 : i32 to vector<1x128xi32>
    %311 = arith.cmpi slt, %287, %310 : vector<1x128xi32>
    %312 = arith.andi %309, %311 : vector<1x128xi1>
    %c216_i32 = arith.constant 216 : i32
    %313 = vector.broadcast %c216_i32 : i32 to vector<1x128xi32>
    %314 = arith.cmpi sge, %287, %313 : vector<1x128xi32>
    %c232_i32 = arith.constant 232 : i32
    %315 = vector.broadcast %c232_i32 : i32 to vector<1x128xi32>
    %316 = arith.cmpi slt, %287, %315 : vector<1x128xi32>
    %317 = arith.andi %314, %316 : vector<1x128xi1>
    %c234_i32 = arith.constant 234 : i32
    %318 = vector.broadcast %c234_i32 : i32 to vector<1x128xi32>
    %319 = arith.cmpi sge, %287, %318 : vector<1x128xi32>
    %c250_i32 = arith.constant 250 : i32
    %320 = vector.broadcast %c250_i32 : i32 to vector<1x128xi32>
    %321 = arith.cmpi slt, %287, %320 : vector<1x128xi32>
    %322 = arith.andi %319, %321 : vector<1x128xi1>
    %c252_i32 = arith.constant 252 : i32
    %323 = vector.broadcast %c252_i32 : i32 to vector<1x128xi32>
    %324 = arith.cmpi sge, %287, %323 : vector<1x128xi32>
    %c268_i32 = arith.constant 268 : i32
    %325 = vector.broadcast %c268_i32 : i32 to vector<1x128xi32>
    %326 = arith.cmpi slt, %287, %325 : vector<1x128xi32>
    %327 = arith.andi %324, %326 : vector<1x128xi1>
    %328 = arith.ori %292, %297 : vector<1x128xi1>
    %329 = arith.ori %328, %302 : vector<1x128xi1>
    %330 = arith.ori %329, %307 : vector<1x128xi1>
    %331 = arith.ori %330, %312 : vector<1x128xi1>
    %332 = arith.ori %331, %317 : vector<1x128xi1>
    %333 = arith.ori %332, %322 : vector<1x128xi1>
    %334 = arith.ori %333, %327 : vector<1x128xi1>
    %cst_197 = arith.constant 0.000000e+00 : f32
    %335 = vector.shape_cast %334 : vector<1x128xi1> to vector<1x128xi1>
    %336 = vector.broadcast %335 : vector<1x128xi1> to vector<4x128xi1>
    %337 = vector.broadcast %cst_197 : f32 to vector<4x128xf32>
    %338 = arith.select %336, %283, %337 : vector<4x128xi1>, vector<4x128xf32>
    %cst_198 = arith.constant dense<0.000000e+00> : vector<4xf32>
    %339 = vector.multi_reduction <add>, %338, %cst_198 [1] : vector<4x128xf32> to vector<4xf32>
    %340 = vector.shape_cast %339 : vector<4xf32> to vector<4x1xf32>
    %341 = arith.addf %233, %340 : vector<4x1xf32>
    %342 = arith.mulf %338, %338 : vector<4x128xf32>
    %cst_199 = arith.constant dense<0.000000e+00> : vector<4xf32>
    %343 = vector.multi_reduction <add>, %342, %cst_199 [1] : vector<4x128xf32> to vector<4xf32>
    %344 = vector.shape_cast %343 : vector<4xf32> to vector<4x1xf32>
    %345 = arith.addf %237, %344 : vector<4x1xf32>
    %cst_200 = arith.constant 0.000000e+00 : f32
    %346 = vector.broadcast %cst_200 : f32 to vector<4x128xf32>
    %c0_201 = arith.constant 0 : index
    %c0_202 = arith.constant 0 : index
    %c0_203 = arith.constant 0 : index
    %347 = vector.load %arg2[%c0_201, %c0_202, %c0_203] : memref<9x4x4xf32, #tpu.memory_space<vmem>>, vector<1x4x4xf32>
    %348 = vector.shape_cast %347 : vector<1x4x4xf32> to vector<4x4xf32>
    %c0_204 = arith.constant 0 : index
    %c256 = arith.constant 256 : index
    %349 = vector.load %arg5[%c0_204, %c256] : memref<4x422xf32, #tpu.memory_space<vmem>>, vector<4x128xf32>
    %cst_205 = arith.constant dense<0.000000e+00> : vector<4x128xf32>
    %350 = tpu.matmul %348, %349, %cst_205 {dimension_numbers = #tpu.dot_dimension_numbers<[1], [0], [0], [1], [0, 0, 1, 1], [], []>} : vector<4x4xf32>, vector<4x128xf32>, vector<4x128xf32> -> vector<4x128xf32>
    %351 = arith.addf %346, %350 : vector<4x128xf32>
    %c1_206 = arith.constant 1 : index
    %c0_207 = arith.constant 0 : index
    %c0_208 = arith.constant 0 : index
    %352 = vector.load %arg2[%c1_206, %c0_207, %c0_208] : memref<9x4x4xf32, #tpu.memory_space<vmem>>, vector<1x4x4xf32>
    %353 = vector.shape_cast %352 : vector<1x4x4xf32> to vector<4x4xf32>
    %c0_209 = arith.constant 0 : index
    %c257 = arith.constant 257 : index
    %354 = vector.load %arg5[%c0_209, %c257] : memref<4x422xf32, #tpu.memory_space<vmem>>, vector<4x128xf32>
    %cst_210 = arith.constant dense<0.000000e+00> : vector<4x128xf32>
    %355 = tpu.matmul %353, %354, %cst_210 {dimension_numbers = #tpu.dot_dimension_numbers<[1], [0], [0], [1], [0, 0, 1, 1], [], []>} : vector<4x4xf32>, vector<4x128xf32>, vector<4x128xf32> -> vector<4x128xf32>
    %356 = arith.addf %351, %355 : vector<4x128xf32>
    %c2_211 = arith.constant 2 : index
    %c0_212 = arith.constant 0 : index
    %c0_213 = arith.constant 0 : index
    %357 = vector.load %arg2[%c2_211, %c0_212, %c0_213] : memref<9x4x4xf32, #tpu.memory_space<vmem>>, vector<1x4x4xf32>
    %358 = vector.shape_cast %357 : vector<1x4x4xf32> to vector<4x4xf32>
    %c0_214 = arith.constant 0 : index
    %c258 = arith.constant 258 : index
    %359 = vector.load %arg5[%c0_214, %c258] : memref<4x422xf32, #tpu.memory_space<vmem>>, vector<4x128xf32>
    %cst_215 = arith.constant dense<0.000000e+00> : vector<4x128xf32>
    %360 = tpu.matmul %358, %359, %cst_215 {dimension_numbers = #tpu.dot_dimension_numbers<[1], [0], [0], [1], [0, 0, 1, 1], [], []>} : vector<4x4xf32>, vector<4x128xf32>, vector<4x128xf32> -> vector<4x128xf32>
    %361 = arith.addf %356, %360 : vector<4x128xf32>
    %c3_216 = arith.constant 3 : index
    %c0_217 = arith.constant 0 : index
    %c0_218 = arith.constant 0 : index
    %362 = vector.load %arg2[%c3_216, %c0_217, %c0_218] : memref<9x4x4xf32, #tpu.memory_space<vmem>>, vector<1x4x4xf32>
    %363 = vector.shape_cast %362 : vector<1x4x4xf32> to vector<4x4xf32>
    %c0_219 = arith.constant 0 : index
    %c274 = arith.constant 274 : index
    %364 = vector.load %arg5[%c0_219, %c274] : memref<4x422xf32, #tpu.memory_space<vmem>>, vector<4x128xf32>
    %cst_220 = arith.constant dense<0.000000e+00> : vector<4x128xf32>
    %365 = tpu.matmul %363, %364, %cst_220 {dimension_numbers = #tpu.dot_dimension_numbers<[1], [0], [0], [1], [0, 0, 1, 1], [], []>} : vector<4x4xf32>, vector<4x128xf32>, vector<4x128xf32> -> vector<4x128xf32>
    %366 = arith.addf %361, %365 : vector<4x128xf32>
    %c4_221 = arith.constant 4 : index
    %c0_222 = arith.constant 0 : index
    %c0_223 = arith.constant 0 : index
    %367 = vector.load %arg2[%c4_221, %c0_222, %c0_223] : memref<9x4x4xf32, #tpu.memory_space<vmem>>, vector<1x4x4xf32>
    %368 = vector.shape_cast %367 : vector<1x4x4xf32> to vector<4x4xf32>
    %c0_224 = arith.constant 0 : index
    %c275 = arith.constant 275 : index
    %369 = vector.load %arg5[%c0_224, %c275] : memref<4x422xf32, #tpu.memory_space<vmem>>, vector<4x128xf32>
    %cst_225 = arith.constant dense<0.000000e+00> : vector<4x128xf32>
    %370 = tpu.matmul %368, %369, %cst_225 {dimension_numbers = #tpu.dot_dimension_numbers<[1], [0], [0], [1], [0, 0, 1, 1], [], []>} : vector<4x4xf32>, vector<4x128xf32>, vector<4x128xf32> -> vector<4x128xf32>
    %371 = arith.addf %366, %370 : vector<4x128xf32>
    %c5_226 = arith.constant 5 : index
    %c0_227 = arith.constant 0 : index
    %c0_228 = arith.constant 0 : index
    %372 = vector.load %arg2[%c5_226, %c0_227, %c0_228] : memref<9x4x4xf32, #tpu.memory_space<vmem>>, vector<1x4x4xf32>
    %373 = vector.shape_cast %372 : vector<1x4x4xf32> to vector<4x4xf32>
    %c0_229 = arith.constant 0 : index
    %c276 = arith.constant 276 : index
    %374 = vector.load %arg5[%c0_229, %c276] : memref<4x422xf32, #tpu.memory_space<vmem>>, vector<4x128xf32>
    %cst_230 = arith.constant dense<0.000000e+00> : vector<4x128xf32>
    %375 = tpu.matmul %373, %374, %cst_230 {dimension_numbers = #tpu.dot_dimension_numbers<[1], [0], [0], [1], [0, 0, 1, 1], [], []>} : vector<4x4xf32>, vector<4x128xf32>, vector<4x128xf32> -> vector<4x128xf32>
    %376 = arith.addf %371, %375 : vector<4x128xf32>
    %c6_231 = arith.constant 6 : index
    %c0_232 = arith.constant 0 : index
    %c0_233 = arith.constant 0 : index
    %377 = vector.load %arg2[%c6_231, %c0_232, %c0_233] : memref<9x4x4xf32, #tpu.memory_space<vmem>>, vector<1x4x4xf32>
    %378 = vector.shape_cast %377 : vector<1x4x4xf32> to vector<4x4xf32>
    %c0_234 = arith.constant 0 : index
    %c292 = arith.constant 292 : index
    %379 = vector.load %arg5[%c0_234, %c292] : memref<4x422xf32, #tpu.memory_space<vmem>>, vector<4x128xf32>
    %cst_235 = arith.constant dense<0.000000e+00> : vector<4x128xf32>
    %380 = tpu.matmul %378, %379, %cst_235 {dimension_numbers = #tpu.dot_dimension_numbers<[1], [0], [0], [1], [0, 0, 1, 1], [], []>} : vector<4x4xf32>, vector<4x128xf32>, vector<4x128xf32> -> vector<4x128xf32>
    %381 = arith.addf %376, %380 : vector<4x128xf32>
    %c7_236 = arith.constant 7 : index
    %c0_237 = arith.constant 0 : index
    %c0_238 = arith.constant 0 : index
    %382 = vector.load %arg2[%c7_236, %c0_237, %c0_238] : memref<9x4x4xf32, #tpu.memory_space<vmem>>, vector<1x4x4xf32>
    %383 = vector.shape_cast %382 : vector<1x4x4xf32> to vector<4x4xf32>
    %c0_239 = arith.constant 0 : index
    %c293 = arith.constant 293 : index
    %384 = vector.load %arg5[%c0_239, %c293] : memref<4x422xf32, #tpu.memory_space<vmem>>, vector<4x128xf32>
    %cst_240 = arith.constant dense<0.000000e+00> : vector<4x128xf32>
    %385 = tpu.matmul %383, %384, %cst_240 {dimension_numbers = #tpu.dot_dimension_numbers<[1], [0], [0], [1], [0, 0, 1, 1], [], []>} : vector<4x4xf32>, vector<4x128xf32>, vector<4x128xf32> -> vector<4x128xf32>
    %386 = arith.addf %381, %385 : vector<4x128xf32>
    %c8_241 = arith.constant 8 : index
    %c0_242 = arith.constant 0 : index
    %c0_243 = arith.constant 0 : index
    %387 = vector.load %arg2[%c8_241, %c0_242, %c0_243] : memref<9x4x4xf32, #tpu.memory_space<vmem>>, vector<1x4x4xf32>
    %388 = vector.shape_cast %387 : vector<1x4x4xf32> to vector<4x4xf32>
    %c0_244 = arith.constant 0 : index
    %c294 = arith.constant 294 : index
    %389 = vector.load %arg5[%c0_244, %c294] : memref<4x422xf32, #tpu.memory_space<vmem>>, vector<4x128xf32>
    %cst_245 = arith.constant dense<0.000000e+00> : vector<4x128xf32>
    %390 = tpu.matmul %388, %389, %cst_245 {dimension_numbers = #tpu.dot_dimension_numbers<[1], [0], [0], [1], [0, 0, 1, 1], [], []>} : vector<4x4xf32>, vector<4x128xf32>, vector<4x128xf32> -> vector<4x128xf32>
    %391 = arith.addf %386, %390 : vector<4x128xf32>
    %c0_246 = arith.constant 0 : index
    %c256_247 = arith.constant 256 : index
    %392 = vector.load %arg7[%c0_246, %c256_247] : memref<4x384xf32, #tpu.memory_space<vmem>>, vector<4x128xf32>
    tpu.vector_store %arg7[%c0_246, %c256_247], %391 {strides = array<i32>} : memref<4x384xf32, #tpu.memory_space<vmem>>, vector<4x128xf32>,
    %393 = tpu.iota {dimensions = array<i32: 1>} : vector<1x128xi32>
    %c256_i32 = arith.constant 256 : i32
    %394 = vector.broadcast %c256_i32 : i32 to vector<1x128xi32>
    %395 = arith.addi %393, %394 : vector<1x128xi32>
    %c252_i32_248 = arith.constant 252 : i32
    %396 = vector.broadcast %c252_i32_248 : i32 to vector<1x128xi32>
    %397 = arith.cmpi sge, %395, %396 : vector<1x128xi32>
    %c268_i32_249 = arith.constant 268 : i32
    %398 = vector.broadcast %c268_i32_249 : i32 to vector<1x128xi32>
    %399 = arith.cmpi slt, %395, %398 : vector<1x128xi32>
    %400 = arith.andi %397, %399 : vector<1x128xi1>
    %c270_i32 = arith.constant 270 : i32
    %401 = vector.broadcast %c270_i32 : i32 to vector<1x128xi32>
    %402 = arith.cmpi sge, %395, %401 : vector<1x128xi32>
    %c286_i32 = arith.constant 286 : i32
    %403 = vector.broadcast %c286_i32 : i32 to vector<1x128xi32>
    %404 = arith.cmpi slt, %395, %403 : vector<1x128xi32>
    %405 = arith.andi %402, %404 : vector<1x128xi1>
    %406 = arith.ori %400, %405 : vector<1x128xi1>
    %cst_250 = arith.constant 0.000000e+00 : f32
    %407 = vector.shape_cast %406 : vector<1x128xi1> to vector<1x128xi1>
    %408 = vector.broadcast %407 : vector<1x128xi1> to vector<4x128xi1>
    %409 = vector.broadcast %cst_250 : f32 to vector<4x128xf32>
    %410 = arith.select %408, %391, %409 : vector<4x128xi1>, vector<4x128xf32>
    %cst_251 = arith.constant dense<0.000000e+00> : vector<4xf32>
    %411 = vector.multi_reduction <add>, %410, %cst_251 [1] : vector<4x128xf32> to vector<4xf32>
    %412 = vector.shape_cast %411 : vector<4xf32> to vector<4x1xf32>
    %413 = arith.addf %341, %412 : vector<4x1xf32>
    %414 = arith.mulf %410, %410 : vector<4x128xf32>
    %cst_252 = arith.constant dense<0.000000e+00> : vector<4xf32>
    %415 = vector.multi_reduction <add>, %414, %cst_252 [1] : vector<4x128xf32> to vector<4xf32>
    %416 = vector.shape_cast %415 : vector<4xf32> to vector<4x1xf32>
    %417 = arith.addf %345, %416 : vector<4x1xf32>
    %cst_253 = arith.constant 3.906250e-03 : f32
    %418 = vector.broadcast %cst_253 : f32 to vector<4x1xf32>
    %419 = arith.mulf %413, %418 : vector<4x1xf32>
    %cst_254 = arith.constant 3.906250e-03 : f32
    %420 = vector.broadcast %cst_254 : f32 to vector<4x1xf32>
    %421 = arith.mulf %417, %420 : vector<4x1xf32>
    %422 = arith.mulf %419, %419 : vector<4x1xf32>
    %423 = arith.subf %421, %422 : vector<4x1xf32>
    %cst_255 = arith.constant 0.000000e+00 : f32
    %424 = vector.broadcast %cst_255 : f32 to vector<4x1xf32>
    %425 = arith.maximumf %423, %424 : vector<4x1xf32>
    %cst_256 = arith.constant 9.99999974E-6 : f32
    %426 = vector.broadcast %cst_256 : f32 to vector<4x1xf32>
    %427 = arith.addf %425, %426 : vector<4x1xf32>
    %428 = math.rsqrt %427 : vector<4x1xf32>
    %c0_257 = arith.constant 0 : index
    %c18_258 = arith.constant 18 : index
    %429 = vector.load %arg7[%c0_257, %c18_258] : memref<4x384xf32, #tpu.memory_space<vmem>>, vector<4x16xf32>
    %430 = vector.broadcast %419 : vector<4x1xf32> to vector<4x16xf32>
    %431 = arith.subf %429, %430 : vector<4x16xf32>
    %432 = vector.broadcast %428 : vector<4x1xf32> to vector<4x16xf32>
    %433 = arith.mulf %431, %432 : vector<4x16xf32>
    %cst_259 = arith.constant 0.000000e+00 : f32
    %434 = vector.broadcast %cst_259 : f32 to vector<4x16xf32>
    %435 = arith.maximumf %433, %434 : vector<4x16xf32>
    %436 = vector.extract_strided_slice %435 {offsets = [0, 1], sizes = [4, 1], strides = [1, 1]} : vector<4x16xf32> to vector<4x1xf32>
    %437 = vector.extract_strided_slice %435 {offsets = [0, 14], sizes = [4, 1], strides = [1, 1]} : vector<4x16xf32> to vector<4x1xf32>
    %438 = tpu.concatenate %436, %435, %437 in 1 : vector<4x1xf32>, vector<4x16xf32>, vector<4x1xf32> -> vector<4x18xf32>
    %c0_260 = arith.constant 0 : index
    %c0_261 = arith.constant 0 : index
    %439 = vector.load %arg6[%c0_260, %c0_261] : memref<4x422xf32, #tpu.memory_space<vmem>>, vector<4x18xf32>
    tpu.vector_store %arg6[%c0_260, %c0_261], %438 {strides = array<i32>} : memref<4x422xf32, #tpu.memory_space<vmem>>, vector<4x18xf32>,
    %c0_262 = arith.constant 0 : index
    %c0_263 = arith.constant 0 : index
    %440 = vector.load %arg7[%c0_262, %c0_263] : memref<4x384xf32, #tpu.memory_space<vmem>>, vector<4x16xf32>
    %441 = vector.broadcast %419 : vector<4x1xf32> to vector<4x16xf32>
    %442 = arith.subf %440, %441 : vector<4x16xf32>
    %443 = vector.broadcast %428 : vector<4x1xf32> to vector<4x16xf32>
    %444 = arith.mulf %442, %443 : vector<4x16xf32>
    %cst_264 = arith.constant 0.000000e+00 : f32
    %445 = vector.broadcast %cst_264 : f32 to vector<4x16xf32>
    %446 = arith.maximumf %444, %445 : vector<4x16xf32>
    %447 = vector.extract_strided_slice %446 {offsets = [0, 1], sizes = [4, 1], strides = [1, 1]} : vector<4x16xf32> to vector<4x1xf32>
    %448 = vector.extract_strided_slice %446 {offsets = [0, 14], sizes = [4, 1], strides = [1, 1]} : vector<4x16xf32> to vector<4x1xf32>
    %449 = tpu.concatenate %447, %446, %448 in 1 : vector<4x1xf32>, vector<4x16xf32>, vector<4x1xf32> -> vector<4x18xf32>
    %c0_265 = arith.constant 0 : index
    %c18_266 = arith.constant 18 : index
    %450 = vector.load %arg6[%c0_265, %c18_266] : memref<4x422xf32, #tpu.memory_space<vmem>>, vector<4x18xf32>
    tpu.vector_store %arg6[%c0_265, %c18_266], %449 {strides = array<i32>} : memref<4x422xf32, #tpu.memory_space<vmem>>, vector<4x18xf32>,
    %c0_267 = arith.constant 0 : index
    %c18_268 = arith.constant 18 : index
    %451 = vector.load %arg7[%c0_267, %c18_268] : memref<4x384xf32, #tpu.memory_space<vmem>>, vector<4x16xf32>
    %452 = vector.broadcast %419 : vector<4x1xf32> to vector<4x16xf32>
    %453 = arith.subf %451, %452 : vector<4x16xf32>
    %454 = vector.broadcast %428 : vector<4x1xf32> to vector<4x16xf32>
    %455 = arith.mulf %453, %454 : vector<4x16xf32>
    %cst_269 = arith.constant 0.000000e+00 : f32
    %456 = vector.broadcast %cst_269 : f32 to vector<4x16xf32>
    %457 = arith.maximumf %455, %456 : vector<4x16xf32>
    %458 = vector.extract_strided_slice %457 {offsets = [0, 1], sizes = [4, 1], strides = [1, 1]} : vector<4x16xf32> to vector<4x1xf32>
    %459 = vector.extract_strided_slice %457 {offsets = [0, 14], sizes = [4, 1], strides = [1, 1]} : vector<4x16xf32> to vector<4x1xf32>
    %460 = tpu.concatenate %458, %457, %459 in 1 : vector<4x1xf32>, vector<4x16xf32>, vector<4x1xf32> -> vector<4x18xf32>
    %c0_270 = arith.constant 0 : index
    %c36_271 = arith.constant 36 : index
    %461 = vector.load %arg6[%c0_270, %c36_271] : memref<4x422xf32, #tpu.memory_space<vmem>>, vector<4x18xf32>
    tpu.vector_store %arg6[%c0_270, %c36_271], %460 {strides = array<i32>} : memref<4x422xf32, #tpu.memory_space<vmem>>, vector<4x18xf32>,
    %c0_272 = arith.constant 0 : index
    %c36_273 = arith.constant 36 : index
    %462 = vector.load %arg7[%c0_272, %c36_273] : memref<4x384xf32, #tpu.memory_space<vmem>>, vector<4x16xf32>
    %463 = vector.broadcast %419 : vector<4x1xf32> to vector<4x16xf32>
    %464 = arith.subf %462, %463 : vector<4x16xf32>
    %465 = vector.broadcast %428 : vector<4x1xf32> to vector<4x16xf32>
    %466 = arith.mulf %464, %465 : vector<4x16xf32>
    %cst_274 = arith.constant 0.000000e+00 : f32
    %467 = vector.broadcast %cst_274 : f32 to vector<4x16xf32>
    %468 = arith.maximumf %466, %467 : vector<4x16xf32>
    %469 = vector.extract_strided_slice %468 {offsets = [0, 1], sizes = [4, 1], strides = [1, 1]} : vector<4x16xf32> to vector<4x1xf32>
    %470 = vector.extract_strided_slice %468 {offsets = [0, 14], sizes = [4, 1], strides = [1, 1]} : vector<4x16xf32> to vector<4x1xf32>
    %471 = tpu.concatenate %469, %468, %470 in 1 : vector<4x1xf32>, vector<4x16xf32>, vector<4x1xf32> -> vector<4x18xf32>
    %c0_275 = arith.constant 0 : index
    %c54_276 = arith.constant 54 : index
    %472 = vector.load %arg6[%c0_275, %c54_276] : memref<4x422xf32, #tpu.memory_space<vmem>>, vector<4x18xf32>
    tpu.vector_store %arg6[%c0_275, %c54_276], %471 {strides = array<i32>} : memref<4x422xf32, #tpu.memory_space<vmem>>, vector<4x18xf32>,
    %c0_277 = arith.constant 0 : index
    %c54_278 = arith.constant 54 : index
    %473 = vector.load %arg7[%c0_277, %c54_278] : memref<4x384xf32, #tpu.memory_space<vmem>>, vector<4x16xf32>
    %474 = vector.broadcast %419 : vector<4x1xf32> to vector<4x16xf32>
    %475 = arith.subf %473, %474 : vector<4x16xf32>
    %476 = vector.broadcast %428 : vector<4x1xf32> to vector<4x16xf32>
    %477 = arith.mulf %475, %476 : vector<4x16xf32>
    %cst_279 = arith.constant 0.000000e+00 : f32
    %478 = vector.broadcast %cst_279 : f32 to vector<4x16xf32>
    %479 = arith.maximumf %477, %478 : vector<4x16xf32>
    %480 = vector.extract_strided_slice %479 {offsets = [0, 1], sizes = [4, 1], strides = [1, 1]} : vector<4x16xf32> to vector<4x1xf32>
    %481 = vector.extract_strided_slice %479 {offsets = [0, 14], sizes = [4, 1], strides = [1, 1]} : vector<4x16xf32> to vector<4x1xf32>
    %482 = tpu.concatenate %480, %479, %481 in 1 : vector<4x1xf32>, vector<4x16xf32>, vector<4x1xf32> -> vector<4x18xf32>
    %c0_280 = arith.constant 0 : index
    %c72_281 = arith.constant 72 : index
    %483 = vector.load %arg6[%c0_280, %c72_281] : memref<4x422xf32, #tpu.memory_space<vmem>>, vector<4x18xf32>
    tpu.vector_store %arg6[%c0_280, %c72_281], %482 {strides = array<i32>} : memref<4x422xf32, #tpu.memory_space<vmem>>, vector<4x18xf32>,
    %c0_282 = arith.constant 0 : index
    %c72_283 = arith.constant 72 : index
    %484 = vector.load %arg7[%c0_282, %c72_283] : memref<4x384xf32, #tpu.memory_space<vmem>>, vector<4x16xf32>
    %485 = vector.broadcast %419 : vector<4x1xf32> to vector<4x16xf32>
    %486 = arith.subf %484, %485 : vector<4x16xf32>
    %487 = vector.broadcast %428 : vector<4x1xf32> to vector<4x16xf32>
    %488 = arith.mulf %486, %487 : vector<4x16xf32>
    %cst_284 = arith.constant 0.000000e+00 : f32
    %489 = vector.broadcast %cst_284 : f32 to vector<4x16xf32>
    %490 = arith.maximumf %488, %489 : vector<4x16xf32>
    %491 = vector.extract_strided_slice %490 {offsets = [0, 1], sizes = [4, 1], strides = [1, 1]} : vector<4x16xf32> to vector<4x1xf32>
    %492 = vector.extract_strided_slice %490 {offsets = [0, 14], sizes = [4, 1], strides = [1, 1]} : vector<4x16xf32> to vector<4x1xf32>
    %493 = tpu.concatenate %491, %490, %492 in 1 : vector<4x1xf32>, vector<4x16xf32>, vector<4x1xf32> -> vector<4x18xf32>
    %c0_285 = arith.constant 0 : index
    %c90_286 = arith.constant 90 : index
    %494 = vector.load %arg6[%c0_285, %c90_286] : memref<4x422xf32, #tpu.memory_space<vmem>>, vector<4x18xf32>
    tpu.vector_store %arg6[%c0_285, %c90_286], %493 {strides = array<i32>} : memref<4x422xf32, #tpu.memory_space<vmem>>, vector<4x18xf32>,
    %c0_287 = arith.constant 0 : index
    %c90_288 = arith.constant 90 : index
    %495 = vector.load %arg7[%c0_287, %c90_288] : memref<4x384xf32, #tpu.memory_space<vmem>>, vector<4x16xf32>
    %496 = vector.broadcast %419 : vector<4x1xf32> to vector<4x16xf32>
    %497 = arith.subf %495, %496 : vector<4x16xf32>
    %498 = vector.broadcast %428 : vector<4x1xf32> to vector<4x16xf32>
    %499 = arith.mulf %497, %498 : vector<4x16xf32>
    %cst_289 = arith.constant 0.000000e+00 : f32
    %500 = vector.broadcast %cst_289 : f32 to vector<4x16xf32>
    %501 = arith.maximumf %499, %500 : vector<4x16xf32>
    %502 = vector.extract_strided_slice %501 {offsets = [0, 1], sizes = [4, 1], strides = [1, 1]} : vector<4x16xf32> to vector<4x1xf32>
    %503 = vector.extract_strided_slice %501 {offsets = [0, 14], sizes = [4, 1], strides = [1, 1]} : vector<4x16xf32> to vector<4x1xf32>
    %504 = tpu.concatenate %502, %501, %503 in 1 : vector<4x1xf32>, vector<4x16xf32>, vector<4x1xf32> -> vector<4x18xf32>
    %c0_290 = arith.constant 0 : index
    %c108_291 = arith.constant 108 : index
    %505 = vector.load %arg6[%c0_290, %c108_291] : memref<4x422xf32, #tpu.memory_space<vmem>>, vector<4x18xf32>
    tpu.vector_store %arg6[%c0_290, %c108_291], %504 {strides = array<i32>} : memref<4x422xf32, #tpu.memory_space<vmem>>, vector<4x18xf32>,
    %c0_292 = arith.constant 0 : index
    %c108_293 = arith.constant 108 : index
    %506 = vector.load %arg7[%c0_292, %c108_293] : memref<4x384xf32, #tpu.memory_space<vmem>>, vector<4x16xf32>
    %507 = vector.broadcast %419 : vector<4x1xf32> to vector<4x16xf32>
    %508 = arith.subf %506, %507 : vector<4x16xf32>
    %509 = vector.broadcast %428 : vector<4x1xf32> to vector<4x16xf32>
    %510 = arith.mulf %508, %509 : vector<4x16xf32>
    %cst_294 = arith.constant 0.000000e+00 : f32
    %511 = vector.broadcast %cst_294 : f32 to vector<4x16xf32>
    %512 = arith.maximumf %510, %511 : vector<4x16xf32>
    %513 = vector.extract_strided_slice %512 {offsets = [0, 1], sizes = [4, 1], strides = [1, 1]} : vector<4x16xf32> to vector<4x1xf32>
    %514 = vector.extract_strided_slice %512 {offsets = [0, 14], sizes = [4, 1], strides = [1, 1]} : vector<4x16xf32> to vector<4x1xf32>
    %515 = tpu.concatenate %513, %512, %514 in 1 : vector<4x1xf32>, vector<4x16xf32>, vector<4x1xf32> -> vector<4x18xf32>
    %c0_295 = arith.constant 0 : index
    %c126_296 = arith.constant 126 : index
    %516 = vector.load %arg6[%c0_295, %c126_296] : memref<4x422xf32, #tpu.memory_space<vmem>>, vector<4x18xf32>
    tpu.vector_store %arg6[%c0_295, %c126_296], %515 {strides = array<i32>} : memref<4x422xf32, #tpu.memory_space<vmem>>, vector<4x18xf32>,
    %c0_297 = arith.constant 0 : index
    %c126_298 = arith.constant 126 : index
    %517 = vector.load %arg7[%c0_297, %c126_298] : memref<4x384xf32, #tpu.memory_space<vmem>>, vector<4x16xf32>
    %518 = vector.broadcast %419 : vector<4x1xf32> to vector<4x16xf32>
    %519 = arith.subf %517, %518 : vector<4x16xf32>
    %520 = vector.broadcast %428 : vector<4x1xf32> to vector<4x16xf32>
    %521 = arith.mulf %519, %520 : vector<4x16xf32>
    %cst_299 = arith.constant 0.000000e+00 : f32
    %522 = vector.broadcast %cst_299 : f32 to vector<4x16xf32>
    %523 = arith.maximumf %521, %522 : vector<4x16xf32>
    %524 = vector.extract_strided_slice %523 {offsets = [0, 1], sizes = [4, 1], strides = [1, 1]} : vector<4x16xf32> to vector<4x1xf32>
    %525 = vector.extract_strided_slice %523 {offsets = [0, 14], sizes = [4, 1], strides = [1, 1]} : vector<4x16xf32> to vector<4x1xf32>
    %526 = tpu.concatenate %524, %523, %525 in 1 : vector<4x1xf32>, vector<4x16xf32>, vector<4x1xf32> -> vector<4x18xf32>
    %c0_300 = arith.constant 0 : index
    %c144_301 = arith.constant 144 : index
    %527 = vector.load %arg6[%c0_300, %c144_301] : memref<4x422xf32, #tpu.memory_space<vmem>>, vector<4x18xf32>
    tpu.vector_store %arg6[%c0_300, %c144_301], %526 {strides = array<i32>} : memref<4x422xf32, #tpu.memory_space<vmem>>, vector<4x18xf32>,
    %c0_302 = arith.constant 0 : index
    %c144_303 = arith.constant 144 : index
    %528 = vector.load %arg7[%c0_302, %c144_303] : memref<4x384xf32, #tpu.memory_space<vmem>>, vector<4x16xf32>
    %529 = vector.broadcast %419 : vector<4x1xf32> to vector<4x16xf32>
    %530 = arith.subf %528, %529 : vector<4x16xf32>
    %531 = vector.broadcast %428 : vector<4x1xf32> to vector<4x16xf32>
    %532 = arith.mulf %530, %531 : vector<4x16xf32>
    %cst_304 = arith.constant 0.000000e+00 : f32
    %533 = vector.broadcast %cst_304 : f32 to vector<4x16xf32>
    %534 = arith.maximumf %532, %533 : vector<4x16xf32>
    %535 = vector.extract_strided_slice %534 {offsets = [0, 1], sizes = [4, 1], strides = [1, 1]} : vector<4x16xf32> to vector<4x1xf32>
    %536 = vector.extract_strided_slice %534 {offsets = [0, 14], sizes = [4, 1], strides = [1, 1]} : vector<4x16xf32> to vector<4x1xf32>
    %537 = tpu.concatenate %535, %534, %536 in 1 : vector<4x1xf32>, vector<4x16xf32>, vector<4x1xf32> -> vector<4x18xf32>
    %c0_305 = arith.constant 0 : index
    %c162_306 = arith.constant 162 : index
    %538 = vector.load %arg6[%c0_305, %c162_306] : memref<4x422xf32, #tpu.memory_space<vmem>>, vector<4x18xf32>
    tpu.vector_store %arg6[%c0_305, %c162_306], %537 {strides = array<i32>} : memref<4x422xf32, #tpu.memory_space<vmem>>, vector<4x18xf32>,
    %c0_307 = arith.constant 0 : index
    %c162_308 = arith.constant 162 : index
    %539 = vector.load %arg7[%c0_307, %c162_308] : memref<4x384xf32, #tpu.memory_space<vmem>>, vector<4x16xf32>
    %540 = vector.broadcast %419 : vector<4x1xf32> to vector<4x16xf32>
    %541 = arith.subf %539, %540 : vector<4x16xf32>
    %542 = vector.broadcast %428 : vector<4x1xf32> to vector<4x16xf32>
    %543 = arith.mulf %541, %542 : vector<4x16xf32>
    %cst_309 = arith.constant 0.000000e+00 : f32
    %544 = vector.broadcast %cst_309 : f32 to vector<4x16xf32>
    %545 = arith.maximumf %543, %544 : vector<4x16xf32>
    %546 = vector.extract_strided_slice %545 {offsets = [0, 1], sizes = [4, 1], strides = [1, 1]} : vector<4x16xf32> to vector<4x1xf32>
    %547 = vector.extract_strided_slice %545 {offsets = [0, 14], sizes = [4, 1], strides = [1, 1]} : vector<4x16xf32> to vector<4x1xf32>
    %548 = tpu.concatenate %546, %545, %547 in 1 : vector<4x1xf32>, vector<4x16xf32>, vector<4x1xf32> -> vector<4x18xf32>
    %c0_310 = arith.constant 0 : index
    %c180_311 = arith.constant 180 : index
    %549 = vector.load %arg6[%c0_310, %c180_311] : memref<4x422xf32, #tpu.memory_space<vmem>>, vector<4x18xf32>
    tpu.vector_store %arg6[%c0_310, %c180_311], %548 {strides = array<i32>} : memref<4x422xf32, #tpu.memory_space<vmem>>, vector<4x18xf32>,
    %c0_312 = arith.constant 0 : index
    %c180_313 = arith.constant 180 : index
    %550 = vector.load %arg7[%c0_312, %c180_313] : memref<4x384xf32, #tpu.memory_space<vmem>>, vector<4x16xf32>
    %551 = vector.broadcast %419 : vector<4x1xf32> to vector<4x16xf32>
    %552 = arith.subf %550, %551 : vector<4x16xf32>
    %553 = vector.broadcast %428 : vector<4x1xf32> to vector<4x16xf32>
    %554 = arith.mulf %552, %553 : vector<4x16xf32>
    %cst_314 = arith.constant 0.000000e+00 : f32
    %555 = vector.broadcast %cst_314 : f32 to vector<4x16xf32>
    %556 = arith.maximumf %554, %555 : vector<4x16xf32>
    %557 = vector.extract_strided_slice %556 {offsets = [0, 1], sizes = [4, 1], strides = [1, 1]} : vector<4x16xf32> to vector<4x1xf32>
    %558 = vector.extract_strided_slice %556 {offsets = [0, 14], sizes = [4, 1], strides = [1, 1]} : vector<4x16xf32> to vector<4x1xf32>
    %559 = tpu.concatenate %557, %556, %558 in 1 : vector<4x1xf32>, vector<4x16xf32>, vector<4x1xf32> -> vector<4x18xf32>
    %c0_315 = arith.constant 0 : index
    %c198_316 = arith.constant 198 : index
    %560 = vector.load %arg6[%c0_315, %c198_316] : memref<4x422xf32, #tpu.memory_space<vmem>>, vector<4x18xf32>
    tpu.vector_store %arg6[%c0_315, %c198_316], %559 {strides = array<i32>} : memref<4x422xf32, #tpu.memory_space<vmem>>, vector<4x18xf32>,
    %c0_317 = arith.constant 0 : index
    %c198_318 = arith.constant 198 : index
    %561 = vector.load %arg7[%c0_317, %c198_318] : memref<4x384xf32, #tpu.memory_space<vmem>>, vector<4x16xf32>
    %562 = vector.broadcast %419 : vector<4x1xf32> to vector<4x16xf32>
    %563 = arith.subf %561, %562 : vector<4x16xf32>
    %564 = vector.broadcast %428 : vector<4x1xf32> to vector<4x16xf32>
    %565 = arith.mulf %563, %564 : vector<4x16xf32>
    %cst_319 = arith.constant 0.000000e+00 : f32
    %566 = vector.broadcast %cst_319 : f32 to vector<4x16xf32>
    %567 = arith.maximumf %565, %566 : vector<4x16xf32>
    %568 = vector.extract_strided_slice %567 {offsets = [0, 1], sizes = [4, 1], strides = [1, 1]} : vector<4x16xf32> to vector<4x1xf32>
    %569 = vector.extract_strided_slice %567 {offsets = [0, 14], sizes = [4, 1], strides = [1, 1]} : vector<4x16xf32> to vector<4x1xf32>
    %570 = tpu.concatenate %568, %567, %569 in 1 : vector<4x1xf32>, vector<4x16xf32>, vector<4x1xf32> -> vector<4x18xf32>
    %c0_320 = arith.constant 0 : index
    %c216_321 = arith.constant 216 : index
    %571 = vector.load %arg6[%c0_320, %c216_321] : memref<4x422xf32, #tpu.memory_space<vmem>>, vector<4x18xf32>
    tpu.vector_store %arg6[%c0_320, %c216_321], %570 {strides = array<i32>} : memref<4x422xf32, #tpu.memory_space<vmem>>, vector<4x18xf32>,
    %c0_322 = arith.constant 0 : index
    %c216_323 = arith.constant 216 : index
    %572 = vector.load %arg7[%c0_322, %c216_323] : memref<4x384xf32, #tpu.memory_space<vmem>>, vector<4x16xf32>
    %573 = vector.broadcast %419 : vector<4x1xf32> to vector<4x16xf32>
    %574 = arith.subf %572, %573 : vector<4x16xf32>
    %575 = vector.broadcast %428 : vector<4x1xf32> to vector<4x16xf32>
    %576 = arith.mulf %574, %575 : vector<4x16xf32>
    %cst_324 = arith.constant 0.000000e+00 : f32
    %577 = vector.broadcast %cst_324 : f32 to vector<4x16xf32>
    %578 = arith.maximumf %576, %577 : vector<4x16xf32>
    %579 = vector.extract_strided_slice %578 {offsets = [0, 1], sizes = [4, 1], strides = [1, 1]} : vector<4x16xf32> to vector<4x1xf32>
    %580 = vector.extract_strided_slice %578 {offsets = [0, 14], sizes = [4, 1], strides = [1, 1]} : vector<4x16xf32> to vector<4x1xf32>
    %581 = tpu.concatenate %579, %578, %580 in 1 : vector<4x1xf32>, vector<4x16xf32>, vector<4x1xf32> -> vector<4x18xf32>
    %c0_325 = arith.constant 0 : index
    %c234_326 = arith.constant 234 : index
    %582 = vector.load %arg6[%c0_325, %c234_326] : memref<4x422xf32, #tpu.memory_space<vmem>>, vector<4x18xf32>
    tpu.vector_store %arg6[%c0_325, %c234_326], %581 {strides = array<i32>} : memref<4x422xf32, #tpu.memory_space<vmem>>, vector<4x18xf32>,
    %c0_327 = arith.constant 0 : index
    %c234_328 = arith.constant 234 : index
    %583 = vector.load %arg7[%c0_327, %c234_328] : memref<4x384xf32, #tpu.memory_space<vmem>>, vector<4x16xf32>
    %584 = vector.broadcast %419 : vector<4x1xf32> to vector<4x16xf32>
    %585 = arith.subf %583, %584 : vector<4x16xf32>
    %586 = vector.broadcast %428 : vector<4x1xf32> to vector<4x16xf32>
    %587 = arith.mulf %585, %586 : vector<4x16xf32>
    %cst_329 = arith.constant 0.000000e+00 : f32
    %588 = vector.broadcast %cst_329 : f32 to vector<4x16xf32>
    %589 = arith.maximumf %587, %588 : vector<4x16xf32>
    %590 = vector.extract_strided_slice %589 {offsets = [0, 1], sizes = [4, 1], strides = [1, 1]} : vector<4x16xf32> to vector<4x1xf32>
    %591 = vector.extract_strided_slice %589 {offsets = [0, 14], sizes = [4, 1], strides = [1, 1]} : vector<4x16xf32> to vector<4x1xf32>
    %592 = tpu.concatenate %590, %589, %591 in 1 : vector<4x1xf32>, vector<4x16xf32>, vector<4x1xf32> -> vector<4x18xf32>
    %c0_330 = arith.constant 0 : index
    %c252_331 = arith.constant 252 : index
    %593 = vector.load %arg6[%c0_330, %c252_331] : memref<4x422xf32, #tpu.memory_space<vmem>>, vector<4x18xf32>
    tpu.vector_store %arg6[%c0_330, %c252_331], %592 {strides = array<i32>} : memref<4x422xf32, #tpu.memory_space<vmem>>, vector<4x18xf32>,
    %c0_332 = arith.constant 0 : index
    %c252_333 = arith.constant 252 : index
    %594 = vector.load %arg7[%c0_332, %c252_333] : memref<4x384xf32, #tpu.memory_space<vmem>>, vector<4x16xf32>
    %595 = vector.broadcast %419 : vector<4x1xf32> to vector<4x16xf32>
    %596 = arith.subf %594, %595 : vector<4x16xf32>
    %597 = vector.broadcast %428 : vector<4x1xf32> to vector<4x16xf32>
    %598 = arith.mulf %596, %597 : vector<4x16xf32>
    %cst_334 = arith.constant 0.000000e+00 : f32
    %599 = vector.broadcast %cst_334 : f32 to vector<4x16xf32>
    %600 = arith.maximumf %598, %599 : vector<4x16xf32>
    %601 = vector.extract_strided_slice %600 {offsets = [0, 1], sizes = [4, 1], strides = [1, 1]} : vector<4x16xf32> to vector<4x1xf32>
    %602 = vector.extract_strided_slice %600 {offsets = [0, 14], sizes = [4, 1], strides = [1, 1]} : vector<4x16xf32> to vector<4x1xf32>
    %603 = tpu.concatenate %601, %600, %602 in 1 : vector<4x1xf32>, vector<4x16xf32>, vector<4x1xf32> -> vector<4x18xf32>
    %c0_335 = arith.constant 0 : index
    %c270_336 = arith.constant 270 : index
    %604 = vector.load %arg6[%c0_335, %c270_336] : memref<4x422xf32, #tpu.memory_space<vmem>>, vector<4x18xf32>
    tpu.vector_store %arg6[%c0_335, %c270_336], %603 {strides = array<i32>} : memref<4x422xf32, #tpu.memory_space<vmem>>, vector<4x18xf32>,
    %c0_337 = arith.constant 0 : index
    %c270_338 = arith.constant 270 : index
    %605 = vector.load %arg7[%c0_337, %c270_338] : memref<4x384xf32, #tpu.memory_space<vmem>>, vector<4x16xf32>
    %606 = vector.broadcast %419 : vector<4x1xf32> to vector<4x16xf32>
    %607 = arith.subf %605, %606 : vector<4x16xf32>
    %608 = vector.broadcast %428 : vector<4x1xf32> to vector<4x16xf32>
    %609 = arith.mulf %607, %608 : vector<4x16xf32>
    %cst_339 = arith.constant 0.000000e+00 : f32
    %610 = vector.broadcast %cst_339 : f32 to vector<4x16xf32>
    %611 = arith.maximumf %609, %610 : vector<4x16xf32>
    %612 = vector.extract_strided_slice %611 {offsets = [0, 1], sizes = [4, 1], strides = [1, 1]} : vector<4x16xf32> to vector<4x1xf32>
    %613 = vector.extract_strided_slice %611 {offsets = [0, 14], sizes = [4, 1], strides = [1, 1]} : vector<4x16xf32> to vector<4x1xf32>
    %614 = tpu.concatenate %612, %611, %613 in 1 : vector<4x1xf32>, vector<4x16xf32>, vector<4x1xf32> -> vector<4x18xf32>
    %c0_340 = arith.constant 0 : index
    %c288_341 = arith.constant 288 : index
    %615 = vector.load %arg6[%c0_340, %c288_341] : memref<4x422xf32, #tpu.memory_space<vmem>>, vector<4x18xf32>
    tpu.vector_store %arg6[%c0_340, %c288_341], %614 {strides = array<i32>} : memref<4x422xf32, #tpu.memory_space<vmem>>, vector<4x18xf32>,
    %c0_342 = arith.constant 0 : index
    %c252_343 = arith.constant 252 : index
    %616 = vector.load %arg7[%c0_342, %c252_343] : memref<4x384xf32, #tpu.memory_space<vmem>>, vector<4x16xf32>
    %617 = vector.broadcast %419 : vector<4x1xf32> to vector<4x16xf32>
    %618 = arith.subf %616, %617 : vector<4x16xf32>
    %619 = vector.broadcast %428 : vector<4x1xf32> to vector<4x16xf32>
    %620 = arith.mulf %618, %619 : vector<4x16xf32>
    %cst_344 = arith.constant 0.000000e+00 : f32
    %621 = vector.broadcast %cst_344 : f32 to vector<4x16xf32>
    %622 = arith.maximumf %620, %621 : vector<4x16xf32>
    %623 = vector.extract_strided_slice %622 {offsets = [0, 1], sizes = [4, 1], strides = [1, 1]} : vector<4x16xf32> to vector<4x1xf32>
    %624 = vector.extract_strided_slice %622 {offsets = [0, 14], sizes = [4, 1], strides = [1, 1]} : vector<4x16xf32> to vector<4x1xf32>
    %625 = tpu.concatenate %623, %622, %624 in 1 : vector<4x1xf32>, vector<4x16xf32>, vector<4x1xf32> -> vector<4x18xf32>
    %c0_345 = arith.constant 0 : index
    %c306_346 = arith.constant 306 : index
    %626 = vector.load %arg6[%c0_345, %c306_346] : memref<4x422xf32, #tpu.memory_space<vmem>>, vector<4x18xf32>
    tpu.vector_store %arg6[%c0_345, %c306_346], %625 {strides = array<i32>} : memref<4x422xf32, #tpu.memory_space<vmem>>, vector<4x18xf32>,
    %cst_347 = arith.constant 0.000000e+00 : f32
    %627 = vector.broadcast %cst_347 : f32 to vector<4x98xf32>
    %c0_348 = arith.constant 0 : index
    %c324_349 = arith.constant 324 : index
    %628 = vector.load %arg6[%c0_348, %c324_349] : memref<4x422xf32, #tpu.memory_space<vmem>>, vector<4x98xf32>
    tpu.vector_store %arg6[%c0_348, %c324_349], %627 {strides = array<i32>} : memref<4x422xf32, #tpu.memory_space<vmem>>, vector<4x98xf32>,
    %cst_350 = arith.constant 0.000000e+00 : f32
    %629 = vector.broadcast %cst_350 : f32 to vector<4x1xf32>
    %cst_351 = arith.constant 0.000000e+00 : f32
    %630 = vector.broadcast %cst_351 : f32 to vector<4x1xf32>
    %cst_352 = arith.constant 0.000000e+00 : f32
    %631 = vector.broadcast %cst_352 : f32 to vector<4x128xf32>
    %c0_353 = arith.constant 0 : index
    %c0_354 = arith.constant 0 : index
    %c0_355 = arith.constant 0 : index
    %632 = vector.load %arg3[%c0_353, %c0_354, %c0_355] : memref<9x4x4xf32, #tpu.memory_space<vmem>>, vector<1x4x4xf32>
    %633 = vector.shape_cast %632 : vector<1x4x4xf32> to vector<4x4xf32>
    %c0_356 = arith.constant 0 : index
    %c0_357 = arith.constant 0 : index
    %634 = vector.load %arg6[%c0_356, %c0_357] : memref<4x422xf32, #tpu.memory_space<vmem>>, vector<4x128xf32>
    %cst_358 = arith.constant dense<0.000000e+00> : vector<4x128xf32>
    %635 = tpu.matmul %633, %634, %cst_358 {dimension_numbers = #tpu.dot_dimension_numbers<[1], [0], [0], [1], [0, 0, 1, 1], [], []>} : vector<4x4xf32>, vector<4x128xf32>, vector<4x128xf32> -> vector<4x128xf32>
    %636 = arith.addf %631, %635 : vector<4x128xf32>
    %c1_359 = arith.constant 1 : index
    %c0_360 = arith.constant 0 : index
    %c0_361 = arith.constant 0 : index
    %637 = vector.load %arg3[%c1_359, %c0_360, %c0_361] : memref<9x4x4xf32, #tpu.memory_space<vmem>>, vector<1x4x4xf32>
    %638 = vector.shape_cast %637 : vector<1x4x4xf32> to vector<4x4xf32>
    %c0_362 = arith.constant 0 : index
    %c1_363 = arith.constant 1 : index
    %639 = vector.load %arg6[%c0_362, %c1_363] : memref<4x422xf32, #tpu.memory_space<vmem>>, vector<4x128xf32>
    %cst_364 = arith.constant dense<0.000000e+00> : vector<4x128xf32>
    %640 = tpu.matmul %638, %639, %cst_364 {dimension_numbers = #tpu.dot_dimension_numbers<[1], [0], [0], [1], [0, 0, 1, 1], [], []>} : vector<4x4xf32>, vector<4x128xf32>, vector<4x128xf32> -> vector<4x128xf32>
    %641 = arith.addf %636, %640 : vector<4x128xf32>
    %c2_365 = arith.constant 2 : index
    %c0_366 = arith.constant 0 : index
    %c0_367 = arith.constant 0 : index
    %642 = vector.load %arg3[%c2_365, %c0_366, %c0_367] : memref<9x4x4xf32, #tpu.memory_space<vmem>>, vector<1x4x4xf32>
    %643 = vector.shape_cast %642 : vector<1x4x4xf32> to vector<4x4xf32>
    %c0_368 = arith.constant 0 : index
    %c2_369 = arith.constant 2 : index
    %644 = vector.load %arg6[%c0_368, %c2_369] : memref<4x422xf32, #tpu.memory_space<vmem>>, vector<4x128xf32>
    %cst_370 = arith.constant dense<0.000000e+00> : vector<4x128xf32>
    %645 = tpu.matmul %643, %644, %cst_370 {dimension_numbers = #tpu.dot_dimension_numbers<[1], [0], [0], [1], [0, 0, 1, 1], [], []>} : vector<4x4xf32>, vector<4x128xf32>, vector<4x128xf32> -> vector<4x128xf32>
    %646 = arith.addf %641, %645 : vector<4x128xf32>
    %c3_371 = arith.constant 3 : index
    %c0_372 = arith.constant 0 : index
    %c0_373 = arith.constant 0 : index
    %647 = vector.load %arg3[%c3_371, %c0_372, %c0_373] : memref<9x4x4xf32, #tpu.memory_space<vmem>>, vector<1x4x4xf32>
    %648 = vector.shape_cast %647 : vector<1x4x4xf32> to vector<4x4xf32>
    %c0_374 = arith.constant 0 : index
    %c18_375 = arith.constant 18 : index
    %649 = vector.load %arg6[%c0_374, %c18_375] : memref<4x422xf32, #tpu.memory_space<vmem>>, vector<4x128xf32>
    %cst_376 = arith.constant dense<0.000000e+00> : vector<4x128xf32>
    %650 = tpu.matmul %648, %649, %cst_376 {dimension_numbers = #tpu.dot_dimension_numbers<[1], [0], [0], [1], [0, 0, 1, 1], [], []>} : vector<4x4xf32>, vector<4x128xf32>, vector<4x128xf32> -> vector<4x128xf32>
    %651 = arith.addf %646, %650 : vector<4x128xf32>
    %c4_377 = arith.constant 4 : index
    %c0_378 = arith.constant 0 : index
    %c0_379 = arith.constant 0 : index
    %652 = vector.load %arg3[%c4_377, %c0_378, %c0_379] : memref<9x4x4xf32, #tpu.memory_space<vmem>>, vector<1x4x4xf32>
    %653 = vector.shape_cast %652 : vector<1x4x4xf32> to vector<4x4xf32>
    %c0_380 = arith.constant 0 : index
    %c19_381 = arith.constant 19 : index
    %654 = vector.load %arg6[%c0_380, %c19_381] : memref<4x422xf32, #tpu.memory_space<vmem>>, vector<4x128xf32>
    %cst_382 = arith.constant dense<0.000000e+00> : vector<4x128xf32>
    %655 = tpu.matmul %653, %654, %cst_382 {dimension_numbers = #tpu.dot_dimension_numbers<[1], [0], [0], [1], [0, 0, 1, 1], [], []>} : vector<4x4xf32>, vector<4x128xf32>, vector<4x128xf32> -> vector<4x128xf32>
    %656 = arith.addf %651, %655 : vector<4x128xf32>
    %c5_383 = arith.constant 5 : index
    %c0_384 = arith.constant 0 : index
    %c0_385 = arith.constant 0 : index
    %657 = vector.load %arg3[%c5_383, %c0_384, %c0_385] : memref<9x4x4xf32, #tpu.memory_space<vmem>>, vector<1x4x4xf32>
    %658 = vector.shape_cast %657 : vector<1x4x4xf32> to vector<4x4xf32>
    %c0_386 = arith.constant 0 : index
    %c20_387 = arith.constant 20 : index
    %659 = vector.load %arg6[%c0_386, %c20_387] : memref<4x422xf32, #tpu.memory_space<vmem>>, vector<4x128xf32>
    %cst_388 = arith.constant dense<0.000000e+00> : vector<4x128xf32>
    %660 = tpu.matmul %658, %659, %cst_388 {dimension_numbers = #tpu.dot_dimension_numbers<[1], [0], [0], [1], [0, 0, 1, 1], [], []>} : vector<4x4xf32>, vector<4x128xf32>, vector<4x128xf32> -> vector<4x128xf32>
    %661 = arith.addf %656, %660 : vector<4x128xf32>
    %c6_389 = arith.constant 6 : index
    %c0_390 = arith.constant 0 : index
    %c0_391 = arith.constant 0 : index
    %662 = vector.load %arg3[%c6_389, %c0_390, %c0_391] : memref<9x4x4xf32, #tpu.memory_space<vmem>>, vector<1x4x4xf32>
    %663 = vector.shape_cast %662 : vector<1x4x4xf32> to vector<4x4xf32>
    %c0_392 = arith.constant 0 : index
    %c36_393 = arith.constant 36 : index
    %664 = vector.load %arg6[%c0_392, %c36_393] : memref<4x422xf32, #tpu.memory_space<vmem>>, vector<4x128xf32>
    %cst_394 = arith.constant dense<0.000000e+00> : vector<4x128xf32>
    %665 = tpu.matmul %663, %664, %cst_394 {dimension_numbers = #tpu.dot_dimension_numbers<[1], [0], [0], [1], [0, 0, 1, 1], [], []>} : vector<4x4xf32>, vector<4x128xf32>, vector<4x128xf32> -> vector<4x128xf32>
    %666 = arith.addf %661, %665 : vector<4x128xf32>
    %c7_395 = arith.constant 7 : index
    %c0_396 = arith.constant 0 : index
    %c0_397 = arith.constant 0 : index
    %667 = vector.load %arg3[%c7_395, %c0_396, %c0_397] : memref<9x4x4xf32, #tpu.memory_space<vmem>>, vector<1x4x4xf32>
    %668 = vector.shape_cast %667 : vector<1x4x4xf32> to vector<4x4xf32>
    %c0_398 = arith.constant 0 : index
    %c37_399 = arith.constant 37 : index
    %669 = vector.load %arg6[%c0_398, %c37_399] : memref<4x422xf32, #tpu.memory_space<vmem>>, vector<4x128xf32>
    %cst_400 = arith.constant dense<0.000000e+00> : vector<4x128xf32>
    %670 = tpu.matmul %668, %669, %cst_400 {dimension_numbers = #tpu.dot_dimension_numbers<[1], [0], [0], [1], [0, 0, 1, 1], [], []>} : vector<4x4xf32>, vector<4x128xf32>, vector<4x128xf32> -> vector<4x128xf32>
    %671 = arith.addf %666, %670 : vector<4x128xf32>
    %c8_401 = arith.constant 8 : index
    %c0_402 = arith.constant 0 : index
    %c0_403 = arith.constant 0 : index
    %672 = vector.load %arg3[%c8_401, %c0_402, %c0_403] : memref<9x4x4xf32, #tpu.memory_space<vmem>>, vector<1x4x4xf32>
    %673 = vector.shape_cast %672 : vector<1x4x4xf32> to vector<4x4xf32>
    %c0_404 = arith.constant 0 : index
    %c38_405 = arith.constant 38 : index
    %674 = vector.load %arg6[%c0_404, %c38_405] : memref<4x422xf32, #tpu.memory_space<vmem>>, vector<4x128xf32>
    %cst_406 = arith.constant dense<0.000000e+00> : vector<4x128xf32>
    %675 = tpu.matmul %673, %674, %cst_406 {dimension_numbers = #tpu.dot_dimension_numbers<[1], [0], [0], [1], [0, 0, 1, 1], [], []>} : vector<4x4xf32>, vector<4x128xf32>, vector<4x128xf32> -> vector<4x128xf32>
    %676 = arith.addf %671, %675 : vector<4x128xf32>
    %c0_407 = arith.constant 0 : index
    %c0_408 = arith.constant 0 : index
    %677 = vector.load %arg7[%c0_407, %c0_408] : memref<4x384xf32, #tpu.memory_space<vmem>>, vector<4x128xf32>
    tpu.vector_store %arg7[%c0_407, %c0_408], %676 {strides = array<i32>} : memref<4x384xf32, #tpu.memory_space<vmem>>, vector<4x128xf32>,
    %678 = tpu.iota {dimensions = array<i32: 1>} : vector<1x128xi32>
    %c0_i32_409 = arith.constant 0 : i32
    %679 = vector.broadcast %c0_i32_409 : i32 to vector<1x128xi32>
    %680 = arith.addi %678, %679 : vector<1x128xi32>
    %c0_i32_410 = arith.constant 0 : i32
    %681 = vector.broadcast %c0_i32_410 : i32 to vector<1x128xi32>
    %682 = arith.cmpi sge, %680, %681 : vector<1x128xi32>
    %c16_i32_411 = arith.constant 16 : i32
    %683 = vector.broadcast %c16_i32_411 : i32 to vector<1x128xi32>
    %684 = arith.cmpi slt, %680, %683 : vector<1x128xi32>
    %685 = arith.andi %682, %684 : vector<1x128xi1>
    %c18_i32_412 = arith.constant 18 : i32
    %686 = vector.broadcast %c18_i32_412 : i32 to vector<1x128xi32>
    %687 = arith.cmpi sge, %680, %686 : vector<1x128xi32>
    %c34_i32_413 = arith.constant 34 : i32
    %688 = vector.broadcast %c34_i32_413 : i32 to vector<1x128xi32>
    %689 = arith.cmpi slt, %680, %688 : vector<1x128xi32>
    %690 = arith.andi %687, %689 : vector<1x128xi1>
    %c36_i32_414 = arith.constant 36 : i32
    %691 = vector.broadcast %c36_i32_414 : i32 to vector<1x128xi32>
    %692 = arith.cmpi sge, %680, %691 : vector<1x128xi32>
    %c52_i32_415 = arith.constant 52 : i32
    %693 = vector.broadcast %c52_i32_415 : i32 to vector<1x128xi32>
    %694 = arith.cmpi slt, %680, %693 : vector<1x128xi32>
    %695 = arith.andi %692, %694 : vector<1x128xi1>
    %c54_i32_416 = arith.constant 54 : i32
    %696 = vector.broadcast %c54_i32_416 : i32 to vector<1x128xi32>
    %697 = arith.cmpi sge, %680, %696 : vector<1x128xi32>
    %c70_i32_417 = arith.constant 70 : i32
    %698 = vector.broadcast %c70_i32_417 : i32 to vector<1x128xi32>
    %699 = arith.cmpi slt, %680, %698 : vector<1x128xi32>
    %700 = arith.andi %697, %699 : vector<1x128xi1>
    %c72_i32_418 = arith.constant 72 : i32
    %701 = vector.broadcast %c72_i32_418 : i32 to vector<1x128xi32>
    %702 = arith.cmpi sge, %680, %701 : vector<1x128xi32>
    %c88_i32_419 = arith.constant 88 : i32
    %703 = vector.broadcast %c88_i32_419 : i32 to vector<1x128xi32>
    %704 = arith.cmpi slt, %680, %703 : vector<1x128xi32>
    %705 = arith.andi %702, %704 : vector<1x128xi1>
    %c90_i32_420 = arith.constant 90 : i32
    %706 = vector.broadcast %c90_i32_420 : i32 to vector<1x128xi32>
    %707 = arith.cmpi sge, %680, %706 : vector<1x128xi32>
    %c106_i32_421 = arith.constant 106 : i32
    %708 = vector.broadcast %c106_i32_421 : i32 to vector<1x128xi32>
    %709 = arith.cmpi slt, %680, %708 : vector<1x128xi32>
    %710 = arith.andi %707, %709 : vector<1x128xi1>
    %c108_i32_422 = arith.constant 108 : i32
    %711 = vector.broadcast %c108_i32_422 : i32 to vector<1x128xi32>
    %712 = arith.cmpi sge, %680, %711 : vector<1x128xi32>
    %c124_i32_423 = arith.constant 124 : i32
    %713 = vector.broadcast %c124_i32_423 : i32 to vector<1x128xi32>
    %714 = arith.cmpi slt, %680, %713 : vector<1x128xi32>
    %715 = arith.andi %712, %714 : vector<1x128xi1>
    %c126_i32_424 = arith.constant 126 : i32
    %716 = vector.broadcast %c126_i32_424 : i32 to vector<1x128xi32>
    %717 = arith.cmpi sge, %680, %716 : vector<1x128xi32>
    %c142_i32_425 = arith.constant 142 : i32
    %718 = vector.broadcast %c142_i32_425 : i32 to vector<1x128xi32>
    %719 = arith.cmpi slt, %680, %718 : vector<1x128xi32>
    %720 = arith.andi %717, %719 : vector<1x128xi1>
    %721 = arith.ori %685, %690 : vector<1x128xi1>
    %722 = arith.ori %721, %695 : vector<1x128xi1>
    %723 = arith.ori %722, %700 : vector<1x128xi1>
    %724 = arith.ori %723, %705 : vector<1x128xi1>
    %725 = arith.ori %724, %710 : vector<1x128xi1>
    %726 = arith.ori %725, %715 : vector<1x128xi1>
    %727 = arith.ori %726, %720 : vector<1x128xi1>
    %cst_426 = arith.constant 0.000000e+00 : f32
    %728 = vector.shape_cast %727 : vector<1x128xi1> to vector<1x128xi1>
    %729 = vector.broadcast %728 : vector<1x128xi1> to vector<4x128xi1>
    %730 = vector.broadcast %cst_426 : f32 to vector<4x128xf32>
    %731 = arith.select %729, %676, %730 : vector<4x128xi1>, vector<4x128xf32>
    %cst_427 = arith.constant dense<0.000000e+00> : vector<4xf32>
    %732 = vector.multi_reduction <add>, %731, %cst_427 [1] : vector<4x128xf32> to vector<4xf32>
    %733 = vector.shape_cast %732 : vector<4xf32> to vector<4x1xf32>
    %734 = arith.addf %629, %733 : vector<4x1xf32>
    %735 = arith.mulf %731, %731 : vector<4x128xf32>
    %cst_428 = arith.constant dense<0.000000e+00> : vector<4xf32>
    %736 = vector.multi_reduction <add>, %735, %cst_428 [1] : vector<4x128xf32> to vector<4xf32>
    %737 = vector.shape_cast %736 : vector<4xf32> to vector<4x1xf32>
    %738 = arith.addf %630, %737 : vector<4x1xf32>
    %cst_429 = arith.constant 0.000000e+00 : f32
    %739 = vector.broadcast %cst_429 : f32 to vector<4x128xf32>
    %c0_430 = arith.constant 0 : index
    %c0_431 = arith.constant 0 : index
    %c0_432 = arith.constant 0 : index
    %740 = vector.load %arg3[%c0_430, %c0_431, %c0_432] : memref<9x4x4xf32, #tpu.memory_space<vmem>>, vector<1x4x4xf32>
    %741 = vector.shape_cast %740 : vector<1x4x4xf32> to vector<4x4xf32>
    %c0_433 = arith.constant 0 : index
    %c128_434 = arith.constant 128 : index
    %742 = vector.load %arg6[%c0_433, %c128_434] : memref<4x422xf32, #tpu.memory_space<vmem>>, vector<4x128xf32>
    %cst_435 = arith.constant dense<0.000000e+00> : vector<4x128xf32>
    %743 = tpu.matmul %741, %742, %cst_435 {dimension_numbers = #tpu.dot_dimension_numbers<[1], [0], [0], [1], [0, 0, 1, 1], [], []>} : vector<4x4xf32>, vector<4x128xf32>, vector<4x128xf32> -> vector<4x128xf32>
    %744 = arith.addf %739, %743 : vector<4x128xf32>
    %c1_436 = arith.constant 1 : index
    %c0_437 = arith.constant 0 : index
    %c0_438 = arith.constant 0 : index
    %745 = vector.load %arg3[%c1_436, %c0_437, %c0_438] : memref<9x4x4xf32, #tpu.memory_space<vmem>>, vector<1x4x4xf32>
    %746 = vector.shape_cast %745 : vector<1x4x4xf32> to vector<4x4xf32>
    %c0_439 = arith.constant 0 : index
    %c129_440 = arith.constant 129 : index
    %747 = vector.load %arg6[%c0_439, %c129_440] : memref<4x422xf32, #tpu.memory_space<vmem>>, vector<4x128xf32>
    %cst_441 = arith.constant dense<0.000000e+00> : vector<4x128xf32>
    %748 = tpu.matmul %746, %747, %cst_441 {dimension_numbers = #tpu.dot_dimension_numbers<[1], [0], [0], [1], [0, 0, 1, 1], [], []>} : vector<4x4xf32>, vector<4x128xf32>, vector<4x128xf32> -> vector<4x128xf32>
    %749 = arith.addf %744, %748 : vector<4x128xf32>
    %c2_442 = arith.constant 2 : index
    %c0_443 = arith.constant 0 : index
    %c0_444 = arith.constant 0 : index
    %750 = vector.load %arg3[%c2_442, %c0_443, %c0_444] : memref<9x4x4xf32, #tpu.memory_space<vmem>>, vector<1x4x4xf32>
    %751 = vector.shape_cast %750 : vector<1x4x4xf32> to vector<4x4xf32>
    %c0_445 = arith.constant 0 : index
    %c130_446 = arith.constant 130 : index
    %752 = vector.load %arg6[%c0_445, %c130_446] : memref<4x422xf32, #tpu.memory_space<vmem>>, vector<4x128xf32>
    %cst_447 = arith.constant dense<0.000000e+00> : vector<4x128xf32>
    %753 = tpu.matmul %751, %752, %cst_447 {dimension_numbers = #tpu.dot_dimension_numbers<[1], [0], [0], [1], [0, 0, 1, 1], [], []>} : vector<4x4xf32>, vector<4x128xf32>, vector<4x128xf32> -> vector<4x128xf32>
    %754 = arith.addf %749, %753 : vector<4x128xf32>
    %c3_448 = arith.constant 3 : index
    %c0_449 = arith.constant 0 : index
    %c0_450 = arith.constant 0 : index
    %755 = vector.load %arg3[%c3_448, %c0_449, %c0_450] : memref<9x4x4xf32, #tpu.memory_space<vmem>>, vector<1x4x4xf32>
    %756 = vector.shape_cast %755 : vector<1x4x4xf32> to vector<4x4xf32>
    %c0_451 = arith.constant 0 : index
    %c146_452 = arith.constant 146 : index
    %757 = vector.load %arg6[%c0_451, %c146_452] : memref<4x422xf32, #tpu.memory_space<vmem>>, vector<4x128xf32>
    %cst_453 = arith.constant dense<0.000000e+00> : vector<4x128xf32>
    %758 = tpu.matmul %756, %757, %cst_453 {dimension_numbers = #tpu.dot_dimension_numbers<[1], [0], [0], [1], [0, 0, 1, 1], [], []>} : vector<4x4xf32>, vector<4x128xf32>, vector<4x128xf32> -> vector<4x128xf32>
    %759 = arith.addf %754, %758 : vector<4x128xf32>
    %c4_454 = arith.constant 4 : index
    %c0_455 = arith.constant 0 : index
    %c0_456 = arith.constant 0 : index
    %760 = vector.load %arg3[%c4_454, %c0_455, %c0_456] : memref<9x4x4xf32, #tpu.memory_space<vmem>>, vector<1x4x4xf32>
    %761 = vector.shape_cast %760 : vector<1x4x4xf32> to vector<4x4xf32>
    %c0_457 = arith.constant 0 : index
    %c147_458 = arith.constant 147 : index
    %762 = vector.load %arg6[%c0_457, %c147_458] : memref<4x422xf32, #tpu.memory_space<vmem>>, vector<4x128xf32>
    %cst_459 = arith.constant dense<0.000000e+00> : vector<4x128xf32>
    %763 = tpu.matmul %761, %762, %cst_459 {dimension_numbers = #tpu.dot_dimension_numbers<[1], [0], [0], [1], [0, 0, 1, 1], [], []>} : vector<4x4xf32>, vector<4x128xf32>, vector<4x128xf32> -> vector<4x128xf32>
    %764 = arith.addf %759, %763 : vector<4x128xf32>
    %c5_460 = arith.constant 5 : index
    %c0_461 = arith.constant 0 : index
    %c0_462 = arith.constant 0 : index
    %765 = vector.load %arg3[%c5_460, %c0_461, %c0_462] : memref<9x4x4xf32, #tpu.memory_space<vmem>>, vector<1x4x4xf32>
    %766 = vector.shape_cast %765 : vector<1x4x4xf32> to vector<4x4xf32>
    %c0_463 = arith.constant 0 : index
    %c148_464 = arith.constant 148 : index
    %767 = vector.load %arg6[%c0_463, %c148_464] : memref<4x422xf32, #tpu.memory_space<vmem>>, vector<4x128xf32>
    %cst_465 = arith.constant dense<0.000000e+00> : vector<4x128xf32>
    %768 = tpu.matmul %766, %767, %cst_465 {dimension_numbers = #tpu.dot_dimension_numbers<[1], [0], [0], [1], [0, 0, 1, 1], [], []>} : vector<4x4xf32>, vector<4x128xf32>, vector<4x128xf32> -> vector<4x128xf32>
    %769 = arith.addf %764, %768 : vector<4x128xf32>
    %c6_466 = arith.constant 6 : index
    %c0_467 = arith.constant 0 : index
    %c0_468 = arith.constant 0 : index
    %770 = vector.load %arg3[%c6_466, %c0_467, %c0_468] : memref<9x4x4xf32, #tpu.memory_space<vmem>>, vector<1x4x4xf32>
    %771 = vector.shape_cast %770 : vector<1x4x4xf32> to vector<4x4xf32>
    %c0_469 = arith.constant 0 : index
    %c164_470 = arith.constant 164 : index
    %772 = vector.load %arg6[%c0_469, %c164_470] : memref<4x422xf32, #tpu.memory_space<vmem>>, vector<4x128xf32>
    %cst_471 = arith.constant dense<0.000000e+00> : vector<4x128xf32>
    %773 = tpu.matmul %771, %772, %cst_471 {dimension_numbers = #tpu.dot_dimension_numbers<[1], [0], [0], [1], [0, 0, 1, 1], [], []>} : vector<4x4xf32>, vector<4x128xf32>, vector<4x128xf32> -> vector<4x128xf32>
    %774 = arith.addf %769, %773 : vector<4x128xf32>
    %c7_472 = arith.constant 7 : index
    %c0_473 = arith.constant 0 : index
    %c0_474 = arith.constant 0 : index
    %775 = vector.load %arg3[%c7_472, %c0_473, %c0_474] : memref<9x4x4xf32, #tpu.memory_space<vmem>>, vector<1x4x4xf32>
    %776 = vector.shape_cast %775 : vector<1x4x4xf32> to vector<4x4xf32>
    %c0_475 = arith.constant 0 : index
    %c165_476 = arith.constant 165 : index
    %777 = vector.load %arg6[%c0_475, %c165_476] : memref<4x422xf32, #tpu.memory_space<vmem>>, vector<4x128xf32>
    %cst_477 = arith.constant dense<0.000000e+00> : vector<4x128xf32>
    %778 = tpu.matmul %776, %777, %cst_477 {dimension_numbers = #tpu.dot_dimension_numbers<[1], [0], [0], [1], [0, 0, 1, 1], [], []>} : vector<4x4xf32>, vector<4x128xf32>, vector<4x128xf32> -> vector<4x128xf32>
    %779 = arith.addf %774, %778 : vector<4x128xf32>
    %c8_478 = arith.constant 8 : index
    %c0_479 = arith.constant 0 : index
    %c0_480 = arith.constant 0 : index
    %780 = vector.load %arg3[%c8_478, %c0_479, %c0_480] : memref<9x4x4xf32, #tpu.memory_space<vmem>>, vector<1x4x4xf32>
    %781 = vector.shape_cast %780 : vector<1x4x4xf32> to vector<4x4xf32>
    %c0_481 = arith.constant 0 : index
    %c166_482 = arith.constant 166 : index
    %782 = vector.load %arg6[%c0_481, %c166_482] : memref<4x422xf32, #tpu.memory_space<vmem>>, vector<4x128xf32>
    %cst_483 = arith.constant dense<0.000000e+00> : vector<4x128xf32>
    %783 = tpu.matmul %781, %782, %cst_483 {dimension_numbers = #tpu.dot_dimension_numbers<[1], [0], [0], [1], [0, 0, 1, 1], [], []>} : vector<4x4xf32>, vector<4x128xf32>, vector<4x128xf32> -> vector<4x128xf32>
    %784 = arith.addf %779, %783 : vector<4x128xf32>
    %c0_484 = arith.constant 0 : index
    %c128_485 = arith.constant 128 : index
    %785 = vector.load %arg7[%c0_484, %c128_485] : memref<4x384xf32, #tpu.memory_space<vmem>>, vector<4x128xf32>
    tpu.vector_store %arg7[%c0_484, %c128_485], %784 {strides = array<i32>} : memref<4x384xf32, #tpu.memory_space<vmem>>, vector<4x128xf32>,
    %786 = tpu.iota {dimensions = array<i32: 1>} : vector<1x128xi32>
    %c128_i32_486 = arith.constant 128 : i32
    %787 = vector.broadcast %c128_i32_486 : i32 to vector<1x128xi32>
    %788 = arith.addi %786, %787 : vector<1x128xi32>
    %c126_i32_487 = arith.constant 126 : i32
    %789 = vector.broadcast %c126_i32_487 : i32 to vector<1x128xi32>
    %790 = arith.cmpi sge, %788, %789 : vector<1x128xi32>
    %c142_i32_488 = arith.constant 142 : i32
    %791 = vector.broadcast %c142_i32_488 : i32 to vector<1x128xi32>
    %792 = arith.cmpi slt, %788, %791 : vector<1x128xi32>
    %793 = arith.andi %790, %792 : vector<1x128xi1>
    %c144_i32_489 = arith.constant 144 : i32
    %794 = vector.broadcast %c144_i32_489 : i32 to vector<1x128xi32>
    %795 = arith.cmpi sge, %788, %794 : vector<1x128xi32>
    %c160_i32_490 = arith.constant 160 : i32
    %796 = vector.broadcast %c160_i32_490 : i32 to vector<1x128xi32>
    %797 = arith.cmpi slt, %788, %796 : vector<1x128xi32>
    %798 = arith.andi %795, %797 : vector<1x128xi1>
    %c162_i32_491 = arith.constant 162 : i32
    %799 = vector.broadcast %c162_i32_491 : i32 to vector<1x128xi32>
    %800 = arith.cmpi sge, %788, %799 : vector<1x128xi32>
    %c178_i32_492 = arith.constant 178 : i32
    %801 = vector.broadcast %c178_i32_492 : i32 to vector<1x128xi32>
    %802 = arith.cmpi slt, %788, %801 : vector<1x128xi32>
    %803 = arith.andi %800, %802 : vector<1x128xi1>
    %c180_i32_493 = arith.constant 180 : i32
    %804 = vector.broadcast %c180_i32_493 : i32 to vector<1x128xi32>
    %805 = arith.cmpi sge, %788, %804 : vector<1x128xi32>
    %c196_i32_494 = arith.constant 196 : i32
    %806 = vector.broadcast %c196_i32_494 : i32 to vector<1x128xi32>
    %807 = arith.cmpi slt, %788, %806 : vector<1x128xi32>
    %808 = arith.andi %805, %807 : vector<1x128xi1>
    %c198_i32_495 = arith.constant 198 : i32
    %809 = vector.broadcast %c198_i32_495 : i32 to vector<1x128xi32>
    %810 = arith.cmpi sge, %788, %809 : vector<1x128xi32>
    %c214_i32_496 = arith.constant 214 : i32
    %811 = vector.broadcast %c214_i32_496 : i32 to vector<1x128xi32>
    %812 = arith.cmpi slt, %788, %811 : vector<1x128xi32>
    %813 = arith.andi %810, %812 : vector<1x128xi1>
    %c216_i32_497 = arith.constant 216 : i32
    %814 = vector.broadcast %c216_i32_497 : i32 to vector<1x128xi32>
    %815 = arith.cmpi sge, %788, %814 : vector<1x128xi32>
    %c232_i32_498 = arith.constant 232 : i32
    %816 = vector.broadcast %c232_i32_498 : i32 to vector<1x128xi32>
    %817 = arith.cmpi slt, %788, %816 : vector<1x128xi32>
    %818 = arith.andi %815, %817 : vector<1x128xi1>
    %c234_i32_499 = arith.constant 234 : i32
    %819 = vector.broadcast %c234_i32_499 : i32 to vector<1x128xi32>
    %820 = arith.cmpi sge, %788, %819 : vector<1x128xi32>
    %c250_i32_500 = arith.constant 250 : i32
    %821 = vector.broadcast %c250_i32_500 : i32 to vector<1x128xi32>
    %822 = arith.cmpi slt, %788, %821 : vector<1x128xi32>
    %823 = arith.andi %820, %822 : vector<1x128xi1>
    %c252_i32_501 = arith.constant 252 : i32
    %824 = vector.broadcast %c252_i32_501 : i32 to vector<1x128xi32>
    %825 = arith.cmpi sge, %788, %824 : vector<1x128xi32>
    %c268_i32_502 = arith.constant 268 : i32
    %826 = vector.broadcast %c268_i32_502 : i32 to vector<1x128xi32>
    %827 = arith.cmpi slt, %788, %826 : vector<1x128xi32>
    %828 = arith.andi %825, %827 : vector<1x128xi1>
    %829 = arith.ori %793, %798 : vector<1x128xi1>
    %830 = arith.ori %829, %803 : vector<1x128xi1>
    %831 = arith.ori %830, %808 : vector<1x128xi1>
    %832 = arith.ori %831, %813 : vector<1x128xi1>
    %833 = arith.ori %832, %818 : vector<1x128xi1>
    %834 = arith.ori %833, %823 : vector<1x128xi1>
    %835 = arith.ori %834, %828 : vector<1x128xi1>
    %cst_503 = arith.constant 0.000000e+00 : f32
    %836 = vector.shape_cast %835 : vector<1x128xi1> to vector<1x128xi1>
    %837 = vector.broadcast %836 : vector<1x128xi1> to vector<4x128xi1>
    %838 = vector.broadcast %cst_503 : f32 to vector<4x128xf32>
    %839 = arith.select %837, %784, %838 : vector<4x128xi1>, vector<4x128xf32>
    %cst_504 = arith.constant dense<0.000000e+00> : vector<4xf32>
    %840 = vector.multi_reduction <add>, %839, %cst_504 [1] : vector<4x128xf32> to vector<4xf32>
    %841 = vector.shape_cast %840 : vector<4xf32> to vector<4x1xf32>
    %842 = arith.addf %734, %841 : vector<4x1xf32>
    %843 = arith.mulf %839, %839 : vector<4x128xf32>
    %cst_505 = arith.constant dense<0.000000e+00> : vector<4xf32>
    %844 = vector.multi_reduction <add>, %843, %cst_505 [1] : vector<4x128xf32> to vector<4xf32>
    %845 = vector.shape_cast %844 : vector<4xf32> to vector<4x1xf32>
    %846 = arith.addf %738, %845 : vector<4x1xf32>
    %cst_506 = arith.constant 0.000000e+00 : f32
    %847 = vector.broadcast %cst_506 : f32 to vector<4x128xf32>
    %c0_507 = arith.constant 0 : index
    %c0_508 = arith.constant 0 : index
    %c0_509 = arith.constant 0 : index
    %848 = vector.load %arg3[%c0_507, %c0_508, %c0_509] : memref<9x4x4xf32, #tpu.memory_space<vmem>>, vector<1x4x4xf32>
    %849 = vector.shape_cast %848 : vector<1x4x4xf32> to vector<4x4xf32>
    %c0_510 = arith.constant 0 : index
    %c256_511 = arith.constant 256 : index
    %850 = vector.load %arg6[%c0_510, %c256_511] : memref<4x422xf32, #tpu.memory_space<vmem>>, vector<4x128xf32>
    %cst_512 = arith.constant dense<0.000000e+00> : vector<4x128xf32>
    %851 = tpu.matmul %849, %850, %cst_512 {dimension_numbers = #tpu.dot_dimension_numbers<[1], [0], [0], [1], [0, 0, 1, 1], [], []>} : vector<4x4xf32>, vector<4x128xf32>, vector<4x128xf32> -> vector<4x128xf32>
    %852 = arith.addf %847, %851 : vector<4x128xf32>
    %c1_513 = arith.constant 1 : index
    %c0_514 = arith.constant 0 : index
    %c0_515 = arith.constant 0 : index
    %853 = vector.load %arg3[%c1_513, %c0_514, %c0_515] : memref<9x4x4xf32, #tpu.memory_space<vmem>>, vector<1x4x4xf32>
    %854 = vector.shape_cast %853 : vector<1x4x4xf32> to vector<4x4xf32>
    %c0_516 = arith.constant 0 : index
    %c257_517 = arith.constant 257 : index
    %855 = vector.load %arg6[%c0_516, %c257_517] : memref<4x422xf32, #tpu.memory_space<vmem>>, vector<4x128xf32>
    %cst_518 = arith.constant dense<0.000000e+00> : vector<4x128xf32>
    %856 = tpu.matmul %854, %855, %cst_518 {dimension_numbers = #tpu.dot_dimension_numbers<[1], [0], [0], [1], [0, 0, 1, 1], [], []>} : vector<4x4xf32>, vector<4x128xf32>, vector<4x128xf32> -> vector<4x128xf32>
    %857 = arith.addf %852, %856 : vector<4x128xf32>
    %c2_519 = arith.constant 2 : index
    %c0_520 = arith.constant 0 : index
    %c0_521 = arith.constant 0 : index
    %858 = vector.load %arg3[%c2_519, %c0_520, %c0_521] : memref<9x4x4xf32, #tpu.memory_space<vmem>>, vector<1x4x4xf32>
    %859 = vector.shape_cast %858 : vector<1x4x4xf32> to vector<4x4xf32>
    %c0_522 = arith.constant 0 : index
    %c258_523 = arith.constant 258 : index
    %860 = vector.load %arg6[%c0_522, %c258_523] : memref<4x422xf32, #tpu.memory_space<vmem>>, vector<4x128xf32>
    %cst_524 = arith.constant dense<0.000000e+00> : vector<4x128xf32>
    %861 = tpu.matmul %859, %860, %cst_524 {dimension_numbers = #tpu.dot_dimension_numbers<[1], [0], [0], [1], [0, 0, 1, 1], [], []>} : vector<4x4xf32>, vector<4x128xf32>, vector<4x128xf32> -> vector<4x128xf32>
    %862 = arith.addf %857, %861 : vector<4x128xf32>
    %c3_525 = arith.constant 3 : index
    %c0_526 = arith.constant 0 : index
    %c0_527 = arith.constant 0 : index
    %863 = vector.load %arg3[%c3_525, %c0_526, %c0_527] : memref<9x4x4xf32, #tpu.memory_space<vmem>>, vector<1x4x4xf32>
    %864 = vector.shape_cast %863 : vector<1x4x4xf32> to vector<4x4xf32>
    %c0_528 = arith.constant 0 : index
    %c274_529 = arith.constant 274 : index
    %865 = vector.load %arg6[%c0_528, %c274_529] : memref<4x422xf32, #tpu.memory_space<vmem>>, vector<4x128xf32>
    %cst_530 = arith.constant dense<0.000000e+00> : vector<4x128xf32>
    %866 = tpu.matmul %864, %865, %cst_530 {dimension_numbers = #tpu.dot_dimension_numbers<[1], [0], [0], [1], [0, 0, 1, 1], [], []>} : vector<4x4xf32>, vector<4x128xf32>, vector<4x128xf32> -> vector<4x128xf32>
    %867 = arith.addf %862, %866 : vector<4x128xf32>
    %c4_531 = arith.constant 4 : index
    %c0_532 = arith.constant 0 : index
    %c0_533 = arith.constant 0 : index
    %868 = vector.load %arg3[%c4_531, %c0_532, %c0_533] : memref<9x4x4xf32, #tpu.memory_space<vmem>>, vector<1x4x4xf32>
    %869 = vector.shape_cast %868 : vector<1x4x4xf32> to vector<4x4xf32>
    %c0_534 = arith.constant 0 : index
    %c275_535 = arith.constant 275 : index
    %870 = vector.load %arg6[%c0_534, %c275_535] : memref<4x422xf32, #tpu.memory_space<vmem>>, vector<4x128xf32>
    %cst_536 = arith.constant dense<0.000000e+00> : vector<4x128xf32>
    %871 = tpu.matmul %869, %870, %cst_536 {dimension_numbers = #tpu.dot_dimension_numbers<[1], [0], [0], [1], [0, 0, 1, 1], [], []>} : vector<4x4xf32>, vector<4x128xf32>, vector<4x128xf32> -> vector<4x128xf32>
    %872 = arith.addf %867, %871 : vector<4x128xf32>
    %c5_537 = arith.constant 5 : index
    %c0_538 = arith.constant 0 : index
    %c0_539 = arith.constant 0 : index
    %873 = vector.load %arg3[%c5_537, %c0_538, %c0_539] : memref<9x4x4xf32, #tpu.memory_space<vmem>>, vector<1x4x4xf32>
    %874 = vector.shape_cast %873 : vector<1x4x4xf32> to vector<4x4xf32>
    %c0_540 = arith.constant 0 : index
    %c276_541 = arith.constant 276 : index
    %875 = vector.load %arg6[%c0_540, %c276_541] : memref<4x422xf32, #tpu.memory_space<vmem>>, vector<4x128xf32>
    %cst_542 = arith.constant dense<0.000000e+00> : vector<4x128xf32>
    %876 = tpu.matmul %874, %875, %cst_542 {dimension_numbers = #tpu.dot_dimension_numbers<[1], [0], [0], [1], [0, 0, 1, 1], [], []>} : vector<4x4xf32>, vector<4x128xf32>, vector<4x128xf32> -> vector<4x128xf32>
    %877 = arith.addf %872, %876 : vector<4x128xf32>
    %c6_543 = arith.constant 6 : index
    %c0_544 = arith.constant 0 : index
    %c0_545 = arith.constant 0 : index
    %878 = vector.load %arg3[%c6_543, %c0_544, %c0_545] : memref<9x4x4xf32, #tpu.memory_space<vmem>>, vector<1x4x4xf32>
    %879 = vector.shape_cast %878 : vector<1x4x4xf32> to vector<4x4xf32>
    %c0_546 = arith.constant 0 : index
    %c292_547 = arith.constant 292 : index
    %880 = vector.load %arg6[%c0_546, %c292_547] : memref<4x422xf32, #tpu.memory_space<vmem>>, vector<4x128xf32>
    %cst_548 = arith.constant dense<0.000000e+00> : vector<4x128xf32>
    %881 = tpu.matmul %879, %880, %cst_548 {dimension_numbers = #tpu.dot_dimension_numbers<[1], [0], [0], [1], [0, 0, 1, 1], [], []>} : vector<4x4xf32>, vector<4x128xf32>, vector<4x128xf32> -> vector<4x128xf32>
    %882 = arith.addf %877, %881 : vector<4x128xf32>
    %c7_549 = arith.constant 7 : index
    %c0_550 = arith.constant 0 : index
    %c0_551 = arith.constant 0 : index
    %883 = vector.load %arg3[%c7_549, %c0_550, %c0_551] : memref<9x4x4xf32, #tpu.memory_space<vmem>>, vector<1x4x4xf32>
    %884 = vector.shape_cast %883 : vector<1x4x4xf32> to vector<4x4xf32>
    %c0_552 = arith.constant 0 : index
    %c293_553 = arith.constant 293 : index
    %885 = vector.load %arg6[%c0_552, %c293_553] : memref<4x422xf32, #tpu.memory_space<vmem>>, vector<4x128xf32>
    %cst_554 = arith.constant dense<0.000000e+00> : vector<4x128xf32>
    %886 = tpu.matmul %884, %885, %cst_554 {dimension_numbers = #tpu.dot_dimension_numbers<[1], [0], [0], [1], [0, 0, 1, 1], [], []>} : vector<4x4xf32>, vector<4x128xf32>, vector<4x128xf32> -> vector<4x128xf32>
    %887 = arith.addf %882, %886 : vector<4x128xf32>
    %c8_555 = arith.constant 8 : index
    %c0_556 = arith.constant 0 : index
    %c0_557 = arith.constant 0 : index
    %888 = vector.load %arg3[%c8_555, %c0_556, %c0_557] : memref<9x4x4xf32, #tpu.memory_space<vmem>>, vector<1x4x4xf32>
    %889 = vector.shape_cast %888 : vector<1x4x4xf32> to vector<4x4xf32>
    %c0_558 = arith.constant 0 : index
    %c294_559 = arith.constant 294 : index
    %890 = vector.load %arg6[%c0_558, %c294_559] : memref<4x422xf32, #tpu.memory_space<vmem>>, vector<4x128xf32>
    %cst_560 = arith.constant dense<0.000000e+00> : vector<4x128xf32>
    %891 = tpu.matmul %889, %890, %cst_560 {dimension_numbers = #tpu.dot_dimension_numbers<[1], [0], [0], [1], [0, 0, 1, 1], [], []>} : vector<4x4xf32>, vector<4x128xf32>, vector<4x128xf32> -> vector<4x128xf32>
    %892 = arith.addf %887, %891 : vector<4x128xf32>
    %c0_561 = arith.constant 0 : index
    %c256_562 = arith.constant 256 : index
    %893 = vector.load %arg7[%c0_561, %c256_562] : memref<4x384xf32, #tpu.memory_space<vmem>>, vector<4x128xf32>
    tpu.vector_store %arg7[%c0_561, %c256_562], %892 {strides = array<i32>} : memref<4x384xf32, #tpu.memory_space<vmem>>, vector<4x128xf32>,
    %894 = tpu.iota {dimensions = array<i32: 1>} : vector<1x128xi32>
    %c256_i32_563 = arith.constant 256 : i32
    %895 = vector.broadcast %c256_i32_563 : i32 to vector<1x128xi32>
    %896 = arith.addi %894, %895 : vector<1x128xi32>
    %c252_i32_564 = arith.constant 252 : i32
    %897 = vector.broadcast %c252_i32_564 : i32 to vector<1x128xi32>
    %898 = arith.cmpi sge, %896, %897 : vector<1x128xi32>
    %c268_i32_565 = arith.constant 268 : i32
    %899 = vector.broadcast %c268_i32_565 : i32 to vector<1x128xi32>
    %900 = arith.cmpi slt, %896, %899 : vector<1x128xi32>
    %901 = arith.andi %898, %900 : vector<1x128xi1>
    %c270_i32_566 = arith.constant 270 : i32
    %902 = vector.broadcast %c270_i32_566 : i32 to vector<1x128xi32>
    %903 = arith.cmpi sge, %896, %902 : vector<1x128xi32>
    %c286_i32_567 = arith.constant 286 : i32
    %904 = vector.broadcast %c286_i32_567 : i32 to vector<1x128xi32>
    %905 = arith.cmpi slt, %896, %904 : vector<1x128xi32>
    %906 = arith.andi %903, %905 : vector<1x128xi1>
    %907 = arith.ori %901, %906 : vector<1x128xi1>
    %cst_568 = arith.constant 0.000000e+00 : f32
    %908 = vector.shape_cast %907 : vector<1x128xi1> to vector<1x128xi1>
    %909 = vector.broadcast %908 : vector<1x128xi1> to vector<4x128xi1>
    %910 = vector.broadcast %cst_568 : f32 to vector<4x128xf32>
    %911 = arith.select %909, %892, %910 : vector<4x128xi1>, vector<4x128xf32>
    %cst_569 = arith.constant dense<0.000000e+00> : vector<4xf32>
    %912 = vector.multi_reduction <add>, %911, %cst_569 [1] : vector<4x128xf32> to vector<4xf32>
    %913 = vector.shape_cast %912 : vector<4xf32> to vector<4x1xf32>
    %914 = arith.addf %842, %913 : vector<4x1xf32>
    %915 = arith.mulf %911, %911 : vector<4x128xf32>
    %cst_570 = arith.constant dense<0.000000e+00> : vector<4xf32>
    %916 = vector.multi_reduction <add>, %915, %cst_570 [1] : vector<4x128xf32> to vector<4xf32>
    %917 = vector.shape_cast %916 : vector<4xf32> to vector<4x1xf32>
    %918 = arith.addf %846, %917 : vector<4x1xf32>
    %cst_571 = arith.constant 3.906250e-03 : f32
    %919 = vector.broadcast %cst_571 : f32 to vector<4x1xf32>
    %920 = arith.mulf %914, %919 : vector<4x1xf32>
    %cst_572 = arith.constant 3.906250e-03 : f32
    %921 = vector.broadcast %cst_572 : f32 to vector<4x1xf32>
    %922 = arith.mulf %918, %921 : vector<4x1xf32>
    %923 = arith.mulf %920, %920 : vector<4x1xf32>
    %924 = arith.subf %922, %923 : vector<4x1xf32>
    %cst_573 = arith.constant 0.000000e+00 : f32
    %925 = vector.broadcast %cst_573 : f32 to vector<4x1xf32>
    %926 = arith.maximumf %924, %925 : vector<4x1xf32>
    %cst_574 = arith.constant 9.99999974E-6 : f32
    %927 = vector.broadcast %cst_574 : f32 to vector<4x1xf32>
    %928 = arith.addf %926, %927 : vector<4x1xf32>
    %929 = math.rsqrt %928 : vector<4x1xf32>
    %c0_575 = arith.constant 0 : index
    %c0_576 = arith.constant 0 : index
    %930 = vector.load %arg7[%c0_575, %c0_576] : memref<4x384xf32, #tpu.memory_space<vmem>>, vector<4x16xf32>
    %c0_i32_577 = arith.constant 0 : i32
    %c0_i32_578 = arith.constant 0 : i32
    %c0_i32_579 = arith.constant 0 : i32
    %931 = tpu.memref_slice %arg1[%c0_i32_577, %c0_i32_578, %c0_i32_579] : memref<1x4x256xf32, #tpu.memory_space<vmem>> -> memref<1x4x256xf32, #tpu.memory_space<vmem>>
    %932 = tpu.memref_squeeze %931 : memref<1x4x256xf32, #tpu.memory_space<vmem>> -> memref<4x256xf32, #tpu.memory_space<vmem>>
    %c0_580 = arith.constant 0 : index
    %c0_581 = arith.constant 0 : index
    %933 = vector.load %932[%c0_580, %c0_581] : memref<4x256xf32, #tpu.memory_space<vmem>>, vector<4x16xf32>
    %934 = vector.broadcast %920 : vector<4x1xf32> to vector<4x16xf32>
    %935 = arith.subf %930, %934 : vector<4x16xf32>
    %936 = vector.broadcast %929 : vector<4x1xf32> to vector<4x16xf32>
    %937 = arith.mulf %935, %936 : vector<4x16xf32>
    %938 = arith.addf %933, %937 : vector<4x16xf32>
    %c0_582 = arith.constant 0 : index
    %c0_583 = arith.constant 0 : index
    %c0_584 = arith.constant 0 : index
    %939 = vector.load %arg4[%c0_582, %c0_583, %c0_584] : memref<1x4x256xf32, #tpu.memory_space<vmem>>, vector<1x4x16xf32>
    %940 = vector.shape_cast %939 : vector<1x4x16xf32> to vector<4x16xf32>
    %941 = vector.shape_cast %938 : vector<4x16xf32> to vector<1x4x16xf32>
    tpu.vector_store %arg4[%c0_582, %c0_583, %c0_584], %941 {strides = array<i32>} : memref<1x4x256xf32, #tpu.memory_space<vmem>>, vector<1x4x16xf32>,
    %c0_585 = arith.constant 0 : index
    %c18_586 = arith.constant 18 : index
    %942 = vector.load %arg7[%c0_585, %c18_586] : memref<4x384xf32, #tpu.memory_space<vmem>>, vector<4x16xf32>
    %c0_i32_587 = arith.constant 0 : i32
    %c0_i32_588 = arith.constant 0 : i32
    %c0_i32_589 = arith.constant 0 : i32
    %943 = tpu.memref_slice %arg1[%c0_i32_587, %c0_i32_588, %c0_i32_589] : memref<1x4x256xf32, #tpu.memory_space<vmem>> -> memref<1x4x256xf32, #tpu.memory_space<vmem>>
    %944 = tpu.memref_squeeze %943 : memref<1x4x256xf32, #tpu.memory_space<vmem>> -> memref<4x256xf32, #tpu.memory_space<vmem>>
    %c0_590 = arith.constant 0 : index
    %c16_591 = arith.constant 16 : index
    %945 = vector.load %944[%c0_590, %c16_591] : memref<4x256xf32, #tpu.memory_space<vmem>>, vector<4x16xf32>
    %946 = vector.broadcast %920 : vector<4x1xf32> to vector<4x16xf32>
    %947 = arith.subf %942, %946 : vector<4x16xf32>
    %948 = vector.broadcast %929 : vector<4x1xf32> to vector<4x16xf32>
    %949 = arith.mulf %947, %948 : vector<4x16xf32>
    %950 = arith.addf %945, %949 : vector<4x16xf32>
    %c0_592 = arith.constant 0 : index
    %c0_593 = arith.constant 0 : index
    %c16_594 = arith.constant 16 : index
    %951 = vector.load %arg4[%c0_592, %c0_593, %c16_594] : memref<1x4x256xf32, #tpu.memory_space<vmem>>, vector<1x4x16xf32>
    %952 = vector.shape_cast %951 : vector<1x4x16xf32> to vector<4x16xf32>
    %953 = vector.shape_cast %950 : vector<4x16xf32> to vector<1x4x16xf32>
    tpu.vector_store %arg4[%c0_592, %c0_593, %c16_594], %953 {strides = array<i32>} : memref<1x4x256xf32, #tpu.memory_space<vmem>>, vector<1x4x16xf32>,
    %c0_595 = arith.constant 0 : index
    %c36_596 = arith.constant 36 : index
    %954 = vector.load %arg7[%c0_595, %c36_596] : memref<4x384xf32, #tpu.memory_space<vmem>>, vector<4x16xf32>
    %c0_i32_597 = arith.constant 0 : i32
    %c0_i32_598 = arith.constant 0 : i32
    %c0_i32_599 = arith.constant 0 : i32
    %955 = tpu.memref_slice %arg1[%c0_i32_597, %c0_i32_598, %c0_i32_599] : memref<1x4x256xf32, #tpu.memory_space<vmem>> -> memref<1x4x256xf32, #tpu.memory_space<vmem>>
    %956 = tpu.memref_squeeze %955 : memref<1x4x256xf32, #tpu.memory_space<vmem>> -> memref<4x256xf32, #tpu.memory_space<vmem>>
    %c0_600 = arith.constant 0 : index
    %c32_601 = arith.constant 32 : index
    %957 = vector.load %956[%c0_600, %c32_601] : memref<4x256xf32, #tpu.memory_space<vmem>>, vector<4x16xf32>
    %958 = vector.broadcast %920 : vector<4x1xf32> to vector<4x16xf32>
    %959 = arith.subf %954, %958 : vector<4x16xf32>
    %960 = vector.broadcast %929 : vector<4x1xf32> to vector<4x16xf32>
    %961 = arith.mulf %959, %960 : vector<4x16xf32>
    %962 = arith.addf %957, %961 : vector<4x16xf32>
    %c0_602 = arith.constant 0 : index
    %c0_603 = arith.constant 0 : index
    %c32_604 = arith.constant 32 : index
    %963 = vector.load %arg4[%c0_602, %c0_603, %c32_604] : memref<1x4x256xf32, #tpu.memory_space<vmem>>, vector<1x4x16xf32>
    %964 = vector.shape_cast %963 : vector<1x4x16xf32> to vector<4x16xf32>
    %965 = vector.shape_cast %962 : vector<4x16xf32> to vector<1x4x16xf32>
    tpu.vector_store %arg4[%c0_602, %c0_603, %c32_604], %965 {strides = array<i32>} : memref<1x4x256xf32, #tpu.memory_space<vmem>>, vector<1x4x16xf32>,
    %c0_605 = arith.constant 0 : index
    %c54_606 = arith.constant 54 : index
    %966 = vector.load %arg7[%c0_605, %c54_606] : memref<4x384xf32, #tpu.memory_space<vmem>>, vector<4x16xf32>
    %c0_i32_607 = arith.constant 0 : i32
    %c0_i32_608 = arith.constant 0 : i32
    %c0_i32_609 = arith.constant 0 : i32
    %967 = tpu.memref_slice %arg1[%c0_i32_607, %c0_i32_608, %c0_i32_609] : memref<1x4x256xf32, #tpu.memory_space<vmem>> -> memref<1x4x256xf32, #tpu.memory_space<vmem>>
    %968 = tpu.memref_squeeze %967 : memref<1x4x256xf32, #tpu.memory_space<vmem>> -> memref<4x256xf32, #tpu.memory_space<vmem>>
    %c0_610 = arith.constant 0 : index
    %c48_611 = arith.constant 48 : index
    %969 = vector.load %968[%c0_610, %c48_611] : memref<4x256xf32, #tpu.memory_space<vmem>>, vector<4x16xf32>
    %970 = vector.broadcast %920 : vector<4x1xf32> to vector<4x16xf32>
    %971 = arith.subf %966, %970 : vector<4x16xf32>
    %972 = vector.broadcast %929 : vector<4x1xf32> to vector<4x16xf32>
    %973 = arith.mulf %971, %972 : vector<4x16xf32>
    %974 = arith.addf %969, %973 : vector<4x16xf32>
    %c0_612 = arith.constant 0 : index
    %c0_613 = arith.constant 0 : index
    %c48_614 = arith.constant 48 : index
    %975 = vector.load %arg4[%c0_612, %c0_613, %c48_614] : memref<1x4x256xf32, #tpu.memory_space<vmem>>, vector<1x4x16xf32>
    %976 = vector.shape_cast %975 : vector<1x4x16xf32> to vector<4x16xf32>
    %977 = vector.shape_cast %974 : vector<4x16xf32> to vector<1x4x16xf32>
    tpu.vector_store %arg4[%c0_612, %c0_613, %c48_614], %977 {strides = array<i32>} : memref<1x4x256xf32, #tpu.memory_space<vmem>>, vector<1x4x16xf32>,
    %c0_615 = arith.constant 0 : index
    %c72_616 = arith.constant 72 : index
    %978 = vector.load %arg7[%c0_615, %c72_616] : memref<4x384xf32, #tpu.memory_space<vmem>>, vector<4x16xf32>
    %c0_i32_617 = arith.constant 0 : i32
    %c0_i32_618 = arith.constant 0 : i32
    %c0_i32_619 = arith.constant 0 : i32
    %979 = tpu.memref_slice %arg1[%c0_i32_617, %c0_i32_618, %c0_i32_619] : memref<1x4x256xf32, #tpu.memory_space<vmem>> -> memref<1x4x256xf32, #tpu.memory_space<vmem>>
    %980 = tpu.memref_squeeze %979 : memref<1x4x256xf32, #tpu.memory_space<vmem>> -> memref<4x256xf32, #tpu.memory_space<vmem>>
    %c0_620 = arith.constant 0 : index
    %c64_621 = arith.constant 64 : index
    %981 = vector.load %980[%c0_620, %c64_621] : memref<4x256xf32, #tpu.memory_space<vmem>>, vector<4x16xf32>
    %982 = vector.broadcast %920 : vector<4x1xf32> to vector<4x16xf32>
    %983 = arith.subf %978, %982 : vector<4x16xf32>
    %984 = vector.broadcast %929 : vector<4x1xf32> to vector<4x16xf32>
    %985 = arith.mulf %983, %984 : vector<4x16xf32>
    %986 = arith.addf %981, %985 : vector<4x16xf32>
    %c0_622 = arith.constant 0 : index
    %c0_623 = arith.constant 0 : index
    %c64_624 = arith.constant 64 : index
    %987 = vector.load %arg4[%c0_622, %c0_623, %c64_624] : memref<1x4x256xf32, #tpu.memory_space<vmem>>, vector<1x4x16xf32>
    %988 = vector.shape_cast %987 : vector<1x4x16xf32> to vector<4x16xf32>
    %989 = vector.shape_cast %986 : vector<4x16xf32> to vector<1x4x16xf32>
    tpu.vector_store %arg4[%c0_622, %c0_623, %c64_624], %989 {strides = array<i32>} : memref<1x4x256xf32, #tpu.memory_space<vmem>>, vector<1x4x16xf32>,
    %c0_625 = arith.constant 0 : index
    %c90_626 = arith.constant 90 : index
    %990 = vector.load %arg7[%c0_625, %c90_626] : memref<4x384xf32, #tpu.memory_space<vmem>>, vector<4x16xf32>
    %c0_i32_627 = arith.constant 0 : i32
    %c0_i32_628 = arith.constant 0 : i32
    %c0_i32_629 = arith.constant 0 : i32
    %991 = tpu.memref_slice %arg1[%c0_i32_627, %c0_i32_628, %c0_i32_629] : memref<1x4x256xf32, #tpu.memory_space<vmem>> -> memref<1x4x256xf32, #tpu.memory_space<vmem>>
    %992 = tpu.memref_squeeze %991 : memref<1x4x256xf32, #tpu.memory_space<vmem>> -> memref<4x256xf32, #tpu.memory_space<vmem>>
    %c0_630 = arith.constant 0 : index
    %c80_631 = arith.constant 80 : index
    %993 = vector.load %992[%c0_630, %c80_631] : memref<4x256xf32, #tpu.memory_space<vmem>>, vector<4x16xf32>
    %994 = vector.broadcast %920 : vector<4x1xf32> to vector<4x16xf32>
    %995 = arith.subf %990, %994 : vector<4x16xf32>
    %996 = vector.broadcast %929 : vector<4x1xf32> to vector<4x16xf32>
    %997 = arith.mulf %995, %996 : vector<4x16xf32>
    %998 = arith.addf %993, %997 : vector<4x16xf32>
    %c0_632 = arith.constant 0 : index
    %c0_633 = arith.constant 0 : index
    %c80_634 = arith.constant 80 : index
    %999 = vector.load %arg4[%c0_632, %c0_633, %c80_634] : memref<1x4x256xf32, #tpu.memory_space<vmem>>, vector<1x4x16xf32>
    %1000 = vector.shape_cast %999 : vector<1x4x16xf32> to vector<4x16xf32>
    %1001 = vector.shape_cast %998 : vector<4x16xf32> to vector<1x4x16xf32>
    tpu.vector_store %arg4[%c0_632, %c0_633, %c80_634], %1001 {strides = array<i32>} : memref<1x4x256xf32, #tpu.memory_space<vmem>>, vector<1x4x16xf32>,
    %c0_635 = arith.constant 0 : index
    %c108_636 = arith.constant 108 : index
    %1002 = vector.load %arg7[%c0_635, %c108_636] : memref<4x384xf32, #tpu.memory_space<vmem>>, vector<4x16xf32>
    %c0_i32_637 = arith.constant 0 : i32
    %c0_i32_638 = arith.constant 0 : i32
    %c0_i32_639 = arith.constant 0 : i32
    %1003 = tpu.memref_slice %arg1[%c0_i32_637, %c0_i32_638, %c0_i32_639] : memref<1x4x256xf32, #tpu.memory_space<vmem>> -> memref<1x4x256xf32, #tpu.memory_space<vmem>>
    %1004 = tpu.memref_squeeze %1003 : memref<1x4x256xf32, #tpu.memory_space<vmem>> -> memref<4x256xf32, #tpu.memory_space<vmem>>
    %c0_640 = arith.constant 0 : index
    %c96_641 = arith.constant 96 : index
    %1005 = vector.load %1004[%c0_640, %c96_641] : memref<4x256xf32, #tpu.memory_space<vmem>>, vector<4x16xf32>
    %1006 = vector.broadcast %920 : vector<4x1xf32> to vector<4x16xf32>
    %1007 = arith.subf %1002, %1006 : vector<4x16xf32>
    %1008 = vector.broadcast %929 : vector<4x1xf32> to vector<4x16xf32>
    %1009 = arith.mulf %1007, %1008 : vector<4x16xf32>
    %1010 = arith.addf %1005, %1009 : vector<4x16xf32>
    %c0_642 = arith.constant 0 : index
    %c0_643 = arith.constant 0 : index
    %c96_644 = arith.constant 96 : index
    %1011 = vector.load %arg4[%c0_642, %c0_643, %c96_644] : memref<1x4x256xf32, #tpu.memory_space<vmem>>, vector<1x4x16xf32>
    %1012 = vector.shape_cast %1011 : vector<1x4x16xf32> to vector<4x16xf32>
    %1013 = vector.shape_cast %1010 : vector<4x16xf32> to vector<1x4x16xf32>
    tpu.vector_store %arg4[%c0_642, %c0_643, %c96_644], %1013 {strides = array<i32>} : memref<1x4x256xf32, #tpu.memory_space<vmem>>, vector<1x4x16xf32>,
    %c0_645 = arith.constant 0 : index
    %c126_646 = arith.constant 126 : index
    %1014 = vector.load %arg7[%c0_645, %c126_646] : memref<4x384xf32, #tpu.memory_space<vmem>>, vector<4x16xf32>
    %c0_i32_647 = arith.constant 0 : i32
    %c0_i32_648 = arith.constant 0 : i32
    %c0_i32_649 = arith.constant 0 : i32
    %1015 = tpu.memref_slice %arg1[%c0_i32_647, %c0_i32_648, %c0_i32_649] : memref<1x4x256xf32, #tpu.memory_space<vmem>> -> memref<1x4x256xf32, #tpu.memory_space<vmem>>
    %1016 = tpu.memref_squeeze %1015 : memref<1x4x256xf32, #tpu.memory_space<vmem>> -> memref<4x256xf32, #tpu.memory_space<vmem>>
    %c0_650 = arith.constant 0 : index
    %c112_651 = arith.constant 112 : index
    %1017 = vector.load %1016[%c0_650, %c112_651] : memref<4x256xf32, #tpu.memory_space<vmem>>, vector<4x16xf32>
    %1018 = vector.broadcast %920 : vector<4x1xf32> to vector<4x16xf32>
    %1019 = arith.subf %1014, %1018 : vector<4x16xf32>
    %1020 = vector.broadcast %929 : vector<4x1xf32> to vector<4x16xf32>
    %1021 = arith.mulf %1019, %1020 : vector<4x16xf32>
    %1022 = arith.addf %1017, %1021 : vector<4x16xf32>
    %c0_652 = arith.constant 0 : index
    %c0_653 = arith.constant 0 : index
    %c112_654 = arith.constant 112 : index
    %1023 = vector.load %arg4[%c0_652, %c0_653, %c112_654] : memref<1x4x256xf32, #tpu.memory_space<vmem>>, vector<1x4x16xf32>
    %1024 = vector.shape_cast %1023 : vector<1x4x16xf32> to vector<4x16xf32>
    %1025 = vector.shape_cast %1022 : vector<4x16xf32> to vector<1x4x16xf32>
    tpu.vector_store %arg4[%c0_652, %c0_653, %c112_654], %1025 {strides = array<i32>} : memref<1x4x256xf32, #tpu.memory_space<vmem>>, vector<1x4x16xf32>,
    %c0_655 = arith.constant 0 : index
    %c144_656 = arith.constant 144 : index
    %1026 = vector.load %arg7[%c0_655, %c144_656] : memref<4x384xf32, #tpu.memory_space<vmem>>, vector<4x16xf32>
    %c0_i32_657 = arith.constant 0 : i32
    %c0_i32_658 = arith.constant 0 : i32
    %c0_i32_659 = arith.constant 0 : i32
    %1027 = tpu.memref_slice %arg1[%c0_i32_657, %c0_i32_658, %c0_i32_659] : memref<1x4x256xf32, #tpu.memory_space<vmem>> -> memref<1x4x256xf32, #tpu.memory_space<vmem>>
    %1028 = tpu.memref_squeeze %1027 : memref<1x4x256xf32, #tpu.memory_space<vmem>> -> memref<4x256xf32, #tpu.memory_space<vmem>>
    %c0_660 = arith.constant 0 : index
    %c128_661 = arith.constant 128 : index
    %1029 = vector.load %1028[%c0_660, %c128_661] : memref<4x256xf32, #tpu.memory_space<vmem>>, vector<4x16xf32>
    %1030 = vector.broadcast %920 : vector<4x1xf32> to vector<4x16xf32>
    %1031 = arith.subf %1026, %1030 : vector<4x16xf32>
    %1032 = vector.broadcast %929 : vector<4x1xf32> to vector<4x16xf32>
    %1033 = arith.mulf %1031, %1032 : vector<4x16xf32>
    %1034 = arith.addf %1029, %1033 : vector<4x16xf32>
    %c0_662 = arith.constant 0 : index
    %c0_663 = arith.constant 0 : index
    %c128_664 = arith.constant 128 : index
    %1035 = vector.load %arg4[%c0_662, %c0_663, %c128_664] : memref<1x4x256xf32, #tpu.memory_space<vmem>>, vector<1x4x16xf32>
    %1036 = vector.shape_cast %1035 : vector<1x4x16xf32> to vector<4x16xf32>
    %1037 = vector.shape_cast %1034 : vector<4x16xf32> to vector<1x4x16xf32>
    tpu.vector_store %arg4[%c0_662, %c0_663, %c128_664], %1037 {strides = array<i32>} : memref<1x4x256xf32, #tpu.memory_space<vmem>>, vector<1x4x16xf32>,
    %c0_665 = arith.constant 0 : index
    %c162_666 = arith.constant 162 : index
    %1038 = vector.load %arg7[%c0_665, %c162_666] : memref<4x384xf32, #tpu.memory_space<vmem>>, vector<4x16xf32>
    %c0_i32_667 = arith.constant 0 : i32
    %c0_i32_668 = arith.constant 0 : i32
    %c0_i32_669 = arith.constant 0 : i32
    %1039 = tpu.memref_slice %arg1[%c0_i32_667, %c0_i32_668, %c0_i32_669] : memref<1x4x256xf32, #tpu.memory_space<vmem>> -> memref<1x4x256xf32, #tpu.memory_space<vmem>>
    %1040 = tpu.memref_squeeze %1039 : memref<1x4x256xf32, #tpu.memory_space<vmem>> -> memref<4x256xf32, #tpu.memory_space<vmem>>
    %c0_670 = arith.constant 0 : index
    %c144_671 = arith.constant 144 : index
    %1041 = vector.load %1040[%c0_670, %c144_671] : memref<4x256xf32, #tpu.memory_space<vmem>>, vector<4x16xf32>
    %1042 = vector.broadcast %920 : vector<4x1xf32> to vector<4x16xf32>
    %1043 = arith.subf %1038, %1042 : vector<4x16xf32>
    %1044 = vector.broadcast %929 : vector<4x1xf32> to vector<4x16xf32>
    %1045 = arith.mulf %1043, %1044 : vector<4x16xf32>
    %1046 = arith.addf %1041, %1045 : vector<4x16xf32>
    %c0_672 = arith.constant 0 : index
    %c0_673 = arith.constant 0 : index
    %c144_674 = arith.constant 144 : index
    %1047 = vector.load %arg4[%c0_672, %c0_673, %c144_674] : memref<1x4x256xf32, #tpu.memory_space<vmem>>, vector<1x4x16xf32>
    %1048 = vector.shape_cast %1047 : vector<1x4x16xf32> to vector<4x16xf32>
    %1049 = vector.shape_cast %1046 : vector<4x16xf32> to vector<1x4x16xf32>
    tpu.vector_store %arg4[%c0_672, %c0_673, %c144_674], %1049 {strides = array<i32>} : memref<1x4x256xf32, #tpu.memory_space<vmem>>, vector<1x4x16xf32>,
    %c0_675 = arith.constant 0 : index
    %c180_676 = arith.constant 180 : index
    %1050 = vector.load %arg7[%c0_675, %c180_676] : memref<4x384xf32, #tpu.memory_space<vmem>>, vector<4x16xf32>
    %c0_i32_677 = arith.constant 0 : i32
    %c0_i32_678 = arith.constant 0 : i32
    %c0_i32_679 = arith.constant 0 : i32
    %1051 = tpu.memref_slice %arg1[%c0_i32_677, %c0_i32_678, %c0_i32_679] : memref<1x4x256xf32, #tpu.memory_space<vmem>> -> memref<1x4x256xf32, #tpu.memory_space<vmem>>
    %1052 = tpu.memref_squeeze %1051 : memref<1x4x256xf32, #tpu.memory_space<vmem>> -> memref<4x256xf32, #tpu.memory_space<vmem>>
    %c0_680 = arith.constant 0 : index
    %c160_681 = arith.constant 160 : index
    %1053 = vector.load %1052[%c0_680, %c160_681] : memref<4x256xf32, #tpu.memory_space<vmem>>, vector<4x16xf32>
    %1054 = vector.broadcast %920 : vector<4x1xf32> to vector<4x16xf32>
    %1055 = arith.subf %1050, %1054 : vector<4x16xf32>
    %1056 = vector.broadcast %929 : vector<4x1xf32> to vector<4x16xf32>
    %1057 = arith.mulf %1055, %1056 : vector<4x16xf32>
    %1058 = arith.addf %1053, %1057 : vector<4x16xf32>
    %c0_682 = arith.constant 0 : index
    %c0_683 = arith.constant 0 : index
    %c160_684 = arith.constant 160 : index
    %1059 = vector.load %arg4[%c0_682, %c0_683, %c160_684] : memref<1x4x256xf32, #tpu.memory_space<vmem>>, vector<1x4x16xf32>
    %1060 = vector.shape_cast %1059 : vector<1x4x16xf32> to vector<4x16xf32>
    %1061 = vector.shape_cast %1058 : vector<4x16xf32> to vector<1x4x16xf32>
    tpu.vector_store %arg4[%c0_682, %c0_683, %c160_684], %1061 {strides = array<i32>} : memref<1x4x256xf32, #tpu.memory_space<vmem>>, vector<1x4x16xf32>,
    %c0_685 = arith.constant 0 : index
    %c198_686 = arith.constant 198 : index
    %1062 = vector.load %arg7[%c0_685, %c198_686] : memref<4x384xf32, #tpu.memory_space<vmem>>, vector<4x16xf32>
    %c0_i32_687 = arith.constant 0 : i32
    %c0_i32_688 = arith.constant 0 : i32
    %c0_i32_689 = arith.constant 0 : i32
    %1063 = tpu.memref_slice %arg1[%c0_i32_687, %c0_i32_688, %c0_i32_689] : memref<1x4x256xf32, #tpu.memory_space<vmem>> -> memref<1x4x256xf32, #tpu.memory_space<vmem>>
    %1064 = tpu.memref_squeeze %1063 : memref<1x4x256xf32, #tpu.memory_space<vmem>> -> memref<4x256xf32, #tpu.memory_space<vmem>>
    %c0_690 = arith.constant 0 : index
    %c176_691 = arith.constant 176 : index
    %1065 = vector.load %1064[%c0_690, %c176_691] : memref<4x256xf32, #tpu.memory_space<vmem>>, vector<4x16xf32>
    %1066 = vector.broadcast %920 : vector<4x1xf32> to vector<4x16xf32>
    %1067 = arith.subf %1062, %1066 : vector<4x16xf32>
    %1068 = vector.broadcast %929 : vector<4x1xf32> to vector<4x16xf32>
    %1069 = arith.mulf %1067, %1068 : vector<4x16xf32>
    %1070 = arith.addf %1065, %1069 : vector<4x16xf32>
    %c0_692 = arith.constant 0 : index
    %c0_693 = arith.constant 0 : index
    %c176_694 = arith.constant 176 : index
    %1071 = vector.load %arg4[%c0_692, %c0_693, %c176_694] : memref<1x4x256xf32, #tpu.memory_space<vmem>>, vector<1x4x16xf32>
    %1072 = vector.shape_cast %1071 : vector<1x4x16xf32> to vector<4x16xf32>
    %1073 = vector.shape_cast %1070 : vector<4x16xf32> to vector<1x4x16xf32>
    tpu.vector_store %arg4[%c0_692, %c0_693, %c176_694], %1073 {strides = array<i32>} : memref<1x4x256xf32, #tpu.memory_space<vmem>>, vector<1x4x16xf32>,
    %c0_695 = arith.constant 0 : index
    %c216_696 = arith.constant 216 : index
    %1074 = vector.load %arg7[%c0_695, %c216_696] : memref<4x384xf32, #tpu.memory_space<vmem>>, vector<4x16xf32>
    %c0_i32_697 = arith.constant 0 : i32
    %c0_i32_698 = arith.constant 0 : i32
    %c0_i32_699 = arith.constant 0 : i32
    %1075 = tpu.memref_slice %arg1[%c0_i32_697, %c0_i32_698, %c0_i32_699] : memref<1x4x256xf32, #tpu.memory_space<vmem>> -> memref<1x4x256xf32, #tpu.memory_space<vmem>>
    %1076 = tpu.memref_squeeze %1075 : memref<1x4x256xf32, #tpu.memory_space<vmem>> -> memref<4x256xf32, #tpu.memory_space<vmem>>
    %c0_700 = arith.constant 0 : index
    %c192_701 = arith.constant 192 : index
    %1077 = vector.load %1076[%c0_700, %c192_701] : memref<4x256xf32, #tpu.memory_space<vmem>>, vector<4x16xf32>
    %1078 = vector.broadcast %920 : vector<4x1xf32> to vector<4x16xf32>
    %1079 = arith.subf %1074, %1078 : vector<4x16xf32>
    %1080 = vector.broadcast %929 : vector<4x1xf32> to vector<4x16xf32>
    %1081 = arith.mulf %1079, %1080 : vector<4x16xf32>
    %1082 = arith.addf %1077, %1081 : vector<4x16xf32>
    %c0_702 = arith.constant 0 : index
    %c0_703 = arith.constant 0 : index
    %c192_704 = arith.constant 192 : index
    %1083 = vector.load %arg4[%c0_702, %c0_703, %c192_704] : memref<1x4x256xf32, #tpu.memory_space<vmem>>, vector<1x4x16xf32>
    %1084 = vector.shape_cast %1083 : vector<1x4x16xf32> to vector<4x16xf32>
    %1085 = vector.shape_cast %1082 : vector<4x16xf32> to vector<1x4x16xf32>
    tpu.vector_store %arg4[%c0_702, %c0_703, %c192_704], %1085 {strides = array<i32>} : memref<1x4x256xf32, #tpu.memory_space<vmem>>, vector<1x4x16xf32>,
    %c0_705 = arith.constant 0 : index
    %c234_706 = arith.constant 234 : index
    %1086 = vector.load %arg7[%c0_705, %c234_706] : memref<4x384xf32, #tpu.memory_space<vmem>>, vector<4x16xf32>
    %c0_i32_707 = arith.constant 0 : i32
    %c0_i32_708 = arith.constant 0 : i32
    %c0_i32_709 = arith.constant 0 : i32
    %1087 = tpu.memref_slice %arg1[%c0_i32_707, %c0_i32_708, %c0_i32_709] : memref<1x4x256xf32, #tpu.memory_space<vmem>> -> memref<1x4x256xf32, #tpu.memory_space<vmem>>
    %1088 = tpu.memref_squeeze %1087 : memref<1x4x256xf32, #tpu.memory_space<vmem>> -> memref<4x256xf32, #tpu.memory_space<vmem>>
    %c0_710 = arith.constant 0 : index
    %c208_711 = arith.constant 208 : index
    %1089 = vector.load %1088[%c0_710, %c208_711] : memref<4x256xf32, #tpu.memory_space<vmem>>, vector<4x16xf32>
    %1090 = vector.broadcast %920 : vector<4x1xf32> to vector<4x16xf32>
    %1091 = arith.subf %1086, %1090 : vector<4x16xf32>
    %1092 = vector.broadcast %929 : vector<4x1xf32> to vector<4x16xf32>
    %1093 = arith.mulf %1091, %1092 : vector<4x16xf32>
    %1094 = arith.addf %1089, %1093 : vector<4x16xf32>
    %c0_712 = arith.constant 0 : index
    %c0_713 = arith.constant 0 : index
    %c208_714 = arith.constant 208 : index
    %1095 = vector.load %arg4[%c0_712, %c0_713, %c208_714] : memref<1x4x256xf32, #tpu.memory_space<vmem>>, vector<1x4x16xf32>
    %1096 = vector.shape_cast %1095 : vector<1x4x16xf32> to vector<4x16xf32>
    %1097 = vector.shape_cast %1094 : vector<4x16xf32> to vector<1x4x16xf32>
    tpu.vector_store %arg4[%c0_712, %c0_713, %c208_714], %1097 {strides = array<i32>} : memref<1x4x256xf32, #tpu.memory_space<vmem>>, vector<1x4x16xf32>,
    %c0_715 = arith.constant 0 : index
    %c252_716 = arith.constant 252 : index
    %1098 = vector.load %arg7[%c0_715, %c252_716] : memref<4x384xf32, #tpu.memory_space<vmem>>, vector<4x16xf32>
    %c0_i32_717 = arith.constant 0 : i32
    %c0_i32_718 = arith.constant 0 : i32
    %c0_i32_719 = arith.constant 0 : i32
    %1099 = tpu.memref_slice %arg1[%c0_i32_717, %c0_i32_718, %c0_i32_719] : memref<1x4x256xf32, #tpu.memory_space<vmem>> -> memref<1x4x256xf32, #tpu.memory_space<vmem>>
    %1100 = tpu.memref_squeeze %1099 : memref<1x4x256xf32, #tpu.memory_space<vmem>> -> memref<4x256xf32, #tpu.memory_space<vmem>>
    %c0_720 = arith.constant 0 : index
    %c224_721 = arith.constant 224 : index
    %1101 = vector.load %1100[%c0_720, %c224_721] : memref<4x256xf32, #tpu.memory_space<vmem>>, vector<4x16xf32>
    %1102 = vector.broadcast %920 : vector<4x1xf32> to vector<4x16xf32>
    %1103 = arith.subf %1098, %1102 : vector<4x16xf32>
    %1104 = vector.broadcast %929 : vector<4x1xf32> to vector<4x16xf32>
    %1105 = arith.mulf %1103, %1104 : vector<4x16xf32>
    %1106 = arith.addf %1101, %1105 : vector<4x16xf32>
    %c0_722 = arith.constant 0 : index
    %c0_723 = arith.constant 0 : index
    %c224_724 = arith.constant 224 : index
    %1107 = vector.load %arg4[%c0_722, %c0_723, %c224_724] : memref<1x4x256xf32, #tpu.memory_space<vmem>>, vector<1x4x16xf32>
    %1108 = vector.shape_cast %1107 : vector<1x4x16xf32> to vector<4x16xf32>
    %1109 = vector.shape_cast %1106 : vector<4x16xf32> to vector<1x4x16xf32>
    tpu.vector_store %arg4[%c0_722, %c0_723, %c224_724], %1109 {strides = array<i32>} : memref<1x4x256xf32, #tpu.memory_space<vmem>>, vector<1x4x16xf32>,
    %c0_725 = arith.constant 0 : index
    %c270_726 = arith.constant 270 : index
    %1110 = vector.load %arg7[%c0_725, %c270_726] : memref<4x384xf32, #tpu.memory_space<vmem>>, vector<4x16xf32>
    %c0_i32_727 = arith.constant 0 : i32
    %c0_i32_728 = arith.constant 0 : i32
    %c0_i32_729 = arith.constant 0 : i32
    %1111 = tpu.memref_slice %arg1[%c0_i32_727, %c0_i32_728, %c0_i32_729] : memref<1x4x256xf32, #tpu.memory_space<vmem>> -> memref<1x4x256xf32, #tpu.memory_space<vmem>>
    %1112 = tpu.memref_squeeze %1111 : memref<1x4x256xf32, #tpu.memory_space<vmem>> -> memref<4x256xf32, #tpu.memory_space<vmem>>
    %c0_730 = arith.constant 0 : index
    %c240_731 = arith.constant 240 : index
    %1113 = vector.load %1112[%c0_730, %c240_731] : memref<4x256xf32, #tpu.memory_space<vmem>>, vector<4x16xf32>
    %1114 = vector.broadcast %920 : vector<4x1xf32> to vector<4x16xf32>
    %1115 = arith.subf %1110, %1114 : vector<4x16xf32>
    %1116 = vector.broadcast %929 : vector<4x1xf32> to vector<4x16xf32>
    %1117 = arith.mulf %1115, %1116 : vector<4x16xf32>
    %1118 = arith.addf %1113, %1117 : vector<4x16xf32>
    %c0_732 = arith.constant 0 : index
    %c0_733 = arith.constant 0 : index
    %c240_734 = arith.constant 240 : index
    %1119 = vector.load %arg4[%c0_732, %c0_733, %c240_734] : memref<1x4x256xf32, #tpu.memory_space<vmem>>, vector<1x4x16xf32>
    %1120 = vector.shape_cast %1119 : vector<1x4x16xf32> to vector<4x16xf32>
    %1121 = vector.shape_cast %1118 : vector<4x16xf32> to vector<1x4x16xf32>
    tpu.vector_store %arg4[%c0_732, %c0_733, %c240_734], %1121 {strides = array<i32>} : memref<1x4x256xf32, #tpu.memory_space<vmem>>, vector<1x4x16xf32>,
    return
  }
  func.func @transform_0(%arg0: i32) -> (i32, i32, i32) {
    %c0_i32 = arith.constant 0 : i32
    %c0_i32_0 = arith.constant 0 : i32
    %c0_i32_1 = arith.constant 0 : i32
    return %arg0, %c0_i32, %c0_i32_0 : i32, i32, i32
  }
  func.func @transform_1(%arg0: i32) -> (i32, i32, i32) {
    %c0_i32 = arith.constant 0 : i32
    %c0_i32_0 = arith.constant 0 : i32
    %c0_i32_1 = arith.constant 0 : i32
    %c0_i32_2 = arith.constant 0 : i32
    return %c0_i32, %c0_i32_0, %c0_i32_1 : i32, i32, i32
  }
  func.func @transform_2(%arg0: i32) -> (i32, i32, i32) {
    %c0_i32 = arith.constant 0 : i32
    %c0_i32_0 = arith.constant 0 : i32
    %c0_i32_1 = arith.constant 0 : i32
    %c0_i32_2 = arith.constant 0 : i32
    return %c0_i32, %c0_i32_0, %c0_i32_1 : i32, i32, i32
  }
  func.func @transform_3(%arg0: i32) -> (i32, i32, i32) {
    %c0_i32 = arith.constant 0 : i32
    %c0_i32_0 = arith.constant 0 : i32
    %c0_i32_1 = arith.constant 0 : i32
    return %arg0, %c0_i32, %c0_i32_0 : i32, i32, i32
  }
}

</mosaic_0001>

<bundles_post_ra>
// kernel: resnet_forward.1
= control target key start
LH: loop header
LB: loop body
LE: loop exit
PB: predicated region body
PF: predicated region fallthrough
CT: control target
= control target key end

     0   :  { %s6614_s12 = smov 0   ;;  %s7725_s0 = inlined_call_operand.vmem [shape: f32[2,4,256], index: 0, kind: input, shape index: {}]   ;;  %s7726_s1 = inlined_call_operand.vmem [shape: f32[9,4,4], index: 1, kind: input, shape index: {}]   ;;  %s7727_s2 = inlined_call_operand.vmem [shape: f32[9,4,4], index: 2, kind: input, shape index: {}]   ;;  %s7728_s3 = inlined_call_operand.vmem [shape: f32[2,4,256], index: 3, kind: output, shape index: {}]  }
   0x1 LB: > { %s5869_s13 = sadd.s32 4294967295, %s6516_s12   ;;  %p5873_p0 = scmp.ge.s32.totalorder %s6516_s12, 1  ;;  %s6516_s12 = sphi %s6614_s12, %s13_s12  }
   0x2   : > { %p137_p1 = scmp.lt.s32.totalorder %s6516_s12, 3 }
   0x4   : > { %p138_p2 = pnand %p5873_p0, %p137_p1 }
   0x5   : > { %p161_p3 = scmp.lt.s32.totalorder (!%p138_p2), %s5869_s13, 1  ;;  %s6518_s18 = smov (!%p138_p2), 3  }
   0x6   : > { %141 = sbr.rel (%p138_p2) target bundleno = 1960 (0x7a8), region = 32  ;;  %s7781_s19 = smov (!%p138_p2), 127  }
   0x7   : > { %s6520_s20 = smov (!%p138_p2), 111   ;;  %s6521_s21 = smov (!%p138_p2), 1  }
   0x8   : > { %s6522_s22 = smov (!%p138_p2), 115   ;;  %s6523_s23 = smov (!%p138_p2), 113  }
   0x9   : > { %s6524_s24 = smov (!%p138_p2), 97   ;;  %s6525_s25 = smov (!%p138_p2), 95  }
   0xa   : > { %s6526_s26 = smov (!%p138_p2), 79   ;;  %s6527_s27 = smov (!%p138_p2), 99  }
   0xb   : > { %s7969_s13 = smov (!%p161_p3, %s5869_s13), 1  ;;  %s6528_s28 = smov 31   ;;  %vm7774_vm0 = vcmask 7168   ;;  %vm7773_vm1 = vcmask 138240   ;;  %v6548_v48 = vmov 0.0   ;;  %vm7761_vm2 = vcmask 142336  }
   0xc   : > { %s7729_s14 = sshll.u32 %s7969_s13, 3  ;;  %s6529_s29 = smov 81   ;;  %6151 = vmatprep.subr.mxu1 %v6548_v48  ;;  %6146 = vmatprep.subr.mxu0 %v6548_v48  ;;  %vm7760_vm3 = vcmask 289936   ;;  %vm7740_vm4 = vcmask 437536   ;;  %vm7739_vm5 = vcmask 585136   ;;  %vm7738_vm6 = vcmask 732736  }
   0xd   : > { %s6630_s17 = scalar_lea.vmem %s7725_s0, %s7729_s14  ;;  %s6530_s30 = smov 83   ;;  %vm7737_vm7 = vcmask 880336   ;;  %vm322_vm8 = vcmask 1044464   ;;  %vm323_vm9 = vcmask 130052   ;;  %vm7772_vm10 = vcmask 1031168  }
   0xe   : > { %v188_v0 = vld [vmem:[%s6630_s17] sm:$0xf]  ;;  %s6531_s4 = smov 33   ;;  %s6532_s5 = smov 65   ;;  %v345_v8 = vld [vmem:[%s6630_s17 + $0x4] sm:$0xf]  ;;  %vm6759_vm12 = vmor %vm323_vm9, %vm322_vm8 }
   0xf   : > { %196 = vrot.lane.b32.xlu1 %v188_v0, %s6518_s18  ;;  %190 = vrot.lane.b32.xlu0 %v188_v0, %s7781_s19  ;;  %v207_v1 = vld [vmem:[%s6630_s17] sm:$0xf]  ;;  %s6533_s6 = smov 63   ;;  %s6534_s7 = smov 67   ;;  %v364_v9 = vld [vmem:[%s6630_s17 + $0x4] sm:$0xf] }
  0x10   : > { %v226_v2 = vld [vmem:[%s6630_s17] sm:$0xf]  ;;  %s6535_s8 = smov 35   ;;  %s6536_s9 = smov 49   ;;  %v383_v10 = vld [vmem:[%s6630_s17 + $0x4] sm:$0xf] }
  0x11   : > { %v245_v3 = vld [vmem:[%s6630_s17] sm:$0xf]  ;;  %s6537_s10 = smov 47   ;;  %s6538_s11 = smov 15   ;;  %v440_v11 = vld [vmem:[%s6630_s17 + $0x4] sm:$0xf] }
  0x12   : > { %v302_v4 = vld [vmem:[%s6630_s17] sm:$0xf]  ;;  %s6539_s15 = smov 51   ;;  %s6540_s16 = smov 19   ;;  %v402_v12 = vld [vmem:[%s6630_s17 + $0x4] sm:$0xf] }
  0x13   : > { %209 = vrot.lane.b32.xlu1 %v207_v1, %s6520_s20  ;;  %193 = vrot.lane.b32.xlu0 %v188_v0, %s6521_s21  ;;  %v264_v5 = vld [vmem:[%s6630_s17] sm:$0xf]  ;;  %s6541_s14 = smov 17   ;;  %v421_v13 = vld [vmem:[%s6630_s17 + $0x4] sm:$0xf]  ;;  %vm7735_vm11 = vcmask 1027936  }
  0x14   : > { %v283_v6 = vld [vmem:[%s6630_s17] sm:$0xf]  ;;  %v464_v14 = vld [vmem:[%s6630_s17 + $0x4] sm:$0xf]  ;;  %vm7736_vm13 = vcmask 273536   ;;  %vm7775_vm14 = vcmask 1043456  }
  0x15   : > { %v326_v7 = vld [vmem:[%s6630_s17] sm:$0xf]  ;;  %v483_v15 = vld [vmem:[%s6630_s17 + $0x4] sm:$0xf]  ;;  %vm7759_vm15 = vcmask 421136   ;;  %vm7748_vm8 = vcmask 568736  }
  0x16   : > { %v502_v16 = vld [vmem:[%s6630_s17 + $0x4] sm:$0xf]  ;;  %v171_v17 = vld [vmem:[%s6630_s17] sm:$0xf]  ;;  %vm7741_vm9 = vcmask 716336  }
  0x17   : > { %215 = vrot.lane.b32.xlu1 %v207_v1, %s6522_s22  ;;  %212 = vrot.lane.b32.xlu0 %v207_v1, %s6523_s23 }
  0x1b   : > { %231 = vrot.lane.b32.xlu1 %v226_v2, %s6524_s24  ;;  %228 = vrot.lane.b32.xlu0 %v226_v2, %s6525_s25 }
  0x1f   : > { %247 = vrot.lane.b32.xlu1 %v245_v3, %s6526_s26  ;;  %234 = vrot.lane.b32.xlu0 %v226_v2, %s6527_s27 }
  0x23   : > { %304 = vrot.lane.b32.xlu1 %v302_v4, %s6528_s28  ;;  %250 = vrot.lane.b32.xlu0 %v245_v3, %s6529_s29 }
  0x27   : > { %253 = vrot.lane.b32.xlu1 %v245_v3, %s6530_s30  ;;  %307 = vrot.lane.b32.xlu0 %v302_v4, %s6531_s4 }
  0x2b   : > { %269 = vrot.lane.b32.xlu1 %v264_v5, %s6532_s5  ;;  %266 = vrot.lane.b32.xlu0 %v264_v5, %s6533_s6 }
  0x2f   : > { %272 = vrot.lane.b32.xlu1 %v264_v5, %s6534_s7  ;;  %310 = vrot.lane.b32.xlu0 %v302_v4, %s6535_s8 }
  0x33   : > { %288 = vrot.lane.b32.xlu1 %v283_v6, %s6536_s9  ;;  %285 = vrot.lane.b32.xlu0 %v283_v6, %s6537_s10 }
  0x37   : > { %328 = vrot.lane.b32.xlu1 %v326_v7, %s6538_s11  ;;  %291 = vrot.lane.b32.xlu0 %v283_v6, %s6539_s15 }
  0x3b   : > { %334 = vrot.lane.b32.xlu1 %v326_v7, %s6540_s16  ;;  %331 = vrot.lane.b32.xlu0 %v326_v7, %s6541_s14 }
  0x3f   : > { %350 = vrot.lane.b32.xlu1 %v345_v8, %s6521_s21  ;;  %347 = vrot.lane.b32.xlu0 %v345_v8, %s7781_s19 }
  0x43   : > { %366 = vrot.lane.b32.xlu1 %v364_v9, %s6520_s20  ;;  %353 = vrot.lane.b32.xlu0 %v345_v8, %s6518_s18 }
  0x47   : > { %372 = vrot.lane.b32.xlu1 %v364_v9, %s6522_s22  ;;  %369 = vrot.lane.b32.xlu0 %v364_v9, %s6523_s23 }
  0x4b   : > { %388 = vrot.lane.b32.xlu1 %v383_v10, %s6524_s24  ;;  %385 = vrot.lane.b32.xlu0 %v383_v10, %s6525_s25 }
  0x4f   : > { %445 = vrot.lane.b32.xlu1 %v440_v11, %s6536_s9  ;;  %442 = vrot.lane.b32.xlu0 %v440_v11, %s6537_s10  ;;  %s7753_s9 = smov 70   ;;  %s7730_s10 = smov 124  }
  0x53   : > { %404 = vrot.lane.b32.xlu1 %v402_v12, %s6526_s26  ;;  %391 = vrot.lane.b32.xlu0 %v383_v10, %s6527_s27  ;;  %s6543_s27 = smov 36  }
  0x57   : > { %448 = vrot.lane.b32.xlu1 %v440_v11, %s6539_s15  ;;  %407 = vrot.lane.b32.xlu0 %v402_v12, %s6529_s29  ;;  %s6545_s29 = smov 72   ;;  %s7733_s15 = smov 106  }
  0x5b   : > { %410 = vrot.lane.b32.xlu0 %v402_v12, %s6530_s30  ;;  %423 = vrot.lane.b32.xlu1 %v421_v13, %s6533_s6  ;;  %s6546_s30 = smov 126   ;;  %s7732_s6 = smov 16  }
  0x5f   : > { %426 = vrot.lane.b32.xlu0 %v421_v13, %s6532_s5  ;;  %429 = vrot.lane.b32.xlu1 %v421_v13, %s6534_s7  ;;  %s7784_s5 = smov 108   ;;  %s7783_s7 = smov 34  }
  0x63   : > { %466 = vrot.lane.b32.xlu0 %v464_v14, %s6528_s28  ;;  %469 = vrot.lane.b32.xlu1 %v464_v14, %s6531_s4 }
  0x67   : > { %472 = vrot.lane.b32.xlu0 %v464_v14, %s6535_s8  ;;  %485 = vrot.lane.b32.xlu1 %v483_v15, %s6538_s11  ;;  %s7750_s11 = smov 88  }
  0x6b   : > { %488 = vrot.lane.b32.xlu0 %v483_v15, %s6541_s14  ;;  %491 = vrot.lane.b32.xlu1 %v483_v15, %s6540_s16  ;;  %s6542_s14 = smov 18  }
  0x6f   : > { %504 = vrot.lane.b32.xlu0 %v502_v16, %s6528_s28  ;;  %507 = vrot.lane.b32.xlu1 %v502_v16, %s6531_s4  ;;  %s6544_s28 = smov 54   ;;  %s7786_s4 = smov 90  }
  0x73   : > { %510 = vrot.lane.b32.xlu0 %v502_v16, %s6535_s8  ;;  %173 = vrot.lane.b32.xlu1 %v171_v17, %s6520_s20  ;;  %s7756_s8 = smov 52  }
  0x77   : > { %176 = vrot.lane.b32.xlu0 %v171_v17, %s6523_s23  ;;  %179 = vrot.lane.b32.xlu1 %v171_v17, %s6522_s22 }
  0x81   : > { %v197_v18 = vpop.permute.xlu1 %196  ;;  %v191_v19 = vpop.permute.xlu0 %190 }
  0x85   : > { %v210_v20 = vpop.permute.xlu1 %209  ;;  %v194_v21 = vpop.permute.xlu0 %193 }
  0x86   : > { %v199_v22 = vsel %vm7774_vm0, %v191_v19, %v194_v21 }
  0x87   : > { %v200_v23 = vsel %vm7773_vm1, %v199_v22, %v197_v18 }
  0x88   : > { %202 = vrot.lane.b32.xlu0 %v200_v23, %s6542_s14 }
  0x89   : > { %v216_v24 = vpop.permute.xlu1 %215  ;;  %v213_v25 = vpop.permute.xlu0 %212 }
  0x8a   : > { %v218_v26 = vsel %vm7774_vm0, %v210_v20, %v213_v25 }
  0x8b   : > { %v219_v27 = vsel %vm7773_vm1, %v218_v26, %v216_v24 }
  0x8c   : > { %221 = vrot.lane.b32.xlu1 %v219_v27, %s6543_s27 }
  0x8d   : > { %v232_v28 = vpop.permute.xlu1 %231  ;;  %v229_v29 = vpop.permute.xlu0 %228 }
  0x8e   : > { %v237_v30 = vsel %vm7774_vm0, %v229_v29, %v232_v28 }
  0x91   : > { %v248_v31 = vpop.permute.xlu1 %247  ;;  %v235_v32 = vpop.permute.xlu0 %234 }
  0x92   : > { %v238_v33 = vsel %vm7773_vm1, %v237_v30, %v235_v32 }
  0x93   : > { %240 = vrot.lane.b32.xlu0 %v238_v33, %s6544_s28 }
  0x95   : > { %v305_v34 = vpop.permute.xlu1 %304  ;;  %v251_v35 = vpop.permute.xlu0 %250 }
  0x96   : > { %v256_v36 = vsel %vm7774_vm0, %v248_v31, %v251_v35 }
  0x99   : > { %v254_v37 = vpop.permute.xlu1 %253  ;;  %v308_v38 = vpop.permute.xlu0 %307 }
  0x9a   : > { %v257_v39 = vsel %vm7773_vm1, %v256_v36, %v254_v37  ;;  %v313_v42 = vsel %vm7774_vm0, %v305_v34, %v308_v38 }
  0x9b   : > { %259 = vrot.lane.b32.xlu1 %v257_v39, %s6545_s29 }
  0x9d   : > { %v270_v40 = vpop.permute.xlu1 %269  ;;  %v267_v41 = vpop.permute.xlu0 %266 }
  0x9e   : > { %v275_v43 = vsel %vm7774_vm0, %v267_v41, %v270_v40 }
  0xa1   : > { %v273_v44 = vpop.permute.xlu1 %272  ;;  %v311_v45 = vpop.permute.xlu0 %310 }
  0xa2   : > { %v314_v46 = vsel %vm7773_vm1, %v313_v42, %v311_v45  ;;  %v276_v47 = vsel %vm7773_vm1, %v275_v43, %v273_v44 }
  0xa3   : > { %316 = vrot.lane.b32.xlu0 %v314_v46, %s6546_s30  ;;  %278 = vrot.lane.b32.xlu1 %v276_v47, %s7786_s4 }
  0xa5   : > { %v289_v49 = vpop.permute.xlu1 %288  ;;  %v286_v50 = vpop.permute.xlu0 %285 }
  0xa6   : > { %v294_v51 = vsel %vm7774_vm0, %v286_v50, %v289_v49 }
  0xa9   : > { %v329_v52 = vpop.permute.xlu1 %328  ;;  %v292_v53 = vpop.permute.xlu0 %291 }
  0xaa   : > { %v295_v54 = vsel %vm7773_vm1, %v294_v51, %v292_v53 }
  0xab   : > { %297 = vrot.lane.b32.xlu0 %v295_v54, %s7784_s5 }
  0xad   : > { %v335_v55 = vpop.permute.xlu1 %334  ;;  %v332_v56 = vpop.permute.xlu0 %331 }
  0xae   : > { %v337_v57 = vsel %vm7774_vm0, %v329_v52, %v332_v56 }
  0xaf   : > { %v338_v58 = vsel %vm7773_vm1, %v337_v57, %v335_v55 }
  0xb0   : > { %340 = vrot.lane.b32.xlu1 %v338_v58, %s7732_s6  ;;  %s7744_s6 = smov 32  }
  0xb1   : > { %v351_v59 = vpop.permute.xlu1 %350  ;;  %v348_v60 = vpop.permute.xlu0 %347 }
  0xb2   : > { %v356_v61 = vsel %vm7774_vm0, %v348_v60, %v351_v59 }
  0xb5   : > { %v367_v62 = vpop.permute.xlu1 %366  ;;  %v354_v63 = vpop.permute.xlu0 %353 }
  0xb6   : > { %v357_v0 = vsel %vm7773_vm1, %v356_v61, %v354_v63 }
  0xb7   : > { %359 = vrot.lane.b32.xlu0 %v357_v0, %s7783_s7  ;;  %v7790_v0 = vmov 0  ;;  %s6574_s7 = smov 59  }
  0xb9   : > { %v373_v1 = vpop.permute.xlu1 %372  ;;  %v370_v2 = vpop.permute.xlu0 %369 }
  0xba   : > { %v375_v3 = vsel %vm7774_vm0, %v367_v62, %v370_v2 }
  0xbb   : > { %v376_v4 = vsel %vm7773_vm1, %v375_v3, %v373_v1 }
  0xbc   : > { %378 = vrot.lane.b32.xlu1 %v376_v4, %s7756_s8  ;;  %v525_v4 = vld [vmem:[%s7726_s1] sm:$0xf]  ;;  %s6568_s8 = smov 75  }
  0xbd   : > { %v389_v5 = vpop.permute.xlu1 %388  ;;  %v386_v6 = vpop.permute.xlu0 %385 }
  0xbe   : > { %v394_v9 = vsel %vm7774_vm0, %v386_v6, %v389_v5 }
  0xc1   : > { %v446_v7 = vpop.permute.xlu1 %445  ;;  %v443_v8 = vpop.permute.xlu0 %442 }
  0xc2   : > { %v451_v13 = vsel %vm7774_vm0, %v443_v8, %v446_v7  ;;  %v7792_v8 = vmov 0 }
  0xc5   : > { %v405_v10 = vpop.permute.xlu1 %404  ;;  %v392_v11 = vpop.permute.xlu0 %391 }
  0xc6   : > { %v395_v12 = vsel %vm7773_vm1, %v394_v9, %v392_v11 }
  0xc7   : > { %397 = vrot.lane.b32.xlu0 %v395_v12, %s7753_s9  ;;  %s6566_s9 = smov 93  }
  0xc9   : > { %v449_v14 = vpop.permute.xlu1 %448  ;;  %v408_v15 = vpop.permute.xlu0 %407 }
  0xca   : > { %v452_v16 = vsel %vm7773_vm1, %v451_v13, %v449_v14  ;;  %v413_v17 = vsel %vm7774_vm0, %v405_v10, %v408_v15 }
  0xcb   : > { %454 = vrot.lane.b32.xlu1 %v452_v16, %s7730_s10  ;;  %s7749_s10 = smov 14   ;;  %v5878_v16 = vld [vmem:[%s7726_s1 + $0x4] sm:$0xf] }
  0xcd   : > { %v411_v18 = vpop.permute.xlu0 %410  ;;  %v424_v19 = vpop.permute.xlu1 %423 }
  0xce   : > { %v414_v20 = vsel %vm7773_vm1, %v413_v17, %v411_v18 }
  0xcf   : > { %416 = vrot.lane.b32.xlu0 %v414_v20, %s7750_s11  ;;  %s7779_s11 = smov 91   ;;  %v5883_v20 = vld [vmem:[%s7726_s1 + $0x8] sm:$0xf] }
  0xd1   : > { %v427_v21 = vpop.permute.xlu0 %426  ;;  %v430_v22 = vpop.permute.xlu1 %429 }
  0xd2   : > { %v432_v23 = vsel %vm7774_vm0, %v424_v19, %v427_v21 }
  0xd3   : > { %v433_v24 = vsel %vm7773_vm1, %v432_v23, %v430_v22 }
  0xd4   : > { %435 = vrot.lane.b32.xlu1 %v433_v24, %s7733_s15  ;;  %s7743_s15 = smov 50   ;;  %v5886_v24 = vld [vmem:[%s7726_s1 + $0xc] sm:$0xf] }
  0xd5   : > { %v467_v25 = vpop.permute.xlu0 %466  ;;  %v470_v26 = vpop.permute.xlu1 %469 }
  0xd6   : > { %v475_v27 = vsel %vm7774_vm0, %v467_v25, %v470_v26 }
  0xd9   : > { %v473_v28 = vpop.permute.xlu0 %472  ;;  %v486_v29 = vpop.permute.xlu1 %485 }
  0xda   : > { %v476_v30 = vsel %vm7773_vm1, %v475_v27, %v473_v28  ;;  %v5889_v28 = vld [vmem:[%s7726_s1 + $0x10] sm:$0xf] }
  0xdb   : > { %478 = vrot.lane.b32.xlu0 %v476_v30, %s7749_s10  ;;  %s7754_s10 = smov 92  }
  0xdd   : > { %v489_v31 = vpop.permute.xlu0 %488  ;;  %v492_v32 = vpop.permute.xlu1 %491 }
  0xde   : > { %v494_v33 = vsel %vm7774_vm0, %v486_v29, %v489_v31 }
  0xdf   : > { %v495_v34 = vsel %vm7773_vm1, %v494_v33, %v492_v32  ;;  %v5892_v32 = vld [vmem:[%s7726_s1 + $0x14] sm:$0xf] }
  0xe0   : > { %497 = vrot.lane.b32.xlu1 %v495_v34, %s7744_s6  ;;  %s7751_s6 = smov 110  }
  0xe1   : > { %v505_v35 = vpop.permute.xlu0 %504  ;;  %v508_v36 = vpop.permute.xlu1 %507 }
  0xe2   : > { %v513_v37 = vsel %vm7774_vm0, %v505_v35, %v508_v36  ;;  %v5895_v36 = vld [vmem:[%s7726_s1 + $0x18] sm:$0xf] }
  0xe5   : > { %v511_v38 = vpop.permute.xlu0 %510  ;;  %v174_v39 = vpop.permute.xlu1 %173 }
  0xe6   : > { %v514_v40 = vsel %vm7773_vm1, %v513_v37, %v511_v38 }
  0xe7   : > { %516 = vrot.lane.b32.xlu0 %v514_v40, %s7743_s15  ;;  %s6562_s15 = smov 109   ;;  %v5898_v40 = vld [vmem:[%s7726_s1 + $0x1c] sm:$0xf] }
  0xe9   : > { %v177_v41 = vpop.permute.xlu0 %176  ;;  %v180_v42 = vpop.permute.xlu1 %179 }
  0xea   : > { %v183_v43 = vsel %vm7774_vm0, %v174_v39, %v177_v41 }
  0xeb   : > { %v185_v44 = vsel %vm7773_vm1, %v183_v43, %v180_v42 }
  0xec   : > { %187 = vst.msk [vmem:[#allocation2] sm:$0xf] %vm7761_vm2, %v185_v44  ;;  %vm7765_vm2 = vcmask 736256   ;;  %v5901_v44 = vld [vmem:[%s7726_s1 + $0x20] sm:$0xf] }
  0xfa   : > { %v203_v45 = vpop.permute.xlu0 %202 }
  0xfb   : > { %206 = vst.msk [vmem:[#allocation2] sm:$0xf] %vm7760_vm3, %v203_v45  ;;  %vm7762_vm3 = vcmask 744448  }
  0xfe   : > { %v222_v46 = vpop.permute.xlu1 %221 }
  0xff   : > { %225 = vst.msk [vmem:[#allocation2] sm:$0xf] %vm7740_vm4, %v222_v46 }
 0x105   : > { %v241_v47 = vpop.permute.xlu0 %240 }
 0x106   : > { %244 = vst.msk [vmem:[#allocation2] sm:$0xf] %vm7739_vm5, %v241_v47  ;;  %vm7745_vm5 = vcmask 1011536  }
 0x10d   : > { %v260_v49 = vpop.permute.xlu1 %259 }
 0x10e   : > { %263 = vst.msk [vmem:[#allocation2] sm:$0xf] %vm7738_vm6, %v260_v49  ;;  %vm7746_vm6 = vcmask 1014784  }
 0x115   : > { %v279_v50 = vpop.permute.xlu1 %278  ;;  %v317_v51 = vpop.permute.xlu0 %316 }
 0x116   : > { %282 = vst.msk [vmem:[#allocation2] sm:$0xf] %vm7737_vm7, %v279_v50  ;;  %v318_v52 = vrot.slane %v317_v51, 4  ;;  %vm461_vm7 = vcmask 113668   ;;  %v5904_v50 = vld [vmem:[%s7726_s1 + $0x4] sm:$0xf] }
 0x118   : > { %v320_v55 = vsel %vm7772_vm10, %v318_v52, %v317_v51  ;;  %v1345_v52 = vld [vmem:[%s7726_s1] sm:$0xf] }
 0x11d   : > { %v298_v54 = vpop.permute.xlu0 %297 }
 0x11e   : > { %301 = vst.msk [vmem:[#allocation2] sm:$0xf] %vm7735_vm11, %v298_v54  ;;  %vm7742_vm11 = vcmask 863936  }
 0x11f   : > { %325 = vst.msk [vmem:[#allocation2] sm:$0xff] %vm6759_vm12, %v320_v55 }
 0x122   : > { %v341_v56 = vpop.permute.xlu1 %340 }
 0x123   : > { %344 = vst.msk [vmem:[#allocation2 + $0x4] sm:$0xf] %vm7736_vm13, %v341_v56  ;;  %vm460_vm13 = vcmask 1044448   ;;  %v5909_v56 = vld [vmem:[%s7726_s1 + $0x8] sm:$0xf] }
 0x124   : > { %vm6774_vm4 = vmor %vm461_vm7, %vm460_vm13  ;;  %vm7771_vm7 = vcmask 31744   ;;  %vm7758_vm13 = vcmask 404736  }
 0x125   : > { %v7791_v0 = vsel %vm6774_vm4, 4294967295, %v7790_v0 }
 0x126   : > { %v526_v57 = vld [vmem:[#allocation2] sm:$0xf] }
 0x127   : > { %6152 = vmatpush3.msk.msra.mxu1 %vm7775_vm14, %v526_v57 }
 0x128   : > { %6161 = vmatprep.subr.mxu1 %v6548_v48 }
 0x129   : > { %v360_v58 = vpop.permute.xlu0 %359 }
 0x12a   : > { %363 = vst.msk [vmem:[#allocation2 + $0x4] sm:$0xf] %vm7759_vm15, %v360_v58  ;;  %vm7763_vm15 = vcmask 752640  }
 0x12e   : > { %v379_v59 = vpop.permute.xlu1 %378 }
 0x12f   : > { %382 = vst.msk [vmem:[#allocation2 + $0x4] sm:$0xf] %vm7748_vm8, %v379_v59 }
 0x139   : > { %v398_v60 = vpop.permute.xlu0 %397 }
 0x13a   : > { %401 = vst.msk [vmem:[#allocation2 + $0x4] sm:$0xf] %vm7741_vm9, %v398_v60  ;;  %vm7769_vm9 = vmmov 0   ;;  %v5912_v60 = vld [vmem:[%s7726_s1 + $0xc] sm:$0xf] }
 0x13b   : > { %6148 = vmatprep.mubr.msk.f32.mxu0 %vm7769_vm9, %v6548_v48  ;;  %6153 = vmatprep.mubr.msk.f32.mxu1 %vm7769_vm9, %v6548_v48 }
 0x13c   : > { %6154 = vmatmul.mubr.msk.f32.vlgmr.msra.gmra.mxu1 %vm7771_vm7, %v525_v4 }
 0x13d   : > { %v455_v61 = vpop.permute.xlu1 %454  ;;  %6163 = vmatprep.mubr.msk.f32.mxu1 %vm7769_vm9, %v6548_v48 }
 0x13e   : > { %v456_v63 = vrot.slane %v455_v61, 4 }
 0x140   : > { %v458_v2 = vsel %vm7746_vm6, %v456_v63, %v455_v61  ;;  %vm522_vm6 = vcmask 310276  }
 0x141   : > { %v417_v62 = vpop.permute.xlu0 %416 }
 0x142   : > { %420 = vst.msk [vmem:[#allocation2 + $0x4] sm:$0xf] %vm7742_vm11, %v417_v62  ;;  %vm7747_vm11 = vcmask 257136  }
 0x146   : > { %v436_v1 = vpop.permute.xlu1 %435 }
 0x147   : > { %439 = vst.msk [vmem:[#allocation2 + $0x4] sm:$0xf] %vm7745_vm5, %v436_v1  ;;  %vm521_vm5 = vcmask 1044000   ;;  %v5915_v1 = vld [vmem:[%s7726_s1 + $0x10] sm:$0xf] }
 0x148   : > { %463 = vst.msk [vmem:[#allocation2 + $0x4] sm:$0xff] %vm6774_vm4, %v458_v2  ;;  %vm6799_vm8 = vmor %vm522_vm6, %vm521_vm5  ;;  %vm7768_vm5 = vcmask 1039360   ;;  %vm7767_vm6 = vcmask 900096  }
 0x149   : > { %v7793_v8 = vsel %vm6799_vm8, 4294967295, %v7792_v8 }
 0x14d   : > { %v479_v3 = vpop.permute.xlu0 %478 }
 0x14e   : > { %482 = vst.msk [vmem:[#allocation2 + $0x8] sm:$0xf] %vm7747_vm11, %v479_v3  ;;  %vm7757_vm11 = vcmask 552336  }
 0x14f   : > { %v529_v5 = vld [vmem:[#allocation2] sm:$0xff] }
 0x150   : > { %532 = vrot.lane.b32.xlu1 %v529_v5, %s7781_s19  ;;  %v531_v6 = vcombine.high %v529_v5, %v529_v5  ;;  %v1346_v47 = vld [vmem:[#allocation2 + $0x4] sm:$0xf] }
 0x152   : > { %534 = vrot.lane.b32.xlu0 %v531_v6, %s7781_s19  ;;  %v498_v7 = vpop.permute.xlu1 %497 }
 0x153   : > { %501 = vst.msk [vmem:[#allocation2 + $0x8] sm:$0xf] %vm7758_vm13, %v498_v7  ;;  %vm7764_vm13 = vcmask 883712  }
 0x154   : > { %696 = vrot.lane.b32.xlu1 %v529_v5, %s6546_s30 }
 0x156   : > { %698 = vrot.lane.b32.xlu0 %v531_v6, %s6546_s30 }
 0x158   : > { %782 = vrot.lane.b32.xlu1 %v529_v5, %s7751_s6 }
 0x159   : > { %v517_v9 = vpop.permute.xlu0 %516 }
 0x15a   : > { %520 = vst.msk [vmem:[#allocation2 + $0x8] sm:$0xf] %vm7757_vm11, %v517_v9  ;;  %784 = vrot.lane.b32.xlu0 %v531_v6, %s7751_s6  ;;  %vm7766_vm11 = vcmask 891904  }
 0x15b   : > { %524 = vst.msk [vmem:[#allocation2 + $0x8] sm:$0xff] %vm6799_vm8, %v6548_v48 }
 0x15c   : > { %869 = vrot.lane.b32.xlu1 %v529_v5, %s6562_s15 }
 0x15e   : > { %871 = vrot.lane.b32.xlu0 %v531_v6, %s6562_s15 }
 0x160   : > { %956 = vrot.lane.b32.xlu1 %v529_v5, %s7784_s5 }
 0x162   : > { %958 = vrot.lane.b32.xlu0 %v531_v6, %s7784_s5  ;;  %v1348_v10 = vld [vmem:[#allocation2 + $0x4] sm:$0xff] }
 0x163   : > { %v1350_v11 = vcombine.high %v1348_v10, %v1348_v10  ;;  %v2150_v12 = vld [vmem:[#allocation2 + $0x8] sm:$0xff] }
 0x164   : > { %1043 = vrot.lane.b32.xlu1 %v529_v5, %s7754_s10  ;;  %v2152_v13 = vcombine.high %v2150_v12, %v2150_v12 }
 0x166   : > { %1045 = vrot.lane.b32.xlu0 %v531_v6, %s7754_s10 }
 0x168   : > { %1130 = vrot.lane.b32.xlu1 %v529_v5, %s7779_s11 }
 0x16a   : > { %1132 = vrot.lane.b32.xlu0 %v531_v6, %s7779_s11 }
 0x16c   : > { %1217 = vrot.lane.b32.xlu1 %v529_v5, %s7786_s4  ;;  %v5918_v5 = vld [vmem:[%s7726_s1 + $0x14] sm:$0xf] }
 0x16e   : > { %1219 = vrot.lane.b32.xlu0 %v531_v6, %s7786_s4 }
 0x170   : > { %1351 = vrot.lane.b32.xlu1 %v1348_v10, %s7781_s19 }
 0x172   : > { %1353 = vrot.lane.b32.xlu0 %v1350_v11, %s7781_s19 }
 0x174   : > { %1511 = vrot.lane.b32.xlu1 %v1348_v10, %s6546_s30 }
 0x176   : > { %1513 = vrot.lane.b32.xlu0 %v1350_v11, %s6546_s30 }
 0x178   : > { %1596 = vrot.lane.b32.xlu1 %v1348_v10, %s7751_s6 }
 0x17a   : > { %1598 = vrot.lane.b32.xlu0 %v1350_v11, %s7751_s6 }
 0x17c   : > { %1681 = vrot.lane.b32.xlu1 %v1348_v10, %s6562_s15 }
 0x17e   : > { %1683 = vrot.lane.b32.xlu0 %v1350_v11, %s6562_s15 }
 0x180   : > { %1766 = vrot.lane.b32.xlu1 %v1348_v10, %s7784_s5 }
 0x182   : > { %1768 = vrot.lane.b32.xlu0 %v1350_v11, %s7784_s5 }
 0x184   : > { %1851 = vrot.lane.b32.xlu1 %v1348_v10, %s7754_s10 }
 0x186   : > { %1853 = vrot.lane.b32.xlu0 %v1350_v11, %s7754_s10 }
 0x188   : > { %1936 = vrot.lane.b32.xlu1 %v1348_v10, %s7779_s11 }
 0x18a   : > { %1938 = vrot.lane.b32.xlu0 %v1350_v11, %s7779_s11 }
 0x18c   : > { %2021 = vrot.lane.b32.xlu1 %v1348_v10, %s7786_s4  ;;  %v5921_v10 = vld [vmem:[%s7726_s1 + $0x18] sm:$0xf] }
 0x18e   : > { %2023 = vrot.lane.b32.xlu0 %v1350_v11, %s7786_s4 }
 0x190   : > { %2153 = vrot.lane.b32.xlu1 %v2150_v12, %s7781_s19 }
 0x192   : > { %2155 = vrot.lane.b32.xlu0 %v2152_v13, %s7781_s19 }
 0x194   : > { %2313 = vrot.lane.b32.xlu1 %v2150_v12, %s6546_s30 }
 0x196   : > { %2315 = vrot.lane.b32.xlu0 %v2152_v13, %s6546_s30 }
 0x198   : > { %2398 = vrot.lane.b32.xlu1 %v2150_v12, %s7751_s6 }
 0x19a   : > { %2400 = vrot.lane.b32.xlu0 %v2152_v13, %s7751_s6  ;;  %s6567_s6 = smov 73  }
 0x19c   : > { %2483 = vrot.lane.b32.xlu1 %v2150_v12, %s6562_s15 }
 0x19e   : > { %2485 = vrot.lane.b32.xlu0 %v2152_v13, %s6562_s15 }
 0x1a0   : > { %2568 = vrot.lane.b32.xlu1 %v2150_v12, %s7784_s5 }
 0x1a2   : > { %2570 = vrot.lane.b32.xlu0 %v2152_v13, %s7784_s5  ;;  %s6576_s5 = smov 39  }
 0x1a4   : > { %2653 = vrot.lane.b32.xlu1 %v2150_v12, %s7754_s10 }
 0x1a6   : > { %2655 = vrot.lane.b32.xlu0 %v2152_v13, %s7754_s10  ;;  %s6569_s10 = smov 21  }
 0x1a8   : > { %2738 = vrot.lane.b32.xlu1 %v2150_v12, %s7779_s11 }
 0x1aa   : > { %2740 = vrot.lane.b32.xlu0 %v2152_v13, %s7779_s11 }
 0x1ac   : > { %2823 = vrot.lane.b32.xlu1 %v2150_v12, %s7786_s4 }
 0x1ae   : > { %2825 = vrot.lane.b32.xlu0 %v2152_v13, %s7786_s4  ;;  %s6577_s4 = smov 41  }
 0x1c2   : > { %v533_v14 = vpop.permute.xlu1 %532 }
 0x1c4   : > { %v535_v15 = vpop.permute.xlu0 %534 }
 0x1c5   : > { %v537_v17 = vsel %vm7768_vm5, %v533_v14, %v535_v15  ;;  %v5924_v14 = vld [vmem:[%s7726_s1 + $0x1c] sm:$0xf] }
 0x1c6   : > { %6147 = vmatpush3.msk.msra.mxu0 %vm7775_vm14, %v537_v17  ;;  %v697_v18 = vpop.permute.xlu1 %696 }
 0x1c7   : > { %6156 = vmatprep.subr.mxu0 %v6548_v48  ;;  %6149 = vmatmul.mubr.msk.f32.vlgmr.msra.gmra.mxu0 %vm7771_vm7, %v5878_v16 }
 0x1c8   : > { %v699_v19 = vpop.permute.xlu0 %698  ;;  %6158 = vmatprep.mubr.msk.f32.mxu0 %vm7769_vm9, %v6548_v48 }
 0x1c9   : > { %v700_v21 = vsel %vm7772_vm10, %v697_v18, %v699_v19  ;;  %v5927_v18 = vld [vmem:[%s7726_s1 + $0x20] sm:$0xf] }
 0x1ca   : > { %6157 = vmatpush3.msk.msra.mxu0 %vm7775_vm14, %v700_v21  ;;  %v783_v22 = vpop.permute.xlu1 %782 }
 0x1cb   : > { %6166 = vmatprep.subr.mxu0 %v6548_v48  ;;  %6159 = vmatmul.mubr.msk.f32.vlgmr.msra.gmra.mxu0 %vm7771_vm7, %v5883_v20  ;;  %v2148_v20 = vld [vmem:[#allocation2 + $0x8] sm:$0xf] }
 0x1cc   : > { %v785_v23 = vpop.permute.xlu0 %784  ;;  %6168 = vmatprep.mubr.msk.f32.mxu0 %vm7769_vm9, %v6548_v48 }
 0x1cd   : > { %v787_v25 = vsel %vm7767_vm6, %v783_v22, %v785_v23  ;;  %v5930_v23 = vld [vmem:[%s7726_s1 + $0x4] sm:$0xf] }
 0x1ce   : > { %6162 = vmatpush3.msk.msra.mxu1 %vm7775_vm14, %v787_v25  ;;  %v870_v26 = vpop.permute.xlu1 %869  ;;  %v2147_v25 = vld [vmem:[%s7726_s1] sm:$0xf] }
 0x1cf   : > { %6171 = vmatprep.subr.mxu1 %v6548_v48  ;;  %6164 = vmatmul.mubr.msk.f32.vlgmr.msra.gmra.mxu1 %vm7771_vm7, %v5886_v24 }
 0x1d0   : > { %v872_v27 = vpop.permute.xlu0 %871  ;;  %6173 = vmatprep.mubr.msk.f32.mxu1 %vm7769_vm9, %v6548_v48 }
 0x1d1   : > { %v874_v29 = vsel %vm7766_vm11, %v870_v26, %v872_v27 }
 0x1d2   : > { %6167 = vmatpush3.msk.msra.mxu0 %vm7775_vm14, %v874_v29  ;;  %v957_v30 = vpop.permute.xlu1 %956 }
 0x1d3   : > { %6176 = vmatprep.subr.mxu0 %v6548_v48  ;;  %6169 = vmatmul.mubr.msk.f32.vlgmr.msra.gmra.mxu0 %vm7771_vm7, %v5889_v28  ;;  %v5935_v28 = vld [vmem:[%s7726_s1 + $0x8] sm:$0xf] }
 0x1d4   : > { %v959_v31 = vpop.permute.xlu0 %958  ;;  %6178 = vmatprep.mubr.msk.f32.mxu0 %vm7769_vm9, %v6548_v48 }
 0x1d5   : > { %v961_v33 = vsel %vm7764_vm13, %v957_v30, %v959_v31 }
 0x1d6   : > { %6172 = vmatpush3.msk.msra.mxu1 %vm7775_vm14, %v961_v33  ;;  %v1044_v34 = vpop.permute.xlu1 %1043 }
 0x1d7   : > { %6181 = vmatprep.subr.mxu1 %v6548_v48  ;;  %6174 = vmatmul.mubr.msk.f32.vlgmr.msra.gmra.mxu1 %vm7771_vm7, %v5892_v32  ;;  %v5938_v32 = vld [vmem:[%s7726_s1 + $0xc] sm:$0xf] }
 0x1d8   : > { %v1046_v35 = vpop.permute.xlu0 %1045  ;;  %6183 = vmatprep.mubr.msk.f32.mxu1 %vm7769_vm9, %v6548_v48 }
 0x1d9   : > { %v1048_v37 = vsel %vm7763_vm15, %v1044_v34, %v1046_v35 }
 0x1da   : > { %6177 = vmatpush3.msk.msra.mxu0 %vm7775_vm14, %v1048_v37  ;;  %v1131_v38 = vpop.permute.xlu1 %1130  ;;  %v5941_v37 = vld [vmem:[%s7726_s1 + $0x10] sm:$0xf] }
 0x1db   : > { %6179 = vmatmul.mubr.msk.f32.vlgmr.msra.gmra.mxu0 %vm7771_vm7, %v5895_v36  ;;  %6186 = vmatprep.subr.mxu0 %v6548_v48 }
 0x1dc   : > { %v1133_v39 = vpop.permute.xlu0 %1132  ;;  %6188 = vmatprep.mubr.msk.f32.mxu0 %vm7769_vm9, %v6548_v48 }
 0x1dd   : > { %v1135_v41 = vsel %vm7762_vm3, %v1131_v38, %v1133_v39 }
 0x1de   : > { %6182 = vmatpush3.msk.msra.mxu1 %vm7775_vm14, %v1135_v41  ;;  %v1218_v42 = vpop.permute.xlu1 %1217 }
 0x1df   : > { %6191 = vmatprep.subr.mxu1 %v6548_v48  ;;  %6184 = vmatmul.mubr.msk.f32.vlgmr.msra.gmra.mxu1 %vm7771_vm7, %v5898_v40 }
 0x1e0   : > { %v1220_v43 = vpop.permute.xlu0 %1219  ;;  %6193 = vmatprep.mubr.msk.f32.mxu1 %vm7769_vm9, %v6548_v48 }
 0x1e1   : > { %v1222_v45 = vsel %vm7765_vm2, %v1218_v42, %v1220_v43  ;;  %v5944_v42 = vld [vmem:[%s7726_s1 + $0x14] sm:$0xf] }
 0x1e2   : > { %6187 = vmatpush3.msk.msra.mxu0 %vm7775_vm14, %v1222_v45  ;;  %v1352_v46 = vpop.permute.xlu1 %1351 }
 0x1e3   : > { %6196 = vmatprep.subr.mxu0 %v6548_v48  ;;  %6189 = vmatmul.mubr.msk.f32.vlgmr.msra.gmra.mxu0 %vm7771_vm7, %v5901_v44 }
 0x1e4   : > { %v1354_v49 = vpop.permute.xlu0 %1353  ;;  %6197 = vmatpush3.msk.msra.mxu0 %vm7775_vm14, %v1346_v47  ;;  %6198 = vmatprep.mubr.msk.f32.mxu0 %vm7769_vm9, %v6548_v48 }
 0x1e5   : > { %v1355_v51 = vsel %vm7768_vm5, %v1352_v46, %v1354_v49  ;;  %6206 = vmatprep.subr.mxu0 %v6548_v48  ;;  %v5947_v46 = vld [vmem:[%s7726_s1 + $0x18] sm:$0xf] }
 0x1e6   : > { %6192 = vmatpush3.msk.msra.mxu1 %vm7775_vm14, %v1355_v51  ;;  %v1512_v54 = vpop.permute.xlu1 %1511  ;;  %v5950_v51 = vld [vmem:[%s7726_s1 + $0x1c] sm:$0xf] }
 0x1e7   : > { %6201 = vmatprep.subr.mxu1 %v6548_v48  ;;  %6194 = vmatmul.mubr.msk.f32.vlgmr.msra.gmra.mxu1 %vm7771_vm7, %v5904_v50 }
 0x1e8   : > { %v1514_v55 = vpop.permute.xlu0 %1513  ;;  %6199 = vmatmul.mubr.msk.f32.vlgmr.msra.gmra.mxu0 %vm7771_vm7, %v1345_v52  ;;  %6203 = vmatprep.mubr.msk.f32.mxu1 %vm7769_vm9, %v6548_v48 }
 0x1e9   : > { %v1515_v57 = vsel %vm7772_vm10, %v1512_v54, %v1514_v55  ;;  %6208 = vmatprep.mubr.msk.f32.mxu0 %vm7769_vm9, %v6548_v48 }
 0x1ea   : > { %6202 = vmatpush3.msk.msra.mxu1 %vm7775_vm14, %v1515_v57  ;;  %v1597_v58 = vpop.permute.xlu1 %1596 }
 0x1eb   : > { %6211 = vmatprep.subr.mxu1 %v6548_v48  ;;  %6204 = vmatmul.mubr.msk.f32.vlgmr.msra.gmra.mxu1 %vm7771_vm7, %v5909_v56  ;;  %v5953_v56 = vld [vmem:[%s7726_s1 + $0x20] sm:$0xf] }
 0x1ec   : > { %v1599_v59 = vpop.permute.xlu0 %1598  ;;  %6213 = vmatprep.mubr.msk.f32.mxu1 %vm7769_vm9, %v6548_v48 }
 0x1ed   : > { %v1600_v61 = vsel %vm7767_vm6, %v1597_v58, %v1599_v59  ;;  %v1300_v58 = vlaneseq }
 0x1ee   : > { %6207 = vmatpush3.msk.msra.mxu0 %vm7775_vm14, %v1600_v61  ;;  %v1682_v62 = vpop.permute.xlu1 %1681 }
 0x1ef   : > { %6216 = vmatprep.subr.mxu0 %v6548_v48  ;;  %6209 = vmatmul.mubr.msk.f32.vlgmr.msra.gmra.mxu0 %vm7771_vm7, %v5912_v60  ;;  %v7082_v59 = vand.u32 127, %v1300_v58 }
 0x1f0   : > { %v1684_v63 = vpop.permute.xlu0 %1683  ;;  %6218 = vmatprep.mubr.msk.f32.mxu0 %vm7769_vm9, %v6548_v48 }
 0x1f1   : > { %v1685_v2 = vsel %vm7766_vm11, %v1682_v62, %v1684_v63  ;;  %vm1314_vm0 = vcmp.ge.s32.totalorder %v7082_v59, 72 }
 0x1f2   : > { %6212 = vmatpush3.msk.msra.mxu1 %vm7775_vm14, %v1685_v2  ;;  %v1767_v3 = vpop.permute.xlu1 %1766 }
 0x1f3   : > { %6221 = vmatprep.subr.mxu1 %v6548_v48  ;;  %6214 = vmatmul.mubr.msk.f32.vlgmr.msra.gmra.mxu1 %vm7771_vm7, %v5915_v1 }
 0x1f4   : > { %v1769_v4 = vpop.permute.xlu0 %1768  ;;  %6223 = vmatprep.mubr.msk.f32.mxu1 %vm7769_vm9, %v6548_v48 }
 0x1f5   : > { %v1770_v6 = vsel %vm7764_vm13, %v1767_v3, %v1769_v4 }
 0x1f6   : > { %6217 = vmatpush3.msk.msra.mxu0 %vm7775_vm14, %v1770_v6  ;;  %v1852_v7 = vpop.permute.xlu1 %1851 }
 0x1f7   : > { %6219 = vmatmul.mubr.msk.f32.vlgmr.msra.gmra.mxu0 %vm7771_vm7, %v5918_v5  ;;  %6226 = vmatprep.subr.mxu0 %v6548_v48 }
 0x1f8   : > { %v1854_v9 = vpop.permute.xlu0 %1853  ;;  %6228 = vmatprep.mubr.msk.f32.mxu0 %vm7769_vm9, %v6548_v48 }
 0x1f9   : > { %v1855_v11 = vsel %vm7763_vm15, %v1852_v7, %v1854_v9 }
 0x1fa   : > { %6222 = vmatpush3.msk.msra.mxu1 %vm7775_vm14, %v1855_v11  ;;  %v1937_v12 = vpop.permute.xlu1 %1936 }
 0x1fb   : > { %6224 = vmatmul.mubr.msk.f32.vlgmr.msra.gmra.mxu1 %vm7771_vm7, %v5921_v10  ;;  %6231 = vmatprep.subr.mxu1 %v6548_v48 }
 0x1fc   : > { %v1939_v13 = vpop.permute.xlu0 %1938  ;;  %6233 = vmatprep.mubr.msk.f32.mxu1 %vm7769_vm9, %v6548_v48  ;;  %v687_v35 = vpop.f32.mrf.mxu1 }
 0x1fd   : > { %v1940_v15 = vsel %vm7762_vm3, %v1937_v12, %v1939_v13 }
 0x1fe   : > { %6227 = vmatpush3.msk.msra.mxu0 %vm7775_vm14, %v1940_v15  ;;  %v2022_v16 = vpop.permute.xlu1 %2021  ;;  %v6155_v38 = vpop.f32.mrf.mxu1 }
 0x1ff   : > { %6229 = vmatmul.mubr.msk.f32.vlgmr.msra.gmra.mxu0 %vm7771_vm7, %v5924_v14  ;;  %6236 = vmatprep.subr.mxu0 %v6548_v48 }
 0x200   : > { %v2024_v17 = vpop.permute.xlu0 %2023  ;;  %6238 = vmatprep.mubr.msk.f32.mxu0 %vm7769_vm9, %v6548_v48 }
 0x201   : > { %v2025_v19 = vsel %vm7765_vm2, %v2022_v16, %v2024_v17 }
 0x202   : > { %6232 = vmatpush3.msk.msra.mxu1 %vm7775_vm14, %v2025_v19  ;;  %v2154_v21 = vpop.permute.xlu1 %2153 }
 0x203   : > { %6234 = vmatmul.mubr.msk.f32.vlgmr.msra.gmra.mxu1 %vm7771_vm7, %v5927_v18  ;;  %6241 = vmatprep.subr.mxu1 %v6548_v48 }
 0x204   : > { %v2156_v22 = vpop.permute.xlu0 %2155  ;;  %6242 = vmatpush3.msk.msra.mxu1 %vm7775_vm14, %v2148_v20  ;;  %6243 = vmatprep.mubr.msk.f32.mxu1 %vm7769_vm9, %v6548_v48  ;;  %v6565_v20 = vmov 0  }
 0x205   : > { %v2157_v24 = vsel %vm7768_vm5, %v2154_v21, %v2156_v22  ;;  %6251 = vmatprep.subr.mxu1 %v6548_v48 }
 0x206   : > { %6237 = vmatpush3.msk.msra.mxu0 %vm7775_vm14, %v2157_v24  ;;  %v2314_v26 = vpop.permute.xlu1 %2313 }
 0x207   : > { %6246 = vmatprep.subr.mxu0 %v6548_v48  ;;  %6239 = vmatmul.mubr.msk.f32.vlgmr.msra.gmra.mxu0 %vm7771_vm7, %v5930_v23  ;;  %v2103_v23 = vadd.s32 128, %v7082_v59 }
 0x208   : > { %v2316_v27 = vpop.permute.xlu0 %2315  ;;  %6244 = vmatmul.mubr.msk.f32.vlgmr.msra.gmra.mxu1 %vm7771_vm7, %v2147_v25  ;;  %6248 = vmatprep.mubr.msk.f32.mxu0 %vm7769_vm9, %v6548_v48 }
 0x209   : > { %v2317_v29 = vsel %vm7772_vm10, %v2314_v26, %v2316_v27  ;;  %6253 = vmatprep.mubr.msk.f32.mxu1 %vm7769_vm9, %v6548_v48  ;;  %vm2123_vm4 = vcmp.lt.s32.totalorder %v2103_v23, 250 }
 0x20a   : > { %6247 = vmatpush3.msk.msra.mxu0 %vm7775_vm14, %v2317_v29  ;;  %v2399_v30 = vpop.permute.xlu1 %2398 }
 0x20b   : > { %6256 = vmatprep.subr.mxu0 %v6548_v48  ;;  %6249 = vmatmul.mubr.msk.f32.vlgmr.msra.gmra.mxu0 %vm7771_vm7, %v5935_v28 }
 0x20c   : > { %v2401_v31 = vpop.permute.xlu0 %2400  ;;  %6258 = vmatprep.mubr.msk.f32.mxu0 %vm7769_vm9, %v6548_v48 }
 0x20d   : > { %v2402_v33 = vsel %vm7767_vm6, %v2399_v30, %v2401_v31 }
 0x20e   : > { %6252 = vmatpush3.msk.msra.mxu1 %vm7775_vm14, %v2402_v33  ;;  %v2484_v34 = vpop.permute.xlu1 %2483 }
 0x20f   : > { %6261 = vmatprep.subr.mxu1 %v6548_v48  ;;  %6254 = vmatmul.mubr.msk.f32.vlgmr.msra.gmra.mxu1 %vm7771_vm7, %v5938_v32 }
 0x210   : > { %v2486_v36 = vpop.permute.xlu0 %2485  ;;  %6263 = vmatprep.mubr.msk.f32.mxu1 %vm7769_vm9, %v6548_v48 }
 0x211   : > { %v2487_v39 = vsel %vm7766_vm11, %v2484_v34, %v2486_v36  ;;  %vm1303_vm11 = vcmp.lt.s32.totalorder %v7082_v59, 16 }
 0x212   : > { %6257 = vmatpush3.msk.msra.mxu0 %vm7775_vm14, %v2487_v39  ;;  %v2569_v40 = vpop.permute.xlu1 %2568 }
 0x213   : > { %6259 = vmatmul.mubr.msk.f32.vlgmr.msra.gmra.mxu0 %vm7771_vm7, %v5941_v37  ;;  %6266 = vmatprep.subr.mxu0 %v6548_v48 }
 0x214   : > { %v2571_v41 = vpop.permute.xlu0 %2570  ;;  %6268 = vmatprep.mubr.msk.f32.mxu0 %vm7769_vm9, %v6548_v48 }
 0x215   : > { %v2572_v43 = vsel %vm7764_vm13, %v2569_v40, %v2571_v41  ;;  %vm1308_vm13 = vcmp.ge.s32.totalorder %v7082_v59, 36 }
 0x216   : > { %6262 = vmatpush3.msk.msra.mxu1 %vm7775_vm14, %v2572_v43  ;;  %v2654_v44 = vpop.permute.xlu1 %2653 }
 0x217   : > { %6264 = vmatmul.mubr.msk.f32.vlgmr.msra.gmra.mxu1 %vm7771_vm7, %v5944_v42  ;;  %6271 = vmatprep.subr.mxu1 %v6548_v48 }
 0x218   : > { %v2656_v45 = vpop.permute.xlu0 %2655  ;;  %6273 = vmatprep.mubr.msk.f32.mxu1 %vm7769_vm9, %v6548_v48 }
 0x219   : > { %v2657_v47 = vsel %vm7763_vm15, %v2654_v44, %v2656_v45  ;;  %vm1306_vm15 = vcmp.lt.s32.totalorder %v7082_v59, 34 }
 0x21a   : > { %6267 = vmatpush3.msk.msra.mxu0 %vm7775_vm14, %v2657_v47  ;;  %v2739_v49 = vpop.permute.xlu1 %2738 }
 0x21b   : > { %6269 = vmatmul.mubr.msk.f32.vlgmr.msra.gmra.mxu0 %vm7771_vm7, %v5947_v46  ;;  %6276 = vmatprep.subr.mxu0 %v6548_v48 }
 0x21c   : > { %v2741_v50 = vpop.permute.xlu0 %2740  ;;  %6278 = vmatprep.mubr.msk.f32.mxu0 %vm7769_vm9, %v6548_v48 }
 0x21d   : > { %v2742_v52 = vsel %vm7762_vm3, %v2739_v49, %v2741_v50  ;;  %vm1305_vm3 = vcmp.ge.s32.totalorder %v7082_v59, 18 }
 0x21e   : > { %6272 = vmatpush3.msk.msra.mxu1 %vm7775_vm14, %v2742_v52  ;;  %v2824_v54 = vpop.permute.xlu1 %2823  ;;  %vm1307_vm6 = vmand %vm1305_vm3, %vm1306_vm15  ;;  %vm1317_vm15 = vcmp.ge.s32.totalorder %v7082_v59, 90 }
 0x21f   : > { %6274 = vmatmul.mubr.msk.f32.vlgmr.msra.gmra.mxu1 %vm7771_vm7, %v5950_v51  ;;  %6281 = vmatprep.subr.mxu1 %v6548_v48  ;;  %vm1326_vm10 = vmor %vm1303_vm11, %vm1307_vm6  ;;  %vm1318_vm11 = vcmp.lt.s32.totalorder %v7082_v59, 106  ;;  %vm1321_vm6 = vcmp.lt.s32.totalorder %v7082_v59, 124 }
 0x220   : > { %v2826_v55 = vpop.permute.xlu0 %2825  ;;  %6283 = vmatprep.mubr.msk.f32.mxu1 %vm7769_vm9, %v6548_v48 }
 0x221   : > { %v2827_v57 = vsel %vm7765_vm2, %v2824_v54, %v2826_v55  ;;  %vm1309_vm2 = vcmp.lt.s32.totalorder %v7082_v59, 52 }
 0x222   : > { %6277 = vmatpush3.msk.msra.mxu0 %vm7775_vm14, %v2827_v57  ;;  %vm7089_vm5 = vmand %vm1308_vm13, %vm1309_vm2  ;;  %vm1315_vm14 = vcmp.lt.s32.totalorder %v7082_v59, 88 }
 0x223   : > { %6279 = vmatmul.mubr.msk.f32.vlgmr.msra.gmra.mxu0 %vm7771_vm7, %v5953_v56  ;;  %6286 = vmatprep.subr.mxu0 %v6548_v48  ;;  %vm1312_vm7 = vcmp.lt.s32.totalorder %v7082_v59, 70  ;;  %vm1327_vm3 = vmor %vm1326_vm10, %vm7089_vm5  ;;  %vm1323_vm5 = vcmp.ge.s32.totalorder %v7082_v59, 126 }
 0x224   : > { %6288 = vmatprep.mubr.msk.f32.mxu0 %vm7769_vm9, %v6548_v48  ;;  %vm1311_vm9 = vcmp.ge.s32.totalorder %v7082_v59, 54  ;;  %vm7099_vm2 = vmand %vm1314_vm0, %vm1315_vm14 }
 0x225   : > { %vm1313_vm1 = vmand %vm1311_vm9, %vm1312_vm7  ;;  %vm1320_vm7 = vcmp.ge.s32.totalorder %v7082_v59, 108 }
 0x226   : > { %vm1328_vm13 = vmor %vm1327_vm3, %vm1313_vm1 }
 0x227   : > { %vm1319_vm9 = vmand %vm1317_vm15, %vm1318_vm11  ;;  %vm2108_vm15 = vcmp.lt.s32.totalorder %v2103_v23, 160  ;;  %vm2110_vm11 = vcmp.ge.s32.totalorder %v2103_v23, 162 }
 0x228   : > { %vm1329_vm10 = vmor %vm1328_vm13, %vm7099_vm2  ;;  %vm2107_vm2 = vcmp.ge.s32.totalorder %v2103_v23, 144  ;;  %vm2111_vm13 = vcmp.lt.s32.totalorder %v2103_v23, 178 }
 0x229   : > { %vm1322_vm0 = vmand %vm1320_vm7, %vm1321_vm6 }
 0x22a   : > { %vm1330_vm14 = vmor %vm1329_vm10, %vm1319_vm9  ;;  %vm2105_vm9 = vcmp.lt.s32.totalorder %v2103_v23, 142 }
 0x22b   : > { %vm1331_vm8 = vmor %vm1330_vm14, %vm1322_vm0  ;;  %vm2113_vm0 = vcmp.ge.s32.totalorder %v2103_v23, 180  ;;  %vm2114_vm14 = vcmp.lt.s32.totalorder %v2103_v23, 196 }
 0x22c   : > { %vm1332_vm1 = vmor %vm1331_vm8, %vm1323_vm5  ;;  %vm7798_vm8 = vcmask 1043456  }
 0x22d   : > { %v7111_v21 = vsel %vm1332_vm1, 1, %v6565_v20  ;;  %vm2109_vm7 = vmand %vm2107_vm2, %vm2108_vm15 }
 0x22e   : > { %vm7777_vm3 = vcmp.eq.s32.totalorder %v7111_v21, 1  ;;  %vm7799_vm6 = vmmov %vm7798_vm8 }
 0x22f   : > { %vm7119_vm10 = vmand %vm2110_vm11, %vm2111_vm13  ;;  %vm2119_vm11 = vcmp.ge.s32.totalorder %v2103_v23, 216  ;;  %vm2120_vm13 = vcmp.lt.s32.totalorder %v2103_v23, 232 }
 0x230   : > { %vm2128_vm5 = vmor %vm2105_vm9, %vm2109_vm7  ;;  %vm2122_vm7 = vcmp.ge.s32.totalorder %v2103_v23, 234 }
 0x231   : > { %vm2115_vm1 = vmand %vm2113_vm0, %vm2114_vm14 }
 0x232   : > { %vm2129_vm2 = vmor %vm2128_vm5, %vm7119_vm10 }
 0x233   : > { %vm2121_vm9 = vmand %vm2119_vm11, %vm2120_vm13 }
 0x234   : > { %vm2124_vm10 = vmand %vm2122_vm7, %vm2123_vm4  ;;  %vm7804_vm4 = vcmask 1043456  }
 0x287   : > { %v611_v60 = vpop.f32.mrf.mxu0 }
 0x288   : > { %v688_v61 = vadd.f32 %v687_v35, %v611_v60 }
 0x289   : > { %v6150_v62 = vpop.f32.mrf.mxu0 }
 0x28b   : > { %v772_v1 = vpop.f32.mrf.mxu0 }
 0x28c   : > { %v776_v2 = vadd.f32 %v772_v1, %v688_v61 }
 0x28d   : > { %v6160_v3 = vpop.f32.mrf.mxu0 }
 0x28f   : > { %v859_v4 = vpop.f32.mrf.mxu1 }
 0x290   : > { %v863_v5 = vadd.f32 %v859_v4, %v776_v2 }
 0x291   : > { %v6165_v7 = vpop.f32.mrf.mxu1 }
 0x293   : > { %v946_v9 = vpop.f32.mrf.mxu0 }
 0x294   : > { %v950_v10 = vadd.f32 %v946_v9, %v863_v5 }
 0x295   : > { %v6170_v11 = vpop.f32.mrf.mxu0 }
 0x297   : > { %v1033_v12 = vpop.f32.mrf.mxu1 }
 0x298   : > { %v1037_v13 = vadd.f32 %v1033_v12, %v950_v10 }
 0x299   : > { %v6175_v14 = vpop.f32.mrf.mxu1 }
 0x29b   : > { %v1120_v15 = vpop.f32.mrf.mxu0 }
 0x29c   : > { %v1124_v16 = vadd.f32 %v1120_v15, %v1037_v13 }
 0x29d   : > { %v6180_v17 = vpop.f32.mrf.mxu0 }
 0x29f   : > { %v1207_v18 = vpop.f32.mrf.mxu1 }
 0x2a0   : > { %v1211_v19 = vadd.f32 %v1207_v18, %v1124_v16 }
 0x2a1   : > { %v6185_v22 = vpop.f32.mrf.mxu1 }
 0x2a2   : > { %v2905_v22 = vadd.s32 256, %v7082_v59 }
 0x2a3   : > { %v1294_v24 = vpop.f32.mrf.mxu0 }
 0x2a4   : > { %v1298_v25 = vadd.f32 %v1294_v24, %v1211_v19  ;;  %vm2910_vm11 = vcmp.lt.s32.totalorder %v2905_v22, 286  ;;  %vm2907_vm13 = vcmp.lt.s32.totalorder %v2905_v22, 268 }
 0x2a5   : > { %v6190_v26 = vpop.f32.mrf.mxu0 }
 0x2a6   : > { %1299 = vst [vmem:[#allocation4] sm:$0xf] %v1298_v25  ;;  %v1335_v27 = vsel %vm7777_vm3, %v1298_v25, 0.0  ;;  %vm2117_vm3 = vcmp.lt.s32.totalorder %v2103_v23, 214 }
 0x2a7   : > { %v1340_v28 = vmul.f32 %v1335_v27, %v1335_v27  ;;  %v1427_v29 = vpop.f32.mrf.mxu1  ;;  %v1336_v30 = vsel %vm7798_vm8, %v1335_v27, 0.0  ;;  %vm2116_vm8 = vcmp.ge.s32.totalorder %v2103_v23, 198 }
 0x2a8   : > { %v1503_v31 = vpop.f32.mrf.mxu0  ;;  %1337 = vadd.xlane.f32.xlu1 %v1336_v30  ;;  %vm7125_vm15 = vmand %vm2116_vm8, %vm2117_vm3  ;;  %vm2125_vm3 = vcmp.ge.s32.totalorder %v2103_v23, 252 }
 0x2a9   : > { %v6195_v32 = vpop.f32.mrf.mxu1  ;;  %v1504_v33 = vadd.f32 %v1503_v31, %v1427_v29  ;;  %v1341_v34 = vsel %vm7799_vm6, %v1340_v28, 0.0  ;;  %vm2130_vm6 = vmor %vm2129_vm2, %vm2115_vm1 }
 0x2aa   : > { %v6200_v35 = vpop.f32.mrf.mxu0  ;;  %1342 = vadd.xlane.f32.xlu0 %v1341_v34  ;;  %vm2131_vm0 = vmor %vm2130_vm6, %vm7125_vm15  ;;  %vm2909_vm15 = vcmp.ge.s32.totalorder %v2905_v22, 270 }
 0x2ab   : > { %v1587_v37 = vpop.f32.mrf.mxu1  ;;  %vm2132_vm14 = vmor %vm2131_vm0, %vm2121_vm9 }
 0x2ac   : > { %v1591_v38 = vadd.f32 %v1587_v37, %v1504_v33  ;;  %vm2133_vm5 = vmor %vm2132_vm14, %vm2124_vm10  ;;  %vm7810_vm10 = vcmask 7168   ;;  %vm7811_vm14 = vcmask 138240  }
 0x2ad   : > { %v6205_v39 = vpop.f32.mrf.mxu1  ;;  %vm2134_vm1 = vmor %vm2133_vm5, %vm2125_vm3 }
 0x2ae   : > { %v7132_v57 = vsel %vm2134_vm1, 1, %v6565_v20  ;;  %vm7805_vm2 = vmmov %vm7804_vm4 }
 0x2af   : > { %v1672_v40 = vpop.f32.mrf.mxu0  ;;  %vm2136_vm8 = vcmp.eq.s32.totalorder %v7132_v57, 1  ;;  %vm2911_vm6 = vmand %vm2909_vm15, %vm2910_vm11 }
 0x2b0   : > { %v1676_v41 = vadd.f32 %v1672_v40, %v1591_v38  ;;  %vm7140_vm9 = vmor %vm2907_vm13, %vm2911_vm6 }
 0x2b1   : > { %v6210_v43 = vpop.f32.mrf.mxu0  ;;  %vm7808_vm7 = vmmov %vm7805_vm2 }
 0x2b2   : > { %vm7809_vm0 = vmmov %vm7805_vm2 }
 0x2b3   : > { %v1757_v44 = vpop.f32.mrf.mxu1  ;;  %vm7812_vm3 = vmmov %vm7810_vm10 }
 0x2b4   : > { %v1761_v45 = vadd.f32 %v1757_v44, %v1676_v41  ;;  %vm7813_vm5 = vmmov %vm7811_vm14 }
 0x2b5   : > { %v6215_v46 = vpop.f32.mrf.mxu1  ;;  %vm7814_vm1 = vmmov %vm7812_vm3 }
 0x2b6   : > { %vm7818_vm11 = vmmov %vm7814_vm1 }
 0x2b7   : > { %v1842_v47 = vpop.f32.mrf.mxu0  ;;  %vm7819_vm13 = vmmov %vm7814_vm1 }
 0x2b8   : > { %v1846_v49 = vadd.f32 %v1842_v47, %v1761_v45 }
 0x2b9   : > { %v6220_v50 = vpop.f32.mrf.mxu0 }
 0x2bb   : > { %v1927_v51 = vpop.f32.mrf.mxu1 }
 0x2bc   : > { %v1931_v52 = vadd.f32 %v1927_v51, %v1846_v49 }
 0x2bd   : > { %v6225_v54 = vpop.f32.mrf.mxu1 }
 0x2bf   : > { %v2012_v55 = vpop.f32.mrf.mxu0 }
 0x2c0   : > { %v2016_v56 = vadd.f32 %v2012_v55, %v1931_v52  ;;  %v2949_v55 = vld [vmem:[#allocation4] sm:$0xf] }
 0x2c1   : > { %v6230_v58 = vpop.f32.mrf.mxu0 }
 0x2c3   : > { %v2097_v60 = vpop.f32.mrf.mxu1 }
 0x2c4   : > { %v2101_v61 = vadd.f32 %v2097_v60, %v2016_v56  ;;  %v2970_v60 = vld [vmem:[#allocation4] sm:$0xf] }
 0x2c5   : > { %v6235_v62 = vpop.f32.mrf.mxu1 }
 0x2c6   : > { %2102 = vst [vmem:[#allocation4 + $0x4] sm:$0xf] %v2101_v61  ;;  %v2137_v63 = vsel %vm2136_vm8, %v2101_v61, 0.0 }
 0x2c7   : > { %v2142_v1 = vmul.f32 %v2137_v63, %v2137_v63  ;;  %v2138_v2 = vsel %vm7804_vm4, %v2137_v63, 0.0  ;;  %v2229_v3 = vpop.f32.mrf.mxu0  ;;  %vm7815_vm4 = vmmov %vm7813_vm5 }
 0x2c8   : > { %2139 = vadd.xlane.f32.xlu0 %v2138_v2  ;;  %v2305_v4 = vpop.f32.mrf.mxu1  ;;  %vm7817_vm15 = vmmov %vm7815_vm4 }
 0x2c9   : > { %v2143_v5 = vsel %vm7805_vm2, %v2142_v1, 0.0  ;;  %v6240_v6 = vpop.f32.mrf.mxu0  ;;  %v2306_v7 = vadd.f32 %v2305_v4, %v2229_v3  ;;  %vm7816_vm2 = vmmov %vm7814_vm1 }
 0x2ca   : > { %2144 = vadd.xlane.f32.xlu1 %v2143_v5  ;;  %v6245_v9 = vpop.f32.mrf.mxu1  ;;  %vm7820_vm6 = vmmov %vm7815_vm4 }
 0x2cb   : > { %v2389_v10 = vpop.f32.mrf.mxu0 }
 0x2cc   : > { %v2393_v12 = vadd.f32 %v2389_v10, %v2306_v7 }
 0x2cd   : > { %v6250_v11 = vpop.f32.mrf.mxu0  ;;  %v3166_v63 = vld [vmem:[#allocation4 + $0x4] sm:$0xf] }
 0x2ce   : > { %v3229_v1 = vld [vmem:[#allocation4 + $0x4] sm:$0xf] }
 0x2cf   : > { %v2474_v13 = vpop.f32.mrf.mxu1  ;;  %v3187_v5 = vld [vmem:[#allocation4 + $0x4] sm:$0xf] }
 0x2d0   : > { %v2478_v15 = vadd.f32 %v2474_v13, %v2393_v12  ;;  %v3208_v6 = vld [vmem:[#allocation4 + $0x4] sm:$0xf] }
 0x2d1   : > { %v6255_v14 = vpop.f32.mrf.mxu1 }
 0x2d3   : > { %v2559_v16 = vpop.f32.mrf.mxu0 }
 0x2d4   : > { %v2563_v18 = vadd.f32 %v2559_v16, %v2478_v15 }
 0x2d5   : > { %v6260_v17 = vpop.f32.mrf.mxu0 }
 0x2d7   : > { %v2644_v19 = vpop.f32.mrf.mxu1 }
 0x2d8   : > { %v2648_v23 = vadd.f32 %v2644_v19, %v2563_v18  ;;  %v2932_v19 = vld [vmem:[#allocation4] sm:$0xf] }
 0x2d9   : > { %v6265_v20 = vpop.f32.mrf.mxu1 }
 0x2db   : > { %v2729_v24 = vpop.f32.mrf.mxu0 }
 0x2dc   : > { %v2733_v26 = vadd.f32 %v2729_v24, %v2648_v23  ;;  %v2991_v24 = vld [vmem:[#allocation4] sm:$0xf] }
 0x2dd   : > { %v6270_v25 = vpop.f32.mrf.mxu0 }
 0x2df   : > { %v2814_v27 = vpop.f32.mrf.mxu1 }
 0x2e0   : > { %v2818_v29 = vadd.f32 %v2814_v27, %v2733_v26 }
 0x2e1   : > { %v6275_v28 = vpop.f32.mrf.mxu1 }
 0x2e3   : > { %v2899_v30 = vpop.f32.mrf.mxu0 }
 0x2e4   : > { %v2903_v32 = vadd.f32 %v2899_v30, %v2818_v29  ;;  %v3012_v29 = vld [vmem:[#allocation4] sm:$0xf] }
 0x2e5   : > { %v6280_v33 = vpop.f32.mrf.mxu0 }
 0x2e6   : > { %2904 = vst [vmem:[#allocation4 + $0x8] sm:$0xf] %v2903_v32  ;;  %v2915_v59 = vsel %vm7140_vm9, %v2903_v32, 0.0 }
 0x2e7   : > { %v2920_v34 = vmul.f32 %v2915_v59, %v2915_v59  ;;  %v2916_v35 = vsel %vm7808_vm7, %v2915_v59, 0.0  ;;  %v3075_v59 = vld [vmem:[#allocation4] sm:$0xf]  ;;  %vm7821_vm7 = vmmov %vm7815_vm4 }
 0x2e8   : > { %2917 = vadd.xlane.f32.xlu0 %v2916_v35 }
 0x2e9   : > { %v2921_v36 = vsel %vm7809_vm0, %v2920_v34, 0.0  ;;  %vm7823_vm0 = vmmov %vm7814_vm1 }
 0x2ea   : > { %2922 = vadd.xlane.f32.xlu1 %v2921_v36 }
 0x2ed   : > { %v3252_v11 = vld [vmem:[#allocation4 + $0x4] sm:$0xff] }
 0x2ee   : > { %v3278_v14 = vld [vmem:[#allocation4 + $0x8] sm:$0xf] }
 0x331   : > { %v1338_v38 = vpop.xlane.xlu1 %1337 }
 0x333   : > { %v1343_v37 = vpop.xlane.xlu0 %1342 }
 0x351   : > { %v2140_v39 = vpop.xlane.xlu0 %2139 }
 0x352   : > { %v2141_v41 = vadd.f32 %v2140_v39, %v1338_v38  ;;  %v3033_v38 = vld [vmem:[#allocation4] sm:$0xf] }
 0x353   : > { %v2145_v40 = vpop.xlane.xlu1 %2144 }
 0x354   : > { %v2146_v43 = vadd.f32 %v2145_v40, %v1343_v37 }
 0x371   : > { %v2918_v42 = vpop.xlane.xlu0 %2917 }
 0x372   : > { %v2919_v44 = vadd.f32 %v2918_v42, %v2141_v41  ;;  %v3054_v42 = vld [vmem:[#allocation4] sm:$0xf] }
 0x373   : > { %v2923_v45 = vpop.xlane.xlu1 %2922 }
 0x374   : > { %v7148_v46 = vmul.f32 0.00390625, %v2919_v44  ;;  %v2924_v47 = vadd.f32 %v2923_v45, %v2146_v43  ;;  %v3098_v45 = vld [vmem:[#allocation4] sm:$0xff] }
 0x376   : > { %v2927_v49 = vmul.f32 %v7148_v46, %v7148_v46  ;;  %v2926_v50 = vmul.f32 0.00390625, %v2924_v47  ;;  %v2950_v56 = vsub.f32 %v2949_v55, %v7148_v46  ;;  %v2971_v62 = vsub.f32 %v2970_v60, %v7148_v46 }
 0x377   : > { %v3167_v4 = vsub.f32 %v3166_v63, %v7148_v46  ;;  %v3230_v7 = vsub.f32 %v3229_v1, %v7148_v46  ;;  %v3188_v9 = vsub.f32 %v3187_v5, %v7148_v46  ;;  %v3209_v10 = vsub.f32 %v3208_v6, %v7148_v46 }
 0x378   : > { %v2928_v51 = vsub.f32 %v2926_v50, %v2927_v49  ;;  %v3253_v13 = vsub.f32 %v3252_v11, %v7148_v46  ;;  %v3279_v18 = vsub.f32 %v3278_v14, %v7148_v46  ;;  %v2933_v23 = vsub.f32 %v2932_v19, %v7148_v46 }
 0x379   : > { %v2992_v26 = vsub.f32 %v2991_v24, %v7148_v46  ;;  %v3013_v30 = vsub.f32 %v3012_v29, %v7148_v46  ;;  %v3076_v34 = vsub.f32 %v3075_v59, %v7148_v46  ;;  %v3034_v39 = vsub.f32 %v3033_v38, %v7148_v46 }
 0x37a   : > { %v2929_v52 = vmax.f32 %v2928_v51, 0.0  ;;  %v3055_v43 = vsub.f32 %v3054_v42, %v7148_v46  ;;  %v3099_v47 = vsub.f32 %v3098_v45, %v7148_v46  ;;  %v3124_v51 = vld [vmem:[#allocation4 + $0x4] sm:$0xf] }
 0x37c   : > { %v2930_v54 = vadd.f32 1e-05, %v2929_v52  ;;  %v3125_v52 = vsub.f32 %v3124_v51, %v7148_v46 }
 0x37e   : > { %6506 = vrsqrt.f32 %v2930_v54 }
 0x38b   : > { %v7153_v58 = vpop.eup %6506 }
 0x38c   : > { %v2951_v61 = vmul.f32 %v7153_v58, %v2950_v56  ;;  %v2972_v3 = vmul.f32 %v7153_v58, %v2971_v62  ;;  %v7165_v12 = vmul.f32 %v7153_v58, %v3167_v4  ;;  %v7169_v15 = vmul.f32 %v7153_v58, %v3230_v7  ;;  %v3145_v56 = vld [vmem:[#allocation4 + $0x4] sm:$0xf] }
 0x38d   : > { %v7172_v16 = vmul.f32 %v7153_v58, %v3188_v9  ;;  %v7175_v17 = vmul.f32 %v7153_v58, %v3209_v10  ;;  %v7179_v22 = vmul.f32 %v7153_v58, %v3253_v13  ;;  %v7183_v25 = vmul.f32 %v7153_v58, %v3279_v18 }
 0x38e   : > { %v2952_v2 = vmax.f32 %v2951_v61, 0.0  ;;  %v2973_v20 = vmax.f32 %v2972_v3, 0.0  ;;  %v7189_v27 = vmul.f32 %v7153_v58, %v2933_v23  ;;  %v2993_v28 = vmul.f32 %v7153_v58, %v2992_v26 }
 0x38f   : > { %v3014_v33 = vmul.f32 %v7153_v58, %v3013_v30  ;;  %v3077_v36 = vmul.f32 %v7153_v58, %v3076_v34  ;;  %v3035_v40 = vmul.f32 %v7153_v58, %v3034_v39  ;;  %v3056_v44 = vmul.f32 %v7153_v58, %v3055_v43 }
 0x390   : > { %2957 = vrot.lane.b32.xlu1 %v2952_v2, %s6521_s21  ;;  %2954 = vrot.lane.b32.xlu0 %v2952_v2, %s7781_s19  ;;  %v2994_v32 = vmax.f32 %v2993_v28, 0.0  ;;  %s6572_s19 = smov 57   ;;  %v3100_v50 = vmul.f32 %v7153_v58, %v3099_v47  ;;  %v3126_v55 = vmul.f32 %v7153_v58, %v3125_v52  ;;  %v3146_v60 = vsub.f32 %v3145_v56, %v7148_v46 }
 0x391   : > { %v3015_v35 = vmax.f32 %v3014_v33, 0.0  ;;  %v3078_v37 = vmax.f32 %v3077_v36, 0.0  ;;  %v3036_v41 = vmax.f32 %v3035_v40, 0.0  ;;  %v3057_v49 = vmax.f32 %v3056_v44, 0.0 }
 0x392   : > { %v3101_v54 = vmax.f32 %v3100_v50, 0.0  ;;  %v3127_v61 = vmax.f32 %v3126_v55, 0.0  ;;  %v3147_v62 = vmul.f32 %v7153_v58, %v3146_v60  ;;  %v3169_v1 = vmax.f32 %v7165_v12, 0.0 }
 0x393   : > { %v3232_v46 = vmax.f32 %v7169_v15, 0.0  ;;  %v3190_v58 = vmax.f32 %v7172_v16, 0.0  ;;  %v3255_v4 = vmax.f32 %v7179_v22, 0.0  ;;  %v3281_v5 = vmax.f32 %v7183_v25, 0.0 }
 0x394   : > { %2960 = vrot.lane.b32.xlu1 %v2952_v2, %s6518_s18  ;;  %2975 = vrot.lane.b32.xlu0 %v2973_v20, %s6562_s15  ;;  %v3148_v63 = vmax.f32 %v3147_v62, 0.0  ;;  %v3211_v2 = vmax.f32 %v7175_v17, 0.0  ;;  %v3106_v3 = vcombine.high %v3101_v54, %v3101_v54  ;;  %v2935_v7 = vmax.f32 %v7189_v27, 0.0 }
 0x395   : > { %v3260_v6 = vcombine.high %v3255_v4, %v3255_v4 }
 0x398   : > { %2978 = vrot.lane.b32.xlu1 %v2973_v20, %s6520_s20  ;;  %2981 = vrot.lane.b32.xlu0 %v2973_v20, %s6523_s23 }
 0x39c   : > { %2996 = vrot.lane.b32.xlu1 %v2994_v32, %s7779_s11  ;;  %2999 = vrot.lane.b32.xlu0 %v2994_v32, %s6566_s9  ;;  %s6570_s11 = smov 77  }
 0x3a0   : > { %3002 = vrot.lane.b32.xlu1 %v2994_v32, %s6525_s25  ;;  %3017 = vrot.lane.b32.xlu0 %v3015_v35, %s6567_s6  ;;  %s6571_s6 = smov 55  }
 0x3a4   : > { %3020 = vrot.lane.b32.xlu1 %v3015_v35, %s6568_s8  ;;  %3080 = vrot.lane.b32.xlu0 %v3078_v37, %s6540_s16  ;;  %s6573_s16 = smov 23  }
 0x3a8   : > { %3083 = vrot.lane.b32.xlu1 %v3078_v37, %s6569_s10  ;;  %3023 = vrot.lane.b32.xlu0 %v3015_v35, %s6570_s11 }
 0x3ac   : > { %3038 = vrot.lane.b32.xlu1 %v3036_v41, %s6571_s6  ;;  %3041 = vrot.lane.b32.xlu0 %v3036_v41, %s6572_s19  ;;  %s6575_s6 = smov 37  }
 0x3b0   : > { %3086 = vrot.lane.b32.xlu1 %v3078_v37, %s6573_s16  ;;  %3044 = vrot.lane.b32.xlu0 %v3036_v41, %s6574_s7 }
 0x3b4   : > { %3059 = vrot.lane.b32.xlu1 %v3057_v49, %s6575_s6  ;;  %3062 = vrot.lane.b32.xlu0 %v3057_v49, %s6576_s5  ;;  %s7880_s6 = smov 110  }
 0x3b8   : > { %3065 = vrot.lane.b32.xlu1 %v3057_v49, %s6577_s4  ;;  %3107 = vrot.lane.b32.xlu0 %v3101_v54, %s6518_s18 }
 0x3bc   : > { %3132 = vrot.lane.b32.xlu1 %v3127_v61, %s6523_s23  ;;  %3103 = vrot.lane.b32.xlu0 %v3101_v54, %s6521_s21  ;;  %s6578_s21 = smov 25  }
 0x3c0   : > { %3150 = vrot.lane.b32.xlu1 %v3148_v63, %s6566_s9  ;;  %3129 = vrot.lane.b32.xlu0 %v3127_v61, %s6520_s20  ;;  %s7854_s9 = smov 50  }
 0x3c4   : > { %3156 = vrot.lane.b32.xlu1 %v3148_v63, %s6524_s24  ;;  %3135 = vrot.lane.b32.xlu0 %v3127_v61, %s6522_s22  ;;  %s6579_s24 = smov 61  }
 0x3c8   : > { %3174 = vrot.lane.b32.xlu1 %v3169_v1, %s6570_s11  ;;  %3153 = vrot.lane.b32.xlu0 %v3148_v63, %s6525_s25  ;;  %s6580_s25 = smov 5   ;;  %s7851_s11 = smov 32  }
 0x3cc   : > { %3237 = vrot.lane.b32.xlu1 %v3232_v46, %s6573_s16  ;;  %3171 = vrot.lane.b32.xlu0 %v3169_v1, %s6568_s8  ;;  %s7877_s16 = smov 127   ;;  %s7967_s8 = sshll.u32 %s7969_s13, 3 }
 0x3cd   : > { %s6588_s13 = smov 114  }
 0x3d0   : > { %3192 = vrot.lane.b32.xlu1 %v3190_v58, %s6572_s19  ;;  %3234 = vrot.lane.b32.xlu0 %v3232_v46, %s6569_s10  ;;  %s6581_s19 = smov 43  }
 0x3d4   : > { %3240 = vrot.lane.b32.xlu1 %v3232_v46, %s6578_s21  ;;  %3177 = vrot.lane.b32.xlu0 %v3169_v1, %s6526_s26  ;;  %s6582_s26 = smov 7   ;;  %s7882_s21 = smov 92  }
 0x3d8   : > { %3213 = vrot.lane.b32.xlu1 %v3211_v2, %s6576_s5  ;;  %3195 = vrot.lane.b32.xlu0 %v3190_v58, %s6574_s7  ;;  %s7845_s5 = smov 106   ;;  %s7848_s7 = smov 14  }
 0x3dc   : > { %3109 = vrot.lane.b32.xlu1 %v3106_v3, %s6518_s18  ;;  %3198 = vrot.lane.b32.xlu0 %v3190_v58, %s6579_s24  ;;  %s7883_s24 = smov 91  }
 0x3e0   : > { %3114 = vrot.lane.b32.xlu1 %v3106_v3, %s6580_s25  ;;  %3216 = vrot.lane.b32.xlu0 %v3211_v2, %s6577_s4  ;;  %s6583_s4 = smov 117  }
 0x3e4   : > { %3219 = vrot.lane.b32.xlu1 %v3211_v2, %s6581_s19  ;;  %3261 = vrot.lane.b32.xlu0 %v3255_v4, %s6580_s25  ;;  %s6590_s19 = smov 104  }
 0x3e8   : > { %3286 = vrot.lane.b32.xlu1 %v3281_v5, %s6522_s22  ;;  %3257 = vrot.lane.b32.xlu0 %v3255_v4, %s6518_s18  ;;  %s7828_s22 = smov 34  }
 0x3ec   : > { %3263 = vrot.lane.b32.xlu1 %v3260_v6, %s6580_s25  ;;  %3283 = vrot.lane.b32.xlu0 %v3281_v5, %s6523_s23 }
 0x3f0   : > { %3268 = vrot.lane.b32.xlu1 %v3260_v6, %s6582_s26  ;;  %3308 = vrot.lane.b32.xlu0 %v3255_v4, %s6580_s25 }
 0x3f4   : > { %3310 = vrot.lane.b32.xlu1 %v3260_v6, %s6580_s25  ;;  %3289 = vrot.lane.b32.xlu0 %v3281_v5, %s6583_s4  ;;  %s6587_s25 = smov 116  }
 0x3f8   : > { %3304 = vrot.lane.b32.xlu1 %v3255_v4, %s6518_s18  ;;  %3314 = vrot.lane.b32.xlu0 %v3260_v6, %s6582_s26  ;;  %s7822_s18 = smov 90  }
 0x3fc   : > { %2940 = vrot.lane.b32.xlu0 %v2935_v7, %s6520_s20  ;;  %2937 = vrot.lane.b32.xlu1 %v2935_v7, %s6562_s15  ;;  %s7825_s20 = smov 108  }
 0x400   : > { %2943 = vrot.lane.b32.xlu1 %v2935_v7, %s6523_s23  ;;  %s7831_s23 = smov 52  }
 0x402   : > { %v2958_v9 = vpop.permute.xlu1 %2957  ;;  %v2955_v10 = vpop.permute.xlu0 %2954 }
 0x403   : > { %v2963_v11 = vsel %vm7810_vm10, %v2955_v10, %v2958_v9  ;;  %vm7824_vm10 = vmmov %vm7815_vm4 }
 0x406   : > { %v2961_v12 = vpop.permute.xlu1 %2960  ;;  %v2976_v13 = vpop.permute.xlu0 %2975 }
 0x407   : > { %v2964_v14 = vsel %vm7811_vm14, %v2963_v11, %v2961_v12  ;;  %vm7826_vm14 = vmmov %vm7823_vm0 }
 0x408   : > { %2966 = vrot.lane.b32.xlu0 %v2964_v14, %s6542_s14  ;;  %s7834_s14 = smov 70  }
 0x40a   : > { %v2979_v15 = vpop.permute.xlu1 %2978  ;;  %v2982_v16 = vpop.permute.xlu0 %2981 }
 0x40b   : > { %v2984_v17 = vsel %vm7812_vm3, %v2976_v13, %v2979_v15  ;;  %vm7827_vm3 = vmmov %vm7815_vm4 }
 0x40c   : > { %v2985_v18 = vsel %vm7813_vm5, %v2984_v17, %v2982_v16  ;;  %vm7829_vm5 = vmmov %vm7823_vm0 }
 0x40d   : > { %2987 = vrot.lane.b32.xlu1 %v2985_v18, %s6543_s27  ;;  %s7837_s27 = smov 88  }
 0x40e   : > { %v2997_v19 = vpop.permute.xlu1 %2996  ;;  %v3000_v20 = vpop.permute.xlu0 %2999 }
 0x40f   : > { %v3005_v22 = vsel %vm7814_vm1, %v2997_v19, %v3000_v20  ;;  %vm7830_vm1 = vmmov %vm7827_vm3 }
 0x412   : > { %v3003_v23 = vpop.permute.xlu1 %3002  ;;  %v3018_v24 = vpop.permute.xlu0 %3017 }
 0x413   : > { %v3006_v25 = vsel %vm7815_vm4, %v3005_v22, %v3003_v23  ;;  %vm7832_vm4 = vmmov %vm7823_vm0 }
 0x414   : > { %3008 = vrot.lane.b32.xlu0 %v3006_v25, %s6544_s28  ;;  %s7840_s28 = smov 16  }
 0x416   : > { %v3021_v26 = vpop.permute.xlu1 %3020  ;;  %v3081_v27 = vpop.permute.xlu0 %3080 }
 0x417   : > { %v3026_v28 = vsel %vm7816_vm2, %v3018_v24, %v3021_v26  ;;  %vm7833_vm2 = vmmov %vm7830_vm1 }
 0x41a   : > { %v3084_v29 = vpop.permute.xlu1 %3083  ;;  %v3024_v30 = vpop.permute.xlu0 %3023 }
 0x41b   : > { %v3027_v32 = vsel %vm7817_vm15, %v3026_v28, %v3024_v30  ;;  %v3089_v34 = vsel %vm7818_vm11, %v3081_v27, %v3084_v29  ;;  %vm3111_vm15 = vcmask 23552   ;;  %vm7835_vm11 = vmmov %vm7823_vm0 }
 0x41c   : > { %3029 = vrot.lane.b32.xlu1 %v3027_v32, %s6545_s29  ;;  %s7842_s29 = smov 124  }
 0x41e   : > { %v3039_v33 = vpop.permute.xlu1 %3038  ;;  %v3042_v59 = vpop.permute.xlu0 %3041 }
 0x41f   : > { %v3047_v35 = vsel %vm7819_vm13, %v3039_v33, %v3042_v59  ;;  %vm7836_vm13 = vmmov %vm7830_vm1 }
 0x422   : > { %v3087_v36 = vpop.permute.xlu1 %3086  ;;  %v3045_v37 = vpop.permute.xlu0 %3044 }
 0x423   : > { %v3090_v38 = vsel %vm7820_vm6, %v3089_v34, %v3087_v36  ;;  %v3048_v39 = vsel %vm7821_vm7, %v3047_v35, %v3045_v37  ;;  %vm7838_vm6 = vmmov %vm7823_vm0 }
 0x424   : > { %3092 = vrot.lane.b32.xlu0 %v3090_v38, %s6546_s30  ;;  %3050 = vrot.lane.b32.xlu1 %v3048_v39, %s7822_s18  ;;  %vm7839_vm7 = vmmov %vm7830_vm1 }
 0x426   : > { %v3060_v40 = vpop.permute.xlu1 %3059  ;;  %v3063_v41 = vpop.permute.xlu0 %3062 }
 0x427   : > { %v3068_v42 = vsel %vm7823_vm0, %v3060_v40, %v3063_v41 }
 0x42a   : > { %v3066_v43 = vpop.permute.xlu1 %3065  ;;  %v3108_v44 = vpop.permute.xlu0 %3107 }
 0x42b   : > { %v3069_v45 = vsel %vm7824_vm10, %v3068_v42, %v3066_v43  ;;  %vm7841_vm10 = vmmov %vm7830_vm1 }
 0x42c   : > { %3071 = vrot.lane.b32.xlu0 %v3069_v45, %s7825_s20 }
 0x42e   : > { %v3133_v47 = vpop.permute.xlu1 %3132  ;;  %v3104_v49 = vpop.permute.xlu0 %3103 }
 0x432   : > { %v3151_v50 = vpop.permute.xlu1 %3150  ;;  %v3130_v51 = vpop.permute.xlu0 %3129 }
 0x433   : > { %v3138_v52 = vsel %vm7826_vm14, %v3130_v51, %v3133_v47  ;;  %vm7843_vm14 = vmmov %vm7823_vm0 }
 0x436   : > { %v3157_v54 = vpop.permute.xlu1 %3156  ;;  %v3136_v55 = vpop.permute.xlu0 %3135 }
 0x437   : > { %v3139_v56 = vsel %vm7827_vm3, %v3138_v52, %v3136_v55  ;;  %vm7844_vm3 = vmmov %vm7830_vm1 }
 0x438   : > { %3141 = vrot.lane.b32.xlu0 %v3139_v56, %s7828_s22 }
 0x43a   : > { %v3175_v60 = vpop.permute.xlu1 %3174  ;;  %v3154_v61 = vpop.permute.xlu0 %3153 }
 0x43b   : > { %v3159_v62 = vsel %vm7829_vm5, %v3151_v50, %v3154_v61  ;;  %vm3265_vm5 = vcmask 39936  }
 0x43c   : > { %v3160_v63 = vsel %vm7830_vm1, %v3159_v62, %v3157_v54  ;;  %vm7846_vm1 = vmmov %vm7823_vm0 }
 0x43d   : > { %3162 = vrot.lane.b32.xlu1 %v3160_v63, %s7831_s23 }
 0x43e   : > { %v3238_v1 = vpop.permute.xlu1 %3237  ;;  %v3172_v46 = vpop.permute.xlu0 %3171 }
 0x43f   : > { %v3180_v3 = vsel %vm7832_vm4, %v3172_v46, %v3175_v60  ;;  %vm7847_vm4 = vmmov %vm7833_vm2 }
 0x442   : > { %v3193_v58 = vpop.permute.xlu1 %3192  ;;  %v3235_v2 = vpop.permute.xlu0 %3234 }
 0x443   : > { %v3243_v19 = vsel %vm7823_vm0, %v3235_v2, %v3238_v1 }
 0x446   : > { %v3241_v4 = vpop.permute.xlu1 %3240  ;;  %v3178_v5 = vpop.permute.xlu0 %3177 }
 0x447   : > { %v3181_v6 = vsel %vm7833_vm2, %v3180_v3, %v3178_v5  ;;  %v3244_v23 = vsel %vm7841_vm10, %v3243_v19, %v3241_v4  ;;  %vm7849_vm2 = vmmov %vm7823_vm0  ;;  %vm7858_vm10 = vcmask 289936   ;;  %v5956_v19 = vld [vmem:[%s7727_s2 + $0x4] sm:$0xf] }
 0x448   : > { %3183 = vrot.lane.b32.xlu0 %v3181_v6, %s7834_s14 }
 0x44a   : > { %v3214_v7 = vpop.permute.xlu1 %3213  ;;  %v3196_v9 = vpop.permute.xlu0 %3195 }
 0x44b   : > { %v3201_v10 = vsel %vm7835_vm11, %v3193_v58, %v3196_v9  ;;  %vm7852_vm11 = vmmov %vm7823_vm0  ;;  %v3325_v9 = vld [vmem:[%s7727_s2] sm:$0xf] }
 0x44e   : > { %v3110_v11 = vpop.permute.xlu1 %3109  ;;  %v3199_v12 = vpop.permute.xlu0 %3198 }
 0x44f   : > { %v3112_v13 = vsel %vm3111_vm15, %v3108_v44, %v3110_v11  ;;  %v3202_v14 = vsel %vm7836_vm13, %v3201_v10, %v3199_v12  ;;  %vm7850_vm15 = vmmov %vm7844_vm3 }
 0x450   : > { %3204 = vrot.lane.b32.xlu0 %v3202_v14, %s7837_s27  ;;  %v3117_v16 = vsel %vm7838_vm6, %v3104_v49, %v3112_v13  ;;  %vm7853_vm13 = vmmov %vm7844_vm3 }
 0x451   : > { %vm7855_vm6 = vmmov %vm7823_vm0  ;;  %vm7857_vm0 = vcmask 142336  }
 0x452   : > { %v3115_v15 = vpop.permute.xlu1 %3114  ;;  %v3217_v17 = vpop.permute.xlu0 %3216 }
 0x453   : > { %v3118_v18 = vsel %vm7839_vm7, %v3117_v16, %v3115_v15  ;;  %v3222_v24 = vsel %vm7843_vm14, %v3214_v7, %v3217_v17  ;;  %vm7856_vm7 = vmmov %vm7844_vm3  ;;  %vm7859_vm14 = vcmask 437536  }
 0x454   : > { %3120 = vrot.lane.b32.xlu1 %v3118_v18, %s7840_s28 }
 0x456   : > { %v3220_v20 = vpop.permute.xlu1 %3219  ;;  %v3262_v22 = vpop.permute.xlu0 %3261 }
 0x457   : > { %v3223_v27 = vsel %vm7844_vm3, %v3222_v24, %v3220_v20  ;;  %vm7860_vm3 = vcmask 585136   ;;  %v5961_v24 = vld [vmem:[%s7727_s2 + $0x8] sm:$0xf] }
 0x458   : > { %3246 = vrot.lane.b32.xlu1 %v3244_v23, %s7842_s29 }
 0x45a   : > { %v3287_v25 = vpop.permute.xlu1 %3286  ;;  %v3258_v26 = vpop.permute.xlu0 %3257 }
 0x45c   : > { %3225 = vrot.lane.b32.xlu1 %v3223_v27, %s7845_s5 }
 0x45e   : > { %v3264_v28 = vpop.permute.xlu1 %3263  ;;  %v3284_v29 = vpop.permute.xlu0 %3283 }
 0x45f   : > { %v3266_v30 = vsel %vm3265_vm5, %v3262_v22, %v3264_v28  ;;  %v3292_v35 = vsel %vm7849_vm2, %v3284_v29, %v3287_v25  ;;  %vm7864_vm2 = vcmask 1027936   ;;  %v5964_v28 = vld [vmem:[%s7727_s2 + $0xc] sm:$0xf] }
 0x460   : > { %v3271_v33 = vsel %vm7846_vm1, %v3258_v26, %v3266_v30  ;;  %vm7862_vm1 = vcmask 880336  }
 0x462   : > { %v3269_v32 = vpop.permute.xlu1 %3268  ;;  %v3309_v59 = vpop.permute.xlu0 %3308 }
 0x463   : > { %v3272_v34 = vsel %vm7847_vm4, %v3271_v33, %v3269_v32  ;;  %vm7863_vm4 = vcmask 1031168   ;;  %v5967_v33 = vld [vmem:[%s7727_s2 + $0x10] sm:$0xf] }
 0x464   : > { %3274 = vrot.lane.b32.xlu0 %v3272_v34, %s7848_s7 }
 0x466   : > { %v3311_v36 = vpop.permute.xlu1 %3310  ;;  %v3290_v37 = vpop.permute.xlu0 %3289 }
 0x467   : > { %v3293_v38 = vsel %vm7850_vm15, %v3292_v35, %v3290_v37  ;;  %v3312_v39 = vsel %vm3265_vm5, %v3309_v59, %v3311_v36  ;;  %vm7861_vm5 = vcmask 732736   ;;  %vm7865_vm15 = vcmask 1043456   ;;  %v5970_v36 = vld [vmem:[%s7727_s2 + $0x14] sm:$0xf] }
 0x468   : > { %3295 = vrot.lane.b32.xlu1 %v3293_v38, %s7851_s11 }
 0x46a   : > { %v3305_v40 = vpop.permute.xlu1 %3304  ;;  %v3315_v41 = vpop.permute.xlu0 %3314 }
 0x46b   : > { %v3317_v42 = vsel %vm7852_vm11, %v3305_v40, %v3312_v39  ;;  %vm7866_vm11 = vcmask 273536   ;;  %v5973_v40 = vld [vmem:[%s7727_s2 + $0x18] sm:$0xf] }
 0x46c   : > { %v3318_v43 = vsel %vm7853_vm13, %v3317_v42, %v3315_v41  ;;  %vm7867_vm13 = vcmask 421136  }
 0x46d   : > { %3320 = vrot.lane.b32.xlu0 %v3318_v43, %s7854_s9 }
 0x46e   : > { %v2938_v44 = vpop.permute.xlu1 %2937  ;;  %v2941_v45 = vpop.permute.xlu0 %2940 }
 0x46f   : > { %v2946_v47 = vsel %vm7855_vm6, %v2938_v44, %v2941_v45  ;;  %vm7868_vm6 = vcmask 568736   ;;  %v5976_v44 = vld [vmem:[%s7727_s2 + $0x1c] sm:$0xf] }
 0x472   : > { %v2944_v49 = vpop.permute.xlu1 %2943 }
 0x473   : > { %v2947_v50 = vsel %vm7856_vm7, %v2946_v47, %v2944_v49  ;;  %vm7869_vm7 = vcmask 716336  }
 0x474   : > { %2948 = vst.msk [vmem:[#allocation3] sm:$0xf] %vm7857_vm0, %v2947_v50  ;;  %vm7871_vm0 = vcmask 1014784   ;;  %v5979_v50 = vld [vmem:[%s7727_s2 + $0x20] sm:$0xf] }
 0x47a   : > { %v2967_v51 = vpop.permute.xlu0 %2966 }
 0x47b   : > { %2969 = vst.msk [vmem:[#allocation3] sm:$0xf] %vm7858_vm10, %v2967_v51  ;;  %vm7872_vm10 = vcmask 1011536  }
 0x47f   : > { %v2988_v52 = vpop.permute.xlu1 %2987 }
 0x480   : > { %2990 = vst.msk [vmem:[#allocation3] sm:$0xf] %vm7859_vm14, %v2988_v52  ;;  %vm7873_vm14 = vnez %v7791_v0 }
 0x486   : > { %v3009_v54 = vpop.permute.xlu0 %3008 }
 0x487   : > { %3011 = vst.msk [vmem:[#allocation3] sm:$0xf] %vm7860_vm3, %v3009_v54  ;;  %vm7874_vm3 = vcmask 31744  }
 0x48e   : > { %v3030_v55 = vpop.permute.xlu1 %3029 }
 0x48f   : > { %3032 = vst.msk [vmem:[#allocation3] sm:$0xf] %vm7861_vm5, %v3030_v55  ;;  %vm7875_vm5 = vcmask 257136  }
 0x496   : > { %v3051_v56 = vpop.permute.xlu1 %3050  ;;  %v3093_v60 = vpop.permute.xlu0 %3092 }
 0x497   : > { %3053 = vst.msk [vmem:[#allocation3] sm:$0xf] %vm7862_vm1, %v3051_v56  ;;  %v3094_v61 = vrot.slane %v3093_v60, 4  ;;  %vm7876_vm1 = vmmov 0   ;;  %v5982_v56 = vld [vmem:[%s7727_s2 + $0x4] sm:$0xf] }
 0x499   : > { %v3095_v63 = vsel %vm7863_vm4, %v3094_v61, %v3093_v60  ;;  %vm7878_vm4 = vcmask 404736   ;;  %v4101_v61 = vld [vmem:[%s7727_s2] sm:$0xf] }
 0x49e   : > { %v3072_v62 = vpop.permute.xlu0 %3071 }
 0x49f   : > { %3074 = vst.msk [vmem:[#allocation3] sm:$0xf] %vm7864_vm2, %v3072_v62  ;;  %vm7879_vm2 = vcmask 552336  }
 0x4a0   : > { %3097 = vst.msk [vmem:[#allocation3] sm:$0xff] %vm6759_vm12, %v3095_v63  ;;  %vm7870_vm12 = vcmask 863936  }
 0x4a7   : > { %v3326_v1 = vld [vmem:[#allocation3] sm:$0xf] }
 0x4a8   : > { %6287 = vmatpush3.msk.msra.mxu0 %vm7865_vm15, %v3326_v1  ;;  %vm7881_vm15 = vnez %v7793_v8  ;;  %v5987_v1 = vld [vmem:[%s7727_s2 + $0x8] sm:$0xf] }
 0x4a9   : > { %6296 = vmatprep.subr.mxu0 %v6548_v48  ;;  %6289 = vmatmul.mubr.msk.f32.vlgmr.msra.gmra.mxu0 %vm7874_vm3, %v3325_v9 }
 0x4aa   : > { %v3142_v46 = vpop.permute.xlu0 %3141  ;;  %6298 = vmatprep.mubr.msk.f32.mxu0 %vm7876_vm1, %v6548_v48 }
 0x4af   : > { %v3163_v58 = vpop.permute.xlu1 %3162 }
 0x4ba   : > { %v3184_v2 = vpop.permute.xlu0 %3183 }
 0x4c2   : > { %v3205_v4 = vpop.permute.xlu0 %3204 }
 0x4c6   : > { %v3121_v3 = vpop.permute.xlu1 %3120 }
 0x4c7   : > { %3123 = vst.msk [vmem:[#allocation3 + $0x4] sm:$0xf] %vm7866_vm11, %v3121_v3  ;;  %vm7884_vm11 = vcmask 1039360   ;;  %v5990_v3 = vld [vmem:[%s7727_s2 + $0xc] sm:$0xf] }
 0x4c8   : > { %3144 = vst.msk [vmem:[#allocation3 + $0x4] sm:$0xf] %vm7867_vm13, %v3142_v46  ;;  %vm7885_vm13 = vcmask 1043456  }
 0x4c9   : > { %3165 = vst.msk [vmem:[#allocation3 + $0x4] sm:$0xf] %vm7868_vm6, %v3163_v58  ;;  %vm7886_vm6 = vmmov %vm7874_vm3 }
 0x4ca   : > { %3186 = vst.msk [vmem:[#allocation3 + $0x4] sm:$0xf] %vm7869_vm7, %v3184_v2  ;;  %v3247_v53 = vpop.permute.xlu1 %3246  ;;  %vm7887_vm7 = vcmask 1031168  }
 0x4cb   : > { %v3248_v5 = vrot.slane %v3247_v53, 4  ;;  %3207 = vst.msk [vmem:[#allocation3 + $0x4] sm:$0xf] %vm7870_vm12, %v3205_v4  ;;  %vm7888_vm12 = vmmov %vm7885_vm13 }
 0x4cd   : > { %v3249_v7 = vsel %vm7871_vm0, %v3248_v5, %v3247_v53  ;;  %vm7889_vm0 = vmmov %vm7874_vm3 }
 0x4ce   : > { %v3226_v6 = vpop.permute.xlu1 %3225  ;;  %vm7892_vm3 = vmmov %vm7889_vm0 }
 0x4cf   : > { %3228 = vst.msk [vmem:[#allocation3 + $0x4] sm:$0xf] %vm7872_vm10, %v3226_v6  ;;  %vm7890_vm10 = vcmask 900096   ;;  %v5993_v6 = vld [vmem:[%s7727_s2 + $0x10] sm:$0xf] }
 0x4d0   : > { %3251 = vst.msk [vmem:[#allocation3 + $0x4] sm:$0xff] %vm7873_vm14, %v3249_v7  ;;  %vm7891_vm14 = vmmov %vm7888_vm12 }
 0x4d6   : > { %v3275_v10 = vpop.permute.xlu0 %3274 }
 0x4d7   : > { %3277 = vst.msk [vmem:[#allocation3 + $0x8] sm:$0xf] %vm7875_vm5, %v3275_v10  ;;  %v3329_v11 = vld [vmem:[#allocation3] sm:$0xff]  ;;  %vm7893_vm5 = vcmask 891904  }
 0x4d8   : > { %3332 = vrot.lane.b32.xlu1 %v3329_v11, %s7877_s16  ;;  %v3331_v12 = vcombine.high %v3329_v11, %v3329_v11  ;;  %v4102_v54 = vld [vmem:[#allocation3 + $0x4] sm:$0xf] }
 0x4da   : > { %3334 = vrot.lane.b32.xlu0 %v3331_v12, %s7877_s16  ;;  %v3296_v0 = vpop.permute.xlu1 %3295 }
 0x4db   : > { %3298 = vst.msk [vmem:[#allocation3 + $0x8] sm:$0xf] %vm7878_vm4, %v3296_v0  ;;  %vm7894_vm4 = vmmov %vm7888_vm12 }
 0x4dc   : > { %3493 = vrot.lane.b32.xlu1 %v3329_v11, %s6546_s30 }
 0x4de   : > { %3495 = vrot.lane.b32.xlu0 %v3331_v12, %s6546_s30 }
 0x4df   : > { %v3321_v13 = vpop.permute.xlu0 %3320 }
 0x4e0   : > { %3323 = vst.msk [vmem:[#allocation3 + $0x8] sm:$0xf] %vm7879_vm2, %v3321_v13  ;;  %3579 = vrot.lane.b32.xlu1 %v3329_v11, %s7880_s6  ;;  %vm7895_vm2 = vmmov %vm7889_vm0 }
 0x4e1   : > { %3324 = vst.msk [vmem:[#allocation3 + $0x8] sm:$0xff] %vm7881_vm15, %v6548_v48  ;;  %vm7896_vm15 = vcmask 883712  }
 0x4e2   : > { %3581 = vrot.lane.b32.xlu0 %v3331_v12, %s7880_s6 }
 0x4e4   : > { %3665 = vrot.lane.b32.xlu1 %v3329_v11, %s6562_s15 }
 0x4e6   : > { %3667 = vrot.lane.b32.xlu0 %v3331_v12, %s6562_s15 }
 0x4e8   : > { %3751 = vrot.lane.b32.xlu1 %v3329_v11, %s7825_s20  ;;  %v4104_v8 = vld [vmem:[#allocation3 + $0x4] sm:$0xff] }
 0x4e9   : > { %v4106_v14 = vcombine.high %v4104_v8, %v4104_v8  ;;  %v4872_v15 = vld [vmem:[#allocation3 + $0x8] sm:$0xff] }
 0x4ea   : > { %3753 = vrot.lane.b32.xlu0 %v3331_v12, %s7825_s20  ;;  %v4874_v16 = vcombine.high %v4872_v15, %v4872_v15 }
 0x4ec   : > { %3837 = vrot.lane.b32.xlu1 %v3329_v11, %s7882_s21 }
 0x4ee   : > { %3839 = vrot.lane.b32.xlu0 %v3331_v12, %s7882_s21 }
 0x4f0   : > { %3923 = vrot.lane.b32.xlu1 %v3329_v11, %s7883_s24 }
 0x4f2   : > { %3925 = vrot.lane.b32.xlu0 %v3331_v12, %s7883_s24 }
 0x4f4   : > { %4009 = vrot.lane.b32.xlu1 %v3329_v11, %s7822_s18  ;;  %v5996_v11 = vld [vmem:[%s7727_s2 + $0x14] sm:$0xf] }
 0x4f6   : > { %4011 = vrot.lane.b32.xlu0 %v3331_v12, %s7822_s18 }
 0x4f8   : > { %4107 = vrot.lane.b32.xlu1 %v4104_v8, %s7877_s16 }
 0x4fa   : > { %4109 = vrot.lane.b32.xlu0 %v4106_v14, %s7877_s16 }
 0x4fc   : > { %4267 = vrot.lane.b32.xlu1 %v4104_v8, %s6546_s30 }
 0x4fe   : > { %4269 = vrot.lane.b32.xlu0 %v4106_v14, %s6546_s30 }
 0x500   : > { %4352 = vrot.lane.b32.xlu1 %v4104_v8, %s7880_s6 }
 0x502   : > { %4354 = vrot.lane.b32.xlu0 %v4106_v14, %s7880_s6 }
 0x504   : > { %4437 = vrot.lane.b32.xlu1 %v4104_v8, %s6562_s15 }
 0x506   : > { %4439 = vrot.lane.b32.xlu0 %v4106_v14, %s6562_s15 }
 0x508   : > { %4522 = vrot.lane.b32.xlu1 %v4104_v8, %s7825_s20 }
 0x50a   : > { %4524 = vrot.lane.b32.xlu0 %v4106_v14, %s7825_s20 }
 0x50c   : > { %4607 = vrot.lane.b32.xlu1 %v4104_v8, %s7882_s21 }
 0x50e   : > { %4609 = vrot.lane.b32.xlu0 %v4106_v14, %s7882_s21 }
 0x510   : > { %4692 = vrot.lane.b32.xlu1 %v4104_v8, %s7883_s24 }
 0x512   : > { %4694 = vrot.lane.b32.xlu0 %v4106_v14, %s7883_s24 }
 0x514   : > { %4777 = vrot.lane.b32.xlu1 %v4104_v8, %s7822_s18  ;;  %v5999_v8 = vld [vmem:[%s7727_s2 + $0x18] sm:$0xf] }
 0x516   : > { %4779 = vrot.lane.b32.xlu0 %v4106_v14, %s7822_s18 }
 0x518   : > { %4875 = vrot.lane.b32.xlu1 %v4872_v15, %s7877_s16 }
 0x51a   : > { %4877 = vrot.lane.b32.xlu0 %v4874_v16, %s7877_s16 }
 0x51c   : > { %5035 = vrot.lane.b32.xlu1 %v4872_v15, %s6546_s30 }
 0x51e   : > { %5037 = vrot.lane.b32.xlu0 %v4874_v16, %s6546_s30 }
 0x520   : > { %5120 = vrot.lane.b32.xlu1 %v4872_v15, %s7880_s6 }
 0x522   : > { %5122 = vrot.lane.b32.xlu0 %v4874_v16, %s7880_s6 }
 0x524   : > { %5205 = vrot.lane.b32.xlu1 %v4872_v15, %s6562_s15 }
 0x526   : > { %5207 = vrot.lane.b32.xlu0 %v4874_v16, %s6562_s15  ;;  %s6589_s15 = smov 112  }
 0x528   : > { %5290 = vrot.lane.b32.xlu1 %v4872_v15, %s7825_s20 }
 0x52a   : > { %5292 = vrot.lane.b32.xlu0 %v4874_v16, %s7825_s20 }
 0x52c   : > { %5375 = vrot.lane.b32.xlu1 %v4872_v15, %s7882_s21 }
 0x52e   : > { %5377 = vrot.lane.b32.xlu0 %v4874_v16, %s7882_s21  ;;  %s7650_s21 = scalar_lea.vmem %s7728_s3, %s7967_s8 }
 0x530   : > { %5460 = vrot.lane.b32.xlu1 %v4872_v15, %s7883_s24 }
 0x532   : > { %5462 = vrot.lane.b32.xlu0 %v4874_v16, %s7883_s24  ;;  %s6586_s24 = smov 118  }
 0x534   : > { %5545 = vrot.lane.b32.xlu1 %v4872_v15, %s7822_s18 }
 0x536   : > { %5547 = vrot.lane.b32.xlu0 %v4874_v16, %s7822_s18 }
 0x54a   : > { %v3333_v17 = vpop.permute.xlu1 %3332 }
 0x54c   : > { %v3335_v18 = vpop.permute.xlu0 %3334 }
 0x54d   : > { %v3336_v20 = vsel %vm7884_vm11, %v3333_v17, %v3335_v18  ;;  %vm7897_vm11 = vmmov %vm7894_vm4  ;;  %v6002_v17 = vld [vmem:[%s7727_s2 + $0x1c] sm:$0xf] }
 0x54e   : > { %6282 = vmatpush3.msk.msra.mxu1 %vm7885_vm13, %v3336_v20  ;;  %v3494_v22 = vpop.permute.xlu1 %3493  ;;  %vm7898_vm13 = vmmov %vm7889_vm0 }
 0x54f   : > { %6291 = vmatprep.subr.mxu1 %v6548_v48  ;;  %6284 = vmatmul.mubr.msk.f32.vlgmr.msra.gmra.mxu1 %vm7886_vm6, %v5956_v19  ;;  %vm7899_vm6 = vcmask 752640  }
 0x550   : > { %v3496_v23 = vpop.permute.xlu0 %3495  ;;  %6293 = vmatprep.mubr.msk.f32.mxu1 %vm7876_vm1, %v6548_v48 }
 0x551   : > { %v3497_v25 = vsel %vm7887_vm7, %v3494_v22, %v3496_v23  ;;  %vm7900_vm7 = vmmov %vm7894_vm4  ;;  %v6005_v22 = vld [vmem:[%s7727_s2 + $0x20] sm:$0xf] }
 0x552   : > { %6292 = vmatpush3.msk.msra.mxu1 %vm7888_vm12, %v3497_v25  ;;  %v3580_v26 = vpop.permute.xlu1 %3579  ;;  %vm7901_vm12 = vmmov %vm7889_vm0 }
 0x553   : > { %6301 = vmatprep.subr.mxu1 %v6548_v48  ;;  %6294 = vmatmul.mubr.msk.f32.vlgmr.msra.gmra.mxu1 %vm7889_vm0, %v5961_v24  ;;  %vm7902_vm0 = vcmask 744448   ;;  %v4870_v24 = vld [vmem:[#allocation3 + $0x8] sm:$0xf] }
 0x554   : > { %v3582_v27 = vpop.permute.xlu0 %3581  ;;  %6303 = vmatprep.mubr.msk.f32.mxu1 %vm7876_vm1, %v6548_v48 }
 0x555   : > { %v3583_v29 = vsel %vm7890_vm10, %v3580_v26, %v3582_v27  ;;  %vm7903_vm10 = vmmov %vm7894_vm4  ;;  %v6008_v27 = vld [vmem:[%s7727_s2 + $0x4] sm:$0xf] }
 0x556   : > { %6297 = vmatpush3.msk.msra.mxu0 %vm7891_vm14, %v3583_v29  ;;  %v3666_v30 = vpop.permute.xlu1 %3665  ;;  %vm7904_vm14 = vmmov %vm7895_vm2  ;;  %v4869_v29 = vld [vmem:[%s7727_s2] sm:$0xf] }
 0x557   : > { %6306 = vmatprep.subr.mxu0 %v6548_v48  ;;  %6299 = vmatmul.mubr.msk.f32.vlgmr.msra.gmra.mxu0 %vm7892_vm3, %v5964_v28  ;;  %vm7905_vm3 = vcmask 736256  }
 0x558   : > { %v3668_v32 = vpop.permute.xlu0 %3667  ;;  %6308 = vmatprep.mubr.msk.f32.mxu0 %vm7876_vm1, %v6548_v48 }
 0x559   : > { %v3669_v59 = vsel %vm7893_vm5, %v3666_v30, %v3668_v32  ;;  %vm7906_vm5 = vmmov %vm7894_vm4 }
 0x55a   : > { %6302 = vmatpush3.msk.msra.mxu1 %vm7894_vm4, %v3669_v59  ;;  %v3752_v34 = vpop.permute.xlu1 %3751  ;;  %vm7907_vm4 = vmmov %vm7895_vm2 }
 0x55b   : > { %6311 = vmatprep.subr.mxu1 %v6548_v48  ;;  %6304 = vmatmul.mubr.msk.f32.vlgmr.msra.gmra.mxu1 %vm7895_vm2, %v5967_v33  ;;  %vm7908_vm2 = vmmov %vm7906_vm5  ;;  %v6013_v33 = vld [vmem:[%s7727_s2 + $0x8] sm:$0xf] }
 0x55c   : > { %v3754_v35 = vpop.permute.xlu0 %3753  ;;  %6313 = vmatprep.mubr.msk.f32.mxu1 %vm7876_vm1, %v6548_v48 }
 0x55d   : > { %v3755_v37 = vsel %vm7896_vm15, %v3752_v34, %v3754_v35  ;;  %vm7909_vm15 = vcmask 1039360  }
 0x55e   : > { %6307 = vmatpush3.msk.msra.mxu0 %vm7897_vm11, %v3755_v37  ;;  %v3838_v38 = vpop.permute.xlu1 %3837  ;;  %vm7910_vm11 = vmmov %vm7908_vm2 }
 0x55f   : > { %6316 = vmatprep.subr.mxu0 %v6548_v48  ;;  %6309 = vmatmul.mubr.msk.f32.vlgmr.msra.gmra.mxu0 %vm7898_vm13, %v5970_v36  ;;  %vm7911_vm13 = vmmov %vm7907_vm4  ;;  %v6016_v36 = vld [vmem:[%s7727_s2 + $0xc] sm:$0xf] }
 0x560   : > { %v3840_v39 = vpop.permute.xlu0 %3839  ;;  %6318 = vmatprep.mubr.msk.f32.mxu0 %vm7876_vm1, %v6548_v48 }
 0x561   : > { %v3841_v41 = vsel %vm7899_vm6, %v3838_v38, %v3840_v39  ;;  %vm7912_vm6 = vmmov %vm7907_vm4 }
 0x562   : > { %6312 = vmatpush3.msk.msra.mxu1 %vm7900_vm7, %v3841_v41  ;;  %v3924_v42 = vpop.permute.xlu1 %3923  ;;  %vm7913_vm7 = vcmask 1031168   ;;  %v6019_v41 = vld [vmem:[%s7727_s2 + $0x10] sm:$0xf] }
 0x563   : > { %6314 = vmatmul.mubr.msk.f32.vlgmr.msra.gmra.mxu1 %vm7901_vm12, %v5973_v40  ;;  %6321 = vmatprep.subr.mxu1 %v6548_v48  ;;  %vm7914_vm12 = vmmov %vm7908_vm2 }
 0x564   : > { %v3926_v43 = vpop.permute.xlu0 %3925  ;;  %6323 = vmatprep.mubr.msk.f32.mxu1 %vm7876_vm1, %v6548_v48 }
 0x565   : > { %v3927_v45 = vsel %vm7902_vm0, %v3924_v42, %v3926_v43  ;;  %vm7915_vm0 = vmmov %vm7907_vm4 }
 0x566   : > { %6317 = vmatpush3.msk.msra.mxu0 %vm7903_vm10, %v3927_v45  ;;  %v4010_v47 = vpop.permute.xlu1 %4009  ;;  %vm7916_vm10 = vcmask 900096  }
 0x567   : > { %6326 = vmatprep.subr.mxu0 %v6548_v48  ;;  %6319 = vmatmul.mubr.msk.f32.vlgmr.msra.gmra.mxu0 %vm7904_vm14, %v5976_v44  ;;  %vm7917_vm14 = vmmov %vm7908_vm2 }
 0x568   : > { %v4012_v49 = vpop.permute.xlu0 %4011  ;;  %6328 = vmatprep.mubr.msk.f32.mxu0 %vm7876_vm1, %v6548_v48 }
 0x569   : > { %v4013_v51 = vsel %vm7905_vm3, %v4010_v47, %v4012_v49  ;;  %vm7918_vm3 = vmmov %vm7915_vm0  ;;  %v3484_v39 = vpop.f32.mrf.mxu0  ;;  %v6022_v47 = vld [vmem:[%s7727_s2 + $0x14] sm:$0xf] }
 0x56a   : > { %6322 = vmatpush3.msk.msra.mxu1 %vm7906_vm5, %v4013_v51  ;;  %v4108_v52 = vpop.permute.xlu1 %4107  ;;  %vm7919_vm5 = vcmask 891904  }
 0x56b   : > { %6331 = vmatprep.subr.mxu1 %v6548_v48  ;;  %6324 = vmatmul.mubr.msk.f32.vlgmr.msra.gmra.mxu1 %vm7907_vm4, %v5979_v50  ;;  %vm7920_vm4 = vmmov %vm7908_vm2  ;;  %v6290_v42 = vpop.f32.mrf.mxu0 }
 0x56c   : > { %v4110_v55 = vpop.permute.xlu0 %4109  ;;  %6332 = vmatpush3.msk.msra.mxu1 %vm7908_vm2, %v4102_v54  ;;  %6333 = vmatprep.mubr.msk.f32.mxu1 %vm7876_vm1, %v6548_v48  ;;  %vm7921_vm2 = vmmov %vm7915_vm0 }
 0x56d   : > { %v4111_v60 = vsel %vm7909_vm15, %v4108_v52, %v4110_v55  ;;  %6341 = vmatprep.subr.mxu1 %v6548_v48  ;;  %vm7922_vm15 = vcmask 883712   ;;  %v6025_v52 = vld [vmem:[%s7727_s2 + $0x18] sm:$0xf] }
 0x56e   : > { %6327 = vmatpush3.msk.msra.mxu0 %vm7910_vm11, %v4111_v60  ;;  %v4268_v62 = vpop.permute.xlu1 %4267  ;;  %vm7923_vm11 = vmmov %vm7920_vm4  ;;  %v6028_v60 = vld [vmem:[%s7727_s2 + $0x1c] sm:$0xf] }
 0x56f   : > { %6336 = vmatprep.subr.mxu0 %v6548_v48  ;;  %6329 = vmatmul.mubr.msk.f32.vlgmr.msra.gmra.mxu0 %vm7911_vm13, %v5982_v56  ;;  %vm7924_vm13 = vmmov %vm7915_vm0 }
 0x570   : > { %v4270_v63 = vpop.permute.xlu0 %4269  ;;  %6334 = vmatmul.mubr.msk.f32.vlgmr.msra.gmra.mxu1 %vm7912_vm6, %v4101_v61  ;;  %6338 = vmatprep.mubr.msk.f32.mxu0 %vm7876_vm1, %v6548_v48  ;;  %vm7925_vm6 = vcmask 752640  }
 0x571   : > { %v4271_v46 = vsel %vm7913_vm7, %v4268_v62, %v4270_v63  ;;  %6343 = vmatprep.mubr.msk.f32.mxu1 %vm7876_vm1, %v6548_v48  ;;  %vm7926_vm7 = vmmov %vm7920_vm4 }
 0x572   : > { %6337 = vmatpush3.msk.msra.mxu0 %vm7914_vm12, %v4271_v46  ;;  %v4353_v58 = vpop.permute.xlu1 %4352  ;;  %vm7927_vm12 = vmmov %vm7915_vm0 }
 0x573   : > { %6346 = vmatprep.subr.mxu0 %v6548_v48  ;;  %6339 = vmatmul.mubr.msk.f32.vlgmr.msra.gmra.mxu0 %vm7915_vm0, %v5987_v1  ;;  %vm7928_vm0 = vcmask 744448   ;;  %v6031_v1 = vld [vmem:[%s7727_s2 + $0x20] sm:$0xf] }
 0x574   : > { %v4355_v2 = vpop.permute.xlu0 %4354  ;;  %6348 = vmatprep.mubr.msk.f32.mxu0 %vm7876_vm1, %v6548_v48 }
 0x575   : > { %v4356_v4 = vsel %vm7916_vm10, %v4353_v58, %v4355_v2  ;;  %vm7929_vm10 = vmmov %vm7920_vm4 }
 0x576   : > { %6342 = vmatpush3.msk.msra.mxu1 %vm7917_vm14, %v4356_v4  ;;  %v4438_v53 = vpop.permute.xlu1 %4437  ;;  %vm7930_vm14 = vmmov %vm7921_vm2 }
 0x577   : > { %6351 = vmatprep.subr.mxu1 %v6548_v48  ;;  %6344 = vmatmul.mubr.msk.f32.vlgmr.msra.gmra.mxu1 %vm7918_vm3, %v5990_v3  ;;  %vm7931_vm3 = vcmask 736256  }
 0x578   : > { %v4440_v5 = vpop.permute.xlu0 %4439  ;;  %6353 = vmatprep.mubr.msk.f32.mxu1 %vm7876_vm1, %v6548_v48 }
 0x579   : > { %v4441_v7 = vsel %vm7919_vm5, %v4438_v53, %v4440_v5  ;;  %vm7932_vm5 = vmmov %vm7920_vm4 }
 0x57a   : > { %6347 = vmatpush3.msk.msra.mxu0 %vm7920_vm4, %v4441_v7  ;;  %v4523_v9 = vpop.permute.xlu1 %4522  ;;  %vm7933_vm4 = vmmov %vm7921_vm2 }
 0x57b   : > { %6356 = vmatprep.subr.mxu0 %v6548_v48  ;;  %6349 = vmatmul.mubr.msk.f32.vlgmr.msra.gmra.mxu0 %vm7921_vm2, %v5993_v6  ;;  %vm7934_vm2 = vmmov %vm7932_vm5 }
 0x57c   : > { %v4525_v10 = vpop.permute.xlu0 %4524  ;;  %6358 = vmatprep.mubr.msk.f32.mxu0 %vm7876_vm1, %v6548_v48 }
 0x57d   : > { %v4526_v12 = vsel %vm7922_vm15, %v4523_v9, %v4525_v10  ;;  %vm7935_vm15 = vcmask 1039360  }
 0x57e   : > { %6352 = vmatpush3.msk.msra.mxu1 %vm7923_vm11, %v4526_v12  ;;  %v4608_v0 = vpop.permute.xlu1 %4607  ;;  %vm7936_vm11 = vmmov %vm7934_vm2 }
 0x57f   : > { %6354 = vmatmul.mubr.msk.f32.vlgmr.msra.gmra.mxu1 %vm7924_vm13, %v5996_v11  ;;  %6361 = vmatprep.subr.mxu1 %v6548_v48  ;;  %vm7937_vm13 = vmmov %vm7933_vm4 }
 0x580   : > { %v4610_v13 = vpop.permute.xlu0 %4609  ;;  %6363 = vmatprep.mubr.msk.f32.mxu1 %vm7876_vm1, %v6548_v48 }
 0x581   : > { %v4611_v14 = vsel %vm7925_vm6, %v4608_v0, %v4610_v13  ;;  %vm7938_vm6 = vmmov %vm7933_vm4 }
 0x582   : > { %6357 = vmatpush3.msk.msra.mxu0 %vm7926_vm7, %v4611_v14  ;;  %v4693_v15 = vpop.permute.xlu1 %4692  ;;  %vm7939_vm7 = vcmask 1031168  }
 0x583   : > { %6359 = vmatmul.mubr.msk.f32.vlgmr.msra.gmra.mxu0 %vm7927_vm12, %v5999_v8  ;;  %6366 = vmatprep.subr.mxu0 %v6548_v48  ;;  %vm7940_vm12 = vmmov %vm7934_vm2 }
 0x584   : > { %v4695_v16 = vpop.permute.xlu0 %4694  ;;  %6368 = vmatprep.mubr.msk.f32.mxu0 %vm7876_vm1, %v6548_v48 }
 0x585   : > { %v4696_v18 = vsel %vm7928_vm0, %v4693_v15, %v4695_v16  ;;  %vm7941_vm0 = vmmov %vm7933_vm4 }
 0x586   : > { %6362 = vmatpush3.msk.msra.mxu1 %vm7929_vm10, %v4696_v18  ;;  %v4778_v19 = vpop.permute.xlu1 %4777  ;;  %vm7942_vm10 = vcmask 900096  }
 0x587   : > { %6364 = vmatmul.mubr.msk.f32.vlgmr.msra.gmra.mxu1 %vm7930_vm14, %v6002_v17  ;;  %6371 = vmatprep.subr.mxu1 %v6548_v48  ;;  %vm7943_vm14 = vmmov %vm7934_vm2 }
 0x588   : > { %v4780_v20 = vpop.permute.xlu0 %4779  ;;  %6373 = vmatprep.mubr.msk.f32.mxu1 %vm7876_vm1, %v6548_v48 }
 0x589   : > { %v4781_v23 = vsel %vm7931_vm3, %v4778_v19, %v4780_v20  ;;  %vm7944_vm3 = vmmov %vm7941_vm0 }
 0x58a   : > { %6367 = vmatpush3.msk.msra.mxu0 %vm7932_vm5, %v4781_v23  ;;  %v4876_v25 = vpop.permute.xlu1 %4875  ;;  %vm7945_vm5 = vcmask 891904  }
 0x58b   : > { %6369 = vmatmul.mubr.msk.f32.vlgmr.msra.gmra.mxu0 %vm7933_vm4, %v6005_v22  ;;  %6376 = vmatprep.subr.mxu0 %v6548_v48  ;;  %vm7946_vm4 = vmmov %vm7934_vm2 }
 0x58c   : > { %v4878_v26 = vpop.permute.xlu0 %4877  ;;  %6377 = vmatpush3.msk.msra.mxu0 %vm7934_vm2, %v4870_v24  ;;  %6378 = vmatprep.mubr.msk.f32.mxu0 %vm7876_vm1, %v6548_v48  ;;  %vm7947_vm2 = vmmov %vm7941_vm0 }
 0x58d   : > { %v4879_v28 = vsel %vm7935_vm15, %v4876_v25, %v4878_v26  ;;  %6386 = vmatprep.subr.mxu0 %v6548_v48  ;;  %vm7948_vm15 = vcmask 883712  }
 0x58e   : > { %6372 = vmatpush3.msk.msra.mxu1 %vm7936_vm11, %v4879_v28  ;;  %v5036_v30 = vpop.permute.xlu1 %5035  ;;  %vm7949_vm11 = vmmov %vm7946_vm4 }
 0x58f   : > { %6381 = vmatprep.subr.mxu1 %v6548_v48  ;;  %6374 = vmatmul.mubr.msk.f32.vlgmr.msra.gmra.mxu1 %vm7937_vm13, %v6008_v27  ;;  %vm7950_vm13 = vmmov %vm7941_vm0 }
 0x590   : > { %v5038_v32 = vpop.permute.xlu0 %5037  ;;  %6379 = vmatmul.mubr.msk.f32.vlgmr.msra.gmra.mxu0 %vm7938_vm6, %v4869_v29  ;;  %6383 = vmatprep.mubr.msk.f32.mxu1 %vm7876_vm1, %v6548_v48  ;;  %vm7951_vm6 = vcmask 752640  }
 0x591   : > { %v5039_v59 = vsel %vm7939_vm7, %v5036_v30, %v5038_v32  ;;  %6388 = vmatprep.mubr.msk.f32.mxu0 %vm7876_vm1, %v6548_v48  ;;  %vm7952_vm7 = vmmov %vm7946_vm4 }
 0x592   : > { %6382 = vmatpush3.msk.msra.mxu1 %vm7940_vm12, %v5039_v59  ;;  %v5121_v34 = vpop.permute.xlu1 %5120  ;;  %vm7953_vm12 = vmmov %vm7941_vm0 }
 0x593   : > { %6391 = vmatprep.subr.mxu1 %v6548_v48  ;;  %6384 = vmatmul.mubr.msk.f32.vlgmr.msra.gmra.mxu1 %vm7941_vm0, %v6013_v33  ;;  %vm7954_vm0 = vcmask 744448  }
 0x594   : > { %v5123_v35 = vpop.permute.xlu0 %5122  ;;  %6393 = vmatprep.mubr.msk.f32.mxu1 %vm7876_vm1, %v6548_v48 }
 0x595   : > { %v5124_v37 = vsel %vm7942_vm10, %v5121_v34, %v5123_v35  ;;  %vm7955_vm10 = vmmov %vm7946_vm4 }
 0x596   : > { %6387 = vmatpush3.msk.msra.mxu0 %vm7943_vm14, %v5124_v37  ;;  %v5206_v38 = vpop.permute.xlu1 %5205  ;;  %vm7956_vm14 = vmmov %vm7947_vm2 }
 0x597   : > { %6396 = vmatprep.subr.mxu0 %v6548_v48  ;;  %6389 = vmatmul.mubr.msk.f32.vlgmr.msra.gmra.mxu0 %vm7944_vm3, %v6016_v36  ;;  %vm7957_vm3 = vcmask 736256  }
 0x598   : > { %v5208_v40 = vpop.permute.xlu0 %5207  ;;  %6398 = vmatprep.mubr.msk.f32.mxu0 %vm7876_vm1, %v6548_v48 }
 0x599   : > { %v5209_v43 = vsel %vm7945_vm5, %v5206_v38, %v5208_v40  ;;  %vm7958_vm5 = vmmov %vm7946_vm4 }
 0x59a   : > { %6392 = vmatpush3.msk.msra.mxu1 %vm7946_vm4, %v5209_v43  ;;  %v5291_v44 = vpop.permute.xlu1 %5290  ;;  %vm7959_vm4 = vmmov %vm7947_vm2 }
 0x59b   : > { %6401 = vmatprep.subr.mxu1 %v6548_v48  ;;  %6394 = vmatmul.mubr.msk.f32.vlgmr.msra.gmra.mxu1 %vm7947_vm2, %v6019_v41  ;;  %vm7961_vm2 = vmmov %vm7958_vm5 }
 0x59c   : > { %v5293_v45 = vpop.permute.xlu0 %5292  ;;  %6403 = vmatprep.mubr.msk.f32.mxu1 %vm7876_vm1, %v6548_v48 }
 0x59d   : > { %v5294_v49 = vsel %vm7948_vm15, %v5291_v44, %v5293_v45  ;;  %vm7962_vm15 = vmmov %vm7961_vm2 }
 0x59e   : > { %6397 = vmatpush3.msk.msra.mxu0 %vm7949_vm11, %v5294_v49  ;;  %v5376_v50 = vpop.permute.xlu1 %5375  ;;  %vm7963_vm11 = vmmov %vm7961_vm2 }
 0x59f   : > { %6399 = vmatmul.mubr.msk.f32.vlgmr.msra.gmra.mxu0 %vm7950_vm13, %v6022_v47  ;;  %6406 = vmatprep.subr.mxu0 %v6548_v48  ;;  %vm7964_vm13 = vmmov %vm7961_vm2 }
 0x5a0   : > { %v5378_v51 = vpop.permute.xlu0 %5377  ;;  %6408 = vmatprep.mubr.msk.f32.mxu0 %vm7876_vm1, %v6548_v48 }
 0x5a1   : > { %v5379_v54 = vsel %vm7951_vm6, %v5376_v50, %v5378_v51  ;;  %vm7966_vm6 = vmmov %vm7961_vm2 }
 0x5a2   : > { %6402 = vmatpush3.msk.msra.mxu1 %vm7952_vm7, %v5379_v54  ;;  %v5461_v55 = vpop.permute.xlu1 %5460  ;;  %vm5660_vm7 = vcmask 257152  }
 0x5a3   : > { %6404 = vmatmul.mubr.msk.f32.vlgmr.msra.gmra.mxu1 %vm7953_vm12, %v6025_v52  ;;  %6411 = vmatprep.subr.mxu1 %v6548_v48  ;;  %vm5671_vm12 = vcmask 388352  }
 0x5a4   : > { %v5463_v56 = vpop.permute.xlu0 %5462  ;;  %6413 = vmatprep.mubr.msk.f32.mxu1 %vm7876_vm1, %v6548_v48  ;;  %vm7960_vm1 = vcmp.eq.s32.totalorder %v7111_v21, 1 }
 0x5a5   : > { %v5464_v61 = vsel %vm7954_vm0, %v5461_v55, %v5463_v56  ;;  %vm5682_vm0 = vcmask 519552  }
 0x5a6   : > { %6407 = vmatpush3.msk.msra.mxu0 %vm7955_vm10, %v5464_v61  ;;  %v5546_v62 = vpop.permute.xlu1 %5545  ;;  %vm5693_vm10 = vcmask 650752  }
 0x5a7   : > { %6409 = vmatmul.mubr.msk.f32.vlgmr.msra.gmra.mxu0 %vm7956_vm14, %v6028_v60  ;;  %vm5704_vm14 = vcmask 781952  }
 0x5a8   : > { %v5548_v63 = vpop.permute.xlu0 %5547 }
 0x5a9   : > { %v5549_v46 = vsel %vm7957_vm3, %v5546_v62, %v5548_v63  ;;  %vm5715_vm3 = vcmask 913152  }
 0x5aa   : > { %6412 = vmatpush3.msk.msra.mxu1 %vm7958_vm5, %v5549_v46  ;;  %vm5725_vm5 = vcmask 932864  }
 0x5ab   : > { %6414 = vmatmul.mubr.msk.f32.vlgmr.msra.gmra.mxu1 %vm7959_vm4, %v6031_v1  ;;  %vm5729_vm4 = vcmask 1044352  }
 0x60f   : > { %v3408_v58 = vpop.f32.mrf.mxu1 }
 0x610   : > { %v3485_v48 = vadd.f32 %v3484_v39, %v3408_v58 }
 0x611   : > { %v6285_v2 = vpop.f32.mrf.mxu1 }
 0x613   : > { %v3569_v3 = vpop.f32.mrf.mxu1 }
 0x614   : > { %v3573_v4 = vadd.f32 %v3569_v3, %v3485_v48 }
 0x615   : > { %v6295_v53 = vpop.f32.mrf.mxu1 }
 0x617   : > { %v3655_v5 = vpop.f32.mrf.mxu0 }
 0x618   : > { %v3659_v6 = vadd.f32 %v3655_v5, %v3573_v4 }
 0x619   : > { %v6300_v7 = vpop.f32.mrf.mxu0 }
 0x61b   : > { %v3741_v9 = vpop.f32.mrf.mxu1 }
 0x61c   : > { %v3745_v10 = vadd.f32 %v3741_v9, %v3659_v6 }
 0x61d   : > { %v6305_v11 = vpop.f32.mrf.mxu1 }
 0x61f   : > { %v3827_v12 = vpop.f32.mrf.mxu0 }
 0x620   : > { %v3831_v0 = vadd.f32 %v3827_v12, %v3745_v10 }
 0x621   : > { %v6310_v13 = vpop.f32.mrf.mxu0 }
 0x623   : > { %v3913_v8 = vpop.f32.mrf.mxu1 }
 0x624   : > { %v3917_v14 = vadd.f32 %v3913_v8, %v3831_v0 }
 0x625   : > { %v6315_v15 = vpop.f32.mrf.mxu1 }
 0x627   : > { %v3999_v16 = vpop.f32.mrf.mxu0 }
 0x628   : > { %v4003_v17 = vadd.f32 %v3999_v16, %v3917_v14 }
 0x629   : > { %v6320_v18 = vpop.f32.mrf.mxu0 }
 0x62b   : > { %v4085_v19 = vpop.f32.mrf.mxu1 }
 0x62c   : > { %v4089_v20 = vadd.f32 %v4085_v19, %v4003_v17 }
 0x62d   : > { %v6325_v22 = vpop.f32.mrf.mxu1 }
 0x62e   : > { %v4091_v23 = vsel %vm7960_vm1, %v4089_v20, 0.0  ;;  %4090 = vst [vmem:[#allocation4] sm:$0xf] %v4089_v20  ;;  %vm5799_vm1 = vcmask 818176  }
 0x62f   : > { %v4096_v24 = vmul.f32 %v4091_v23, %v4091_v23  ;;  %v4183_v25 = vpop.f32.mrf.mxu0  ;;  %v4092_v26 = vsel %vm7961_vm2, %v4091_v23, 0.0 }
 0x630   : > { %v4259_v27 = vpop.f32.mrf.mxu1  ;;  %4093 = vadd.xlane.f32.xlu1 %v4092_v26 }
 0x631   : > { %v6330_v28 = vpop.f32.mrf.mxu0  ;;  %v4260_v29 = vadd.f32 %v4259_v27, %v4183_v25  ;;  %v4097_v30 = vsel %vm7962_vm15, %v4096_v24, 0.0 }
 0x632   : > { %v6335_v32 = vpop.f32.mrf.mxu1  ;;  %4098 = vadd.xlane.f32.xlu0 %v4097_v30 }
 0x633   : > { %v4343_v33 = vpop.f32.mrf.mxu0 }
 0x634   : > { %v4347_v59 = vadd.f32 %v4343_v33, %v4260_v29 }
 0x635   : > { %v6340_v34 = vpop.f32.mrf.mxu0 }
 0x637   : > { %v4428_v35 = vpop.f32.mrf.mxu1 }
 0x638   : > { %v4432_v36 = vadd.f32 %v4428_v35, %v4347_v59 }
 0x639   : > { %v6345_v21 = vpop.f32.mrf.mxu1 }
 0x63b   : > { %v4513_v37 = vpop.f32.mrf.mxu0 }
 0x63c   : > { %v4517_v38 = vadd.f32 %v4513_v37, %v4432_v36 }
 0x63d   : > { %v6350_v39 = vpop.f32.mrf.mxu0 }
 0x63e   : > { %v5651_v39 = vld [vmem:[#allocation4] sm:$0xf] }
 0x63f   : > { %v4598_v40 = vpop.f32.mrf.mxu1 }
 0x640   : > { %v4602_v41 = vadd.f32 %v4598_v40, %v4517_v38  ;;  %v5662_v38 = vld [vmem:[#allocation4] sm:$0xf] }
 0x641   : > { %v6355_v42 = vpop.f32.mrf.mxu1 }
 0x643   : > { %v4683_v43 = vpop.f32.mrf.mxu0 }
 0x644   : > { %v4687_v44 = vadd.f32 %v4683_v43, %v4602_v41 }
 0x645   : > { %v6360_v45 = vpop.f32.mrf.mxu0 }
 0x646   : > { %v5673_v45 = vld [vmem:[#allocation4] sm:$0xf] }
 0x647   : > { %v4768_v47 = vpop.f32.mrf.mxu1 }
 0x648   : > { %v4772_v49 = vadd.f32 %v4768_v47, %v4687_v44  ;;  %v5684_v47 = vld [vmem:[#allocation4] sm:$0xf] }
 0x649   : > { %v6365_v50 = vpop.f32.mrf.mxu1 }
 0x64b   : > { %v4853_v51 = vpop.f32.mrf.mxu0 }
 0x64c   : > { %v4857_v52 = vadd.f32 %v4853_v51, %v4772_v49  ;;  %v5644_v51 = vld [vmem:[#allocation4] sm:$0xf] }
 0x64d   : > { %v6370_v54 = vpop.f32.mrf.mxu0 }
 0x64e   : > { %v4859_v55 = vsel %vm2136_vm8, %v4857_v52, 0.0  ;;  %4858 = vst [vmem:[#allocation4 + $0x4] sm:$0xf] %v4857_v52  ;;  %vm7965_vm8 = vmmov %vm7961_vm2 }
 0x64f   : > { %v4864_v56 = vmul.f32 %v4859_v55, %v4859_v55  ;;  %v4860_v60 = vsel %vm7963_vm11, %v4859_v55, 0.0  ;;  %v4951_v61 = vpop.f32.mrf.mxu1 }
 0x650   : > { %4861 = vadd.xlane.f32.xlu0 %v4860_v60  ;;  %v5027_v62 = vpop.f32.mrf.mxu0  ;;  %v5695_v60 = vld [vmem:[#allocation4] sm:$0xf] }
 0x651   : > { %v4865_v63 = vsel %vm7964_vm13, %v4864_v56, 0.0  ;;  %v6375_v1 = vpop.f32.mrf.mxu1  ;;  %v5028_v46 = vadd.f32 %v5027_v62, %v4951_v61  ;;  %v5645_v56 = vld [vmem:[%s6630_s17] sm:$0xf] }
 0x652   : > { %4866 = vadd.xlane.f32.xlu1 %v4865_v63  ;;  %v6380_v58 = vpop.f32.mrf.mxu0  ;;  %v5706_v61 = vld [vmem:[#allocation4] sm:$0xf] }
 0x653   : > { %v5111_v48 = vpop.f32.mrf.mxu1 }
 0x654   : > { %v5115_v3 = vadd.f32 %v5111_v48, %v5028_v46 }
 0x655   : > { %v6385_v2 = vpop.f32.mrf.mxu1 }
 0x656   : > { %v5717_v2 = vld [vmem:[#allocation4] sm:$0xff] }
 0x657   : > { %v5196_v4 = vpop.f32.mrf.mxu0 }
 0x658   : > { %v5200_v57 = vadd.f32 %v5196_v4, %v5115_v3  ;;  %v5731_v3 = vld [vmem:[#allocation4 + $0x4] sm:$0xf] }
 0x659   : > { %v6390_v53 = vpop.f32.mrf.mxu0 }
 0x65b   : > { %v5281_v5 = vpop.f32.mrf.mxu1 }
 0x65c   : > { %v5285_v7 = vadd.f32 %v5281_v5, %v5200_v57 }
 0x65d   : > { %v6395_v6 = vpop.f32.mrf.mxu1 }
 0x65e   : > { %v5741_v6 = vld [vmem:[#allocation4 + $0x4] sm:$0xf] }
 0x65f   : > { %v5366_v9 = vpop.f32.mrf.mxu0 }
 0x660   : > { %v5370_v11 = vadd.f32 %v5366_v9, %v5285_v7  ;;  %v5751_v7 = vld [vmem:[#allocation4 + $0x4] sm:$0xf] }
 0x661   : > { %v6400_v10 = vpop.f32.mrf.mxu0 }
 0x663   : > { %v5451_v12 = vpop.f32.mrf.mxu1 }
 0x664   : > { %v5455_v13 = vadd.f32 %v5451_v12, %v5370_v11 }
 0x665   : > { %v6405_v0 = vpop.f32.mrf.mxu1 }
 0x666   : > { %v5761_v0 = vld [vmem:[#allocation4 + $0x4] sm:$0xf] }
 0x667   : > { %v5536_v8 = vpop.f32.mrf.mxu0 }
 0x668   : > { %v5540_v15 = vadd.f32 %v5536_v8, %v5455_v13  ;;  %v5771_v13 = vld [vmem:[#allocation4 + $0x4] sm:$0xf] }
 0x669   : > { %v6410_v14 = vpop.f32.mrf.mxu0 }
 0x66b   : > { %v5621_v16 = vpop.f32.mrf.mxu1 }
 0x66c   : > { %v5625_v17 = vadd.f32 %v5621_v16, %v5540_v15 }
 0x66d   : > { %v6415_v18 = vpop.f32.mrf.mxu1 }
 0x66e   : > { %5626 = vst [vmem:[#allocation4 + $0x8] sm:$0xf] %v5625_v17  ;;  %v5627_v19 = vsel %vm7140_vm9, %v5625_v17, 0.0  ;;  %vm5649_vm9 = vcmask 125952   ;;  %v5781_v17 = vld [vmem:[#allocation4 + $0x4] sm:$0xf] }
 0x66f   : > { %v5632_v20 = vmul.f32 %v5627_v19, %v5627_v19  ;;  %v5628_v22 = vsel %vm7965_vm8, %v5627_v19, 0.0 }
 0x670   : > { %5629 = vadd.xlane.f32.xlu0 %v5628_v22 }
 0x671   : > { %v5633_v23 = vsel %vm7966_vm6, %v5632_v20, 0.0 }
 0x672   : > { %5634 = vadd.xlane.f32.xlu1 %v5633_v23 }
 0x675   : > { %v5791_v18 = vld [vmem:[#allocation4 + $0x4] sm:$0xff] }
 0x6b9   : > { %v4094_v25 = vpop.xlane.xlu1 %4093 }
 0x6bb   : > { %v4099_v24 = vpop.xlane.xlu0 %4098 }
 0x6d9   : > { %v4862_v26 = vpop.xlane.xlu0 %4861 }
 0x6da   : > { %v4863_v28 = vadd.f32 %v4862_v26, %v4094_v25 }
 0x6db   : > { %v4867_v27 = vpop.xlane.xlu1 %4866 }
 0x6dc   : > { %v4868_v30 = vadd.f32 %v4867_v27, %v4099_v24  ;;  %v5804_v24 = vld [vmem:[#allocation4 + $0x8] sm:$0xf]  ;;  %v5663_v27 = vld [vmem:[%s6630_s17] sm:$0xf] }
 0x6f9   : > { %v5630_v29 = vpop.xlane.xlu0 %5629 }
 0x6fa   : > { %v5631_v32 = vadd.f32 %v5630_v29, %v4863_v28  ;;  %v5652_v28 = vld [vmem:[%s6630_s17] sm:$0xf] }
 0x6fb   : > { %v5635_v33 = vpop.xlane.xlu1 %5634 }
 0x6fc   : > { %v7624_v59 = vmul.f32 0.00390625, %v5631_v32  ;;  %v5636_v31 = vadd.f32 %v5635_v33, %v4868_v30 }
 0x6fe   : > { %v5639_v34 = vmul.f32 %v7624_v59, %v7624_v59  ;;  %v5638_v35 = vmul.f32 0.00390625, %v5636_v31  ;;  %v5664_v40 = vsub.f32 %v5662_v38, %v7624_v59  ;;  %v5653_v41 = vsub.f32 %v5651_v39, %v7624_v59  ;;  %v5674_v31 = vld [vmem:[%s6630_s17] sm:$0xf] }
 0x6ff   : > { %v5675_v49 = vsub.f32 %v5673_v45, %v7624_v59  ;;  %v5686_v50 = vsub.f32 %v5684_v47, %v7624_v59  ;;  %v5646_v52 = vsub.f32 %v5644_v51, %v7624_v59  ;;  %v5697_v63 = vsub.f32 %v5695_v60, %v7624_v59  ;;  %v5707_v38 = vld [vmem:[%s6630_s17] sm:$0xf]  ;;  %v5742_v51 = vld [vmem:[%s6630_s17 + $0x4] sm:$0xf] }
 0x700   : > { %v5640_v36 = vsub.f32 %v5638_v35, %v5639_v34  ;;  %v5708_v1 = vsub.f32 %v5706_v61, %v7624_v59  ;;  %v5719_v4 = vsub.f32 %v5717_v2, %v7624_v59  ;;  %v5733_v53 = vsub.f32 %v5731_v3, %v7624_v59  ;;  %v5685_v34 = vld [vmem:[%s6630_s17] sm:$0xf]  ;;  %v5782_v3 = vld [vmem:[%s6630_s17 + $0x4] sm:$0xf] }
 0x701   : > { %v5743_v9 = vsub.f32 %v5741_v6, %v7624_v59  ;;  %v5753_v10 = vsub.f32 %v5751_v7, %v7624_v59  ;;  %v5763_v8 = vsub.f32 %v5761_v0, %v7624_v59  ;;  %v5773_v14 = vsub.f32 %v5771_v13, %v7624_v59  ;;  %v5718_v47 = vld [vmem:[%s6630_s17] sm:$0xf]  ;;  %v5805_v7 = vld [vmem:[%s6630_s17 + $0x4] sm:$0xf] }
 0x702   : > { %v5641_v21 = vmax.f32 %v5640_v36, 0.0  ;;  %v5783_v19 = vsub.f32 %v5781_v17, %v7624_v59  ;;  %v5793_v20 = vsub.f32 %v5791_v18, %v7624_v59  ;;  %v5806_v25 = vsub.f32 %v5804_v24, %v7624_v59 }
 0x704   : > { %v5642_v37 = vadd.f32 1e-05, %v5641_v21 }
 0x706   : > { %6508 = vrsqrt.f32 %v5642_v37  ;;  %v5696_v37 = vld [vmem:[%s6630_s17] sm:$0xf] }
 0x713   : > { %v7630_v42 = vpop.eup %6508 }
 0x714   : > { %v5665_v43 = vmul.f32 %v7630_v42, %v5664_v40  ;;  %v5654_v44 = vmul.f32 %v7630_v42, %v5653_v41  ;;  %v5676_v54 = vmul.f32 %v7630_v42, %v5675_v49  ;;  %v5687_v55 = vmul.f32 %v7630_v42, %v5686_v50 }
 0x715   : > { %v5647_v62 = vmul.f32 %v7630_v42, %v5646_v52  ;;  %v5698_v58 = vmul.f32 %v7630_v42, %v5697_v63  ;;  %v5709_v48 = vmul.f32 %v7630_v42, %v5708_v1  ;;  %v5720_v57 = vmul.f32 %v7630_v42, %v5719_v4  ;;  %v5752_v52 = vld [vmem:[%s6630_s17 + $0x4] sm:$0xf] }
 0x716   : > { %5667 = vrot.lane.b32.xlu1 %v5665_v43, %s7842_s29  ;;  %5656 = vrot.lane.b32.xlu0 %v5654_v44, %s6546_s30  ;;  %s6584_s29 = smov 122   ;;  %s6585_s30 = smov 120   ;;  %v5734_v5 = vmul.f32 %v7630_v42, %v5733_v53  ;;  %v5744_v11 = vmul.f32 %v7630_v42, %v5743_v9  ;;  %v5754_v12 = vmul.f32 %v7630_v42, %v5753_v10  ;;  %v5732_v43 = vld [vmem:[%s6630_s17 + $0x4] sm:$0xf] }
 0x717   : > { %v5648_v46 = vadd.f32 %v5647_v62, %v5645_v56  ;;  %v5764_v15 = vmul.f32 %v7630_v42, %v5763_v8  ;;  %v5774_v16 = vmul.f32 %v7630_v42, %v5773_v14  ;;  %v5784_v22 = vmul.f32 %v7630_v42, %v5783_v19  ;;  %v5762_v63 = vld [vmem:[%s6630_s17 + $0x4] sm:$0xf] }
 0x718   : > { %v5794_v23 = vmul.f32 %v7630_v42, %v5793_v20  ;;  %v5807_v26 = vmul.f32 %v7630_v42, %v5806_v25  ;;  %v5772_v1 = vld [vmem:[%s6630_s17 + $0x4] sm:$0xf] }
 0x719   : > { %5650 = vst.msk [vmem:[%s7650_s21] sm:$0xf] %vm5649_vm9, %v5648_v46 }
 0x71a   : > { %5678 = vrot.lane.b32.xlu1 %v5676_v54, %s6584_s29  ;;  %5689 = vrot.lane.b32.xlu0 %v5687_v55, %s6585_s30 }
 0x71e   : > { %5700 = vrot.lane.b32.xlu1 %v5698_v58, %s6586_s24  ;;  %5711 = vrot.lane.b32.xlu0 %v5709_v48, %s6587_s25 }
 0x722   : > { %5722 = vrot.lane.b32.xlu1 %v5720_v57, %s6588_s13  ;;  %5736 = vrot.lane.b32.xlu0 %v5734_v5, %s6589_s15  ;;  %v5792_v5 = vld [vmem:[%s6630_s17 + $0x4] sm:$0xf] }
 0x726   : > { %5746 = vrot.lane.b32.xlu1 %v5744_v11, %s7880_s6  ;;  %5756 = vrot.lane.b32.xlu0 %v5754_v12, %s7825_s20  ;;  %s6591_s20 = smov 102   ;;  %s6592_s6 = smov 100  }
 0x72a   : > { %5766 = vrot.lane.b32.xlu1 %v5764_v15, %s7845_s5  ;;  %5776 = vrot.lane.b32.xlu0 %v5774_v16, %s6590_s19  ;;  %s6593_s5 = smov 98  }
 0x72e   : > { %5786 = vrot.lane.b32.xlu1 %v5784_v22, %s6591_s20  ;;  %5796 = vrot.lane.b32.xlu0 %v5794_v23, %s6592_s6 }
 0x732   : > { %5809 = vrot.lane.b32.xlu1 %v5807_v26, %s6593_s5 }
 0x788   : > { %v5668_v29 = vpop.permute.xlu1 %5667  ;;  %v5657_v30 = vpop.permute.xlu0 %5656 }
 0x789   : > { %v5670_v32 = vadd.f32 %v5668_v29, %v5663_v27  ;;  %v5659_v33 = vadd.f32 %v5657_v30, %v5652_v28 }
 0x78b   : > { %5661 = vst.msk [vmem:[%s7650_s21] sm:$0xf] %vm5660_vm7, %v5659_v33 }
 0x78c   : > { %v5679_v59 = vpop.permute.xlu1 %5678  ;;  %v5690_v35 = vpop.permute.xlu0 %5689  ;;  %5672 = vst.msk [vmem:[%s7650_s21] sm:$0xf] %vm5671_vm12, %v5670_v32 }
 0x78d   : > { %v5681_v36 = vadd.f32 %v5679_v59, %v5674_v31  ;;  %v5692_v21 = vadd.f32 %v5690_v35, %v5685_v34 }
 0x78f   : > { %5683 = vst.msk [vmem:[%s7650_s21] sm:$0xf] %vm5682_vm0, %v5681_v36 }
 0x790   : > { %v5701_v39 = vpop.permute.xlu1 %5700  ;;  %v5712_v40 = vpop.permute.xlu0 %5711  ;;  %5694 = vst.msk [vmem:[%s7650_s21] sm:$0xf] %vm5693_vm10, %v5692_v21 }
 0x791   : > { %v5703_v41 = vadd.f32 %v5701_v39, %v5696_v37  ;;  %v5714_v42 = vadd.f32 %v5712_v40, %v5707_v38 }
 0x793   : > { %5705 = vst.msk [vmem:[%s7650_s21] sm:$0xf] %vm5704_vm14, %v5703_v41 }
 0x794   : > { %v5723_v44 = vpop.permute.xlu1 %5722  ;;  %v5737_v45 = vpop.permute.xlu0 %5736  ;;  %5716 = vst.msk [vmem:[%s7650_s21] sm:$0xf] %vm5715_vm3, %v5714_v42 }
 0x795   : > { %v5724_v49 = vrot.slane %v5723_v44, 4  ;;  %v5739_v50 = vadd.f32 %v5737_v45, %v5732_v43 }
 0x797   : > { %v5726_v54 = vsel %vm5725_vm5, %v5723_v44, %v5724_v49  ;;  %5740 = vst.msk [vmem:[%s7650_s21 + $0x4] sm:$0xf] %vm5649_vm9, %v5739_v50 }
 0x798   : > { %v5728_v55 = vadd.f32 %v5726_v54, %v5718_v47  ;;  %v5747_v56 = vpop.permute.xlu1 %5746  ;;  %v5757_v60 = vpop.permute.xlu0 %5756 }
 0x799   : > { %v5749_v61 = vadd.f32 %v5747_v56, %v5742_v51  ;;  %v5759_v62 = vadd.f32 %v5757_v60, %v5752_v52 }
 0x79a   : > { %5730 = vst.msk [vmem:[%s7650_s21] sm:$0xf] %vm5729_vm4, %v5728_v55 }
 0x79b   : > { %5750 = vst.msk [vmem:[%s7650_s21 + $0x4] sm:$0xf] %vm5660_vm7, %v5749_v61 }
 0x79c   : > { %5760 = vst.msk [vmem:[%s7650_s21 + $0x4] sm:$0xf] %vm5671_vm12, %v5759_v62  ;;  %v5767_v46 = vpop.permute.xlu1 %5766  ;;  %v5777_v58 = vpop.permute.xlu0 %5776 }
 0x79d   : > { %v5769_v48 = vadd.f32 %v5767_v46, %v5762_v63  ;;  %v5779_v2 = vadd.f32 %v5777_v58, %v5772_v1 }
 0x79f   : > { %5770 = vst.msk [vmem:[%s7650_s21 + $0x4] sm:$0xf] %vm5682_vm0, %v5769_v48 }
 0x7a0   : > { %5780 = vst.msk [vmem:[%s7650_s21 + $0x4] sm:$0xf] %vm5693_vm10, %v5779_v2  ;;  %v5787_v4 = vpop.permute.xlu1 %5786  ;;  %v5797_v53 = vpop.permute.xlu0 %5796 }
 0x7a1   : > { %v5789_v57 = vadd.f32 %v5787_v4, %v5782_v3  ;;  %v5798_v6 = vrot.slane %v5797_v53, 4 }
 0x7a3   : > { %5790 = vst.msk [vmem:[%s7650_s21 + $0x4] sm:$0xf] %vm5704_vm14, %v5789_v57  ;;  %v5800_v9 = vsel %vm5799_vm1, %v5797_v53, %v5798_v6 }
 0x7a4   : > { %v5802_v10 = vadd.f32 %v5800_v9, %v5792_v5  ;;  %v5810_v11 = vpop.permute.xlu1 %5809 }
 0x7a5   : > { %v5812_v12 = vadd.f32 %v5810_v11, %v5805_v7 }
 0x7a6   : > { %5803 = vst.msk [vmem:[%s7650_s21 + $0x4] sm:$0xf] %vm5715_vm3, %v5802_v10 }
 0x7a7   : > { %5813 = vst.msk [vmem:[%s7650_s21 + $0x4] sm:$0xf] %vm5729_vm4, %v5812_v12 }
 0x7a8 PF: > { %s13_s12 = sadd.s32 1, %s6516_s12  }
 0x7a9   : > { %p10_p4 = scmp.ge.s32.totalorder %s13_s12, 4  }
 0x7ab   :  { %12 = sbr.rel (!%p10_p4) target bundleno = 1 (0x1), region = 78 }

</bundles_post_ra>
